<compile_context>
chip_gen: v5e
topology: v5e:2x2
jax: 0.10.0
libtpu: 0.0.40
codegen_flags: <defaults>
</compile_context>

<pallas_src>
from functools import partial

import jax
import jax.numpy as jnp
from jax import lax
from jax.experimental import pallas as pl
from jax.experimental.pallas import tpu as pltpu

BN_EPS = 1e-5
VAR_EPS = 1e-4

_VMEM = pl.BlockSpec(memory_space=pltpu.MemorySpace.VMEM)
_SMEM = pl.BlockSpec(memory_space=pltpu.MemorySpace.SMEM)


def _vmem_limit_bytes():
    """Generation-aware scoped-VMEM limit: ~100 MiB on 128-MiB parts (v5e/v6e),
    ~80% of capacity (~51 MiB) on 64-MiB v7x; conservative fallback otherwise."""
    try:
        cap = pltpu.get_tpu_info().vmem_capacity_bytes
        return int(min(cap * 0.8, 100 * (1 << 20)))
    except Exception:
        return 48 << 20


def _compiler_params():
    return pltpu.CompilerParams(vmem_limit_bytes=_vmem_limit_bytes())


def _bn_relu_per_view(h, gamma, beta, n_views, n_per):
    """Training-mode BatchNorm1d (batch mean, biased var, eps=1e-5) applied
    independently per view on a stacked [n_views*n_per, H] activation, then ReLU.

    Per-view statistics via static row slices + sublane reductions — no dense
    block-diagonal averaging matmul, no reshape."""
    outs = []
    for v in range(n_views):
        hv = h[v * n_per:(v + 1) * n_per]
        mu = jnp.mean(hv, axis=0, keepdims=True)
        cen = hv - mu
        var = jnp.mean(cen * cen, axis=0, keepdims=True)
        outs.append(jnp.maximum(cen * lax.rsqrt(var + BN_EPS) * gamma + beta, 0.0))
    return jnp.concatenate(outs, axis=0)


# ---------------- single fused kernel: projector -> VICReg terms -> predictor+distill
def fused_vicreg_kernel(x_ref,
                        pw1, pb1, pg1, pbe1, pw2, pb2, pg2, pbe2, pw3, pb3,
                        *rest,
                        n_per, cassle, sim_coeff, std_coeff, cov_coeff, distill_lamb):
    if cassle:
        qw1, qb1, qg1, qbe1, qw2, qb2, out_ref = rest
    else:
        (out_ref,) = rest
    n_views = 4 if cassle else 2
    n = n_per

    # ---- shared projector on the stacked [n_views*N, dim_in] batch (weights read once,
    #      MXU sees M = n_views*N rows). bf16 operands, f32 accumulation. ----
    x = x_ref[...].astype(jnp.bfloat16)
    h = jnp.dot(x, pw1[...], preferred_element_type=jnp.float32) + pb1[...]
    h = _bn_relu_per_view(h, pg1[...], pbe1[...], n_views, n)
    h = jnp.dot(h.astype(jnp.bfloat16), pw2[...], preferred_element_type=jnp.float32) + pb2[...]
    h = _bn_relu_per_view(h, pg2[...], pbe2[...], n_views, n)
    z = jnp.dot(h.astype(jnp.bfloat16), pw3[...], preferred_element_type=jnp.float32) + pb3[...]
    d = z.shape[-1]

    z1 = z[0:n]          # student view
    z2 = z[n:2 * n]      # teacher view

    # ---- invariance: F.mse_loss(z1, z2) ----
    diff = z1 - z2
    sim = jnp.sum(diff * diff) / (n * d)

    # ---- variance: torch.var(dim=0) is unbiased (/(N-1)), eps=1e-4;
    #      reference sums the two mean(relu(1-std)) terms (no /2) ----
    c1 = z1 - jnp.mean(z1, axis=0, keepdims=True)
    c2 = z2 - jnp.mean(z2, axis=0, keepdims=True)
    var1 = jnp.sum(c1 * c1, axis=0, keepdims=True) / (n - 1)
    var2 = jnp.sum(c2 * c2, axis=0, keepdims=True) / (n - 1)
    std_loss = (jnp.mean(jnp.maximum(1.0 - jnp.sqrt(var1 + VAR_EPS), 0.0))
                + jnp.mean(jnp.maximum(1.0 - jnp.sqrt(var2 + VAR_EPS), 0.0)))

    # ---- covariance: off-diagonal sum of squares via the identity
    #      sum(offdiag(cov)^2) = sum(cov^2) - sum(diag(cov)^2).
    #      Gram matmul with bf16 operands / f32 accumulation (MXU-friendly on all gens,
    #      required on v5e); the diagonal is recomputed from the same bf16-rounded
    #      operands so the subtraction matches the MXU diagonal. ----
    c1b = c1.astype(jnp.bfloat16)
    c2b = c2.astype(jnp.bfloat16)
    dn = (((0,), (0,)), ((), ()))
    cov1 = lax.dot_general(c1b, c1b, dn, preferred_element_type=jnp.float32) / (n - 1)
    cov2 = lax.dot_general(c2b, c2b, dn, preferred_element_type=jnp.float32) / (n - 1)
    c1f = c1b.astype(jnp.float32)
    c2f = c2b.astype(jnp.float32)
    diag1 = jnp.sum(c1f * c1f, axis=0, keepdims=True) / (n - 1)
    diag2 = jnp.sum(c2f * c2f, axis=0, keepdims=True) / (n - 1)
    cov_loss = ((jnp.sum(cov1 * cov1) - jnp.sum(diag1 * diag1))
                + (jnp.sum(cov2 * cov2) - jnp.sum(diag2 * diag2))) / d

    loss = sim_coeff * sim + std_coeff * std_loss + cov_coeff * cov_loss

    if cassle:
        # ---- cassle predictor on [z_stu ; z_tch]; the original applies it in two
        #      separate calls, so BN statistics are per view (n_views=2). ----
        zin = z[0:2 * n]
        ztgt = z[2 * n:4 * n]   # [z_stu_frozen ; z_tch_frozen]
        p = jnp.dot(zin.astype(jnp.bfloat16), qw1[...],
                    preferred_element_type=jnp.float32) + qb1[...]
        p = _bn_relu_per_view(p, qg1[...], qbe1[...], 2, n)
        p = jnp.dot(p.astype(jnp.bfloat16), qw2[...],
                    preferred_element_type=jnp.float32) + qb2[...]
        pd = p - ztgt
        # (mse(p_stu, zf_stu) + mse(p_tch, zf_tch)) / 2 == stacked mse over 2N rows
        distill = jnp.sum(pd * pd) / (2 * n * d)
        loss = loss + distill_lamb * distill

    out_ref[0] = loss


@partial(jax.jit, static_argnames=("n_per", "cassle", "sim_coeff", "std_coeff",
                                   "cov_coeff", "distill_lamb"))
def _vicreg_loss_from_features(x_all, proj_params, pred_params, *, n_per, cassle,
                               sim_coeff, std_coeff, cov_coeff, distill_lamb):
    kern = partial(fused_vicreg_kernel, n_per=n_per, cassle=cassle,
                   sim_coeff=sim_coeff, std_coeff=std_coeff,
                   cov_coeff=cov_coeff, distill_lamb=distill_lamb)
    args = [x_all,
            proj_params["w1"], proj_params["b1"], proj_params["g1"], proj_params["be1"],
            proj_params["w2"], proj_params["b2"], proj_params["g2"], proj_params["be2"],
            proj_params["w3"], proj_params["b3"]]
    if cassle:
        args += [pred_params["w1"], pred_params["b1"], pred_params["g1"],
                 pred_params["be1"], pred_params["w2"], pred_params["b2"]]
    loss = pl.pallas_call(
        kern,
        out_shape=jax.ShapeDtypeStruct((1,), jnp.float32),
        in_specs=[_VMEM] * len(args),
        out_specs=_SMEM,
        compiler_params=_compiler_params(),
    )(*args)
    return loss[0]


# -------- deterministic parameter init (torch.nn.Linear style), bf16 weights ---------
def linear_init(key, fan_in, fan_out):
    kw, kb = jax.random.split(key)
    bound = 1.0 / (fan_in ** 0.5)
    w = jax.random.uniform(kw, (fan_in, fan_out), jnp.float32, -bound, bound)
    b = jax.random.uniform(kb, (1, fan_out), jnp.float32, -bound, bound)
    return w.astype(jnp.bfloat16), b


def make_projector_params(key, dim_in, hidden, out_dim):
    k1, k2, k3 = jax.random.split(key, 3)
    w1, b1 = linear_init(k1, dim_in, hidden)
    w2, b2 = linear_init(k2, hidden, hidden)
    w3, b3 = linear_init(k3, hidden, out_dim)
    ones = jnp.ones((1, hidden), jnp.float32)
    zeros = jnp.zeros((1, hidden), jnp.float32)
    return dict(w1=w1, b1=b1, g1=ones, be1=zeros,
                w2=w2, b2=b2, g2=ones, be2=zeros,
                w3=w3, b3=b3)


def make_predictor_params(key, out_dim, hidden):
    k1, k2 = jax.random.split(key)
    w1, b1 = linear_init(k1, out_dim, hidden)
    w2, b2 = linear_init(k2, hidden, out_dim)
    return dict(w1=w1, b1=b1,
                g1=jnp.ones((1, hidden), jnp.float32),
                be1=jnp.zeros((1, hidden), jnp.float32),
                w2=w2, b2=b2)


# -------- VICRegLoss.forward ----------------------------------------------------------
def vicreg_loss_forward(backbone_stu, backbone_tch, frozen_backbone,
                        x_stu, x_tch, proj_params, pred_params=None,
                        sim_coeff=25.0, std_coeff=25.0, cov_coeff=1.0,
                        distill_lamb=1.0, cassle=True):
    n_per = x_stu.shape[0]
    assert n_per >= 2, "VICReg variance/covariance terms require batch size >= 2"
    feats = [backbone_stu(x_stu), backbone_tch(x_tch)]
    if cassle:
        assert frozen_backbone is not None, "frozen encoder has not been created yet"
        feats.append(frozen_backbone(x_stu))
        feats.append(frozen_backbone(x_tch))
    x_all = jnp.concatenate(feats, axis=0)   # stacked views -> single fused kernel launch
    # TODO(synk): the torch module prints "cassle loss ... loss_distill ..." here (host-side
    # .item() sync); omitted to keep the pipeline fully on-device under one jit.
    return _vicreg_loss_from_features(
        x_all, proj_params, pred_params,
        n_per=n_per, cassle=cassle,
        sim_coeff=float(sim_coeff), std_coeff=float(std_coeff),
        cov_coeff=float(cov_coeff), distill_lamb=float(distill_lamb))


if __name__ == "__main__":
    key = jax.random.PRNGKey(0)
    (k_x1, k_x2, k_bb, k_bf, k_proj, k_pred) = jax.random.split(key, 6)

    # small shapes: model='cnn' -> dim_in=128; shrunken hidden/output dims
    N = 8
    dim_in = 128
    proj_hidden_dim = 256
    output_dim = 128
    distill_proj_hidden_dim = 256

    # raw augmented inputs [bsz, feat] (backbone is an external arg to forward)
    x_stu = jax.random.normal(k_x1, (N, dim_in), jnp.float32)
    x_tch = jax.random.normal(k_x2, (N, dim_in), jnp.float32)

    # external backbones stubbed as deterministic plain-JAX linear maps (glue)
    Wb = jax.random.normal(k_bb, (dim_in, dim_in), jnp.float32) * (1.0 / dim_in ** 0.5)
    Wf = jax.random.normal(k_bf, (dim_in, dim_in), jnp.float32) * (1.0 / dim_in ** 0.5)
    backbone_stu = lambda x: x @ Wb
    backbone_tch = lambda x: x @ Wb
    frozen_backbone = lambda x: x @ Wf

    proj_params = make_projector_params(k_proj, dim_in, proj_hidden_dim, output_dim)
    pred_params = make_predictor_params(k_pred, output_dim, distill_proj_hidden_dim)

    loss = vicreg_loss_forward(backbone_stu, backbone_tch, frozen_backbone,
                               x_stu, x_tch, proj_params, pred_params,
                               sim_coeff=25.0, std_coeff=25.0, cov_coeff=1.0,
                               distill_lamb=1.0, cassle=True)
    jax.block_until_ready(loss)
    print("KERNEL_OK")
</pallas_src>

<mosaic_0001>
module attributes {stable_mosaic.version = 11 : i64} {
  func.func @fused_vicreg_kernel(%arg0: memref<32x128xf32, #tpu.memory_space<vmem>>, %arg1: memref<128x256xbf16, #tpu.memory_space<vmem>>, %arg2: memref<1x256xf32, #tpu.memory_space<vmem>>, %arg3: memref<1x256xf32, #tpu.memory_space<vmem>>, %arg4: memref<1x256xf32, #tpu.memory_space<vmem>>, %arg5: memref<256x256xbf16, #tpu.memory_space<vmem>>, %arg6: memref<1x256xf32, #tpu.memory_space<vmem>>, %arg7: memref<1x256xf32, #tpu.memory_space<vmem>>, %arg8: memref<1x256xf32, #tpu.memory_space<vmem>>, %arg9: memref<256x128xbf16, #tpu.memory_space<vmem>>, %arg10: memref<1x128xf32, #tpu.memory_space<vmem>>, %arg11: memref<128x256xbf16, #tpu.memory_space<vmem>>, %arg12: memref<1x256xf32, #tpu.memory_space<vmem>>, %arg13: memref<1x256xf32, #tpu.memory_space<vmem>>, %arg14: memref<1x256xf32, #tpu.memory_space<vmem>>, %arg15: memref<256x128xbf16, #tpu.memory_space<vmem>>, %arg16: memref<1x128xf32, #tpu.memory_space<vmem>>, %arg17: memref<1xf32, #tpu.memory_space<smem>>) attributes {dimension_semantics = [], scalar_prefetch = 0 : i64, scratch_operands = 0 : i64, tpu.core_type = #tpu.core_type<tc>} {
    %c0 = arith.constant 0 : index
    %c0_0 = arith.constant 0 : index
    %0 = vector.load %arg0[%c0, %c0_0] : memref<32x128xf32, #tpu.memory_space<vmem>>, vector<32x128xf32>
    %1 = arith.truncf %0 : vector<32x128xf32> to vector<32x128xbf16>
    %c0_1 = arith.constant 0 : index
    %c0_2 = arith.constant 0 : index
    %2 = vector.load %arg1[%c0_1, %c0_2] : memref<128x256xbf16, #tpu.memory_space<vmem>>, vector<128x256xbf16>
    %cst = arith.constant dense<0.000000e+00> : vector<32x256xf32>
    %3 = tpu.matmul %1, %2, %cst {dimension_numbers = #tpu.dot_dimension_numbers<[1], [0], [0], [1], [0, 0, 1, 1], [], []>} : vector<32x128xbf16>, vector<128x256xbf16>, vector<32x256xf32> -> vector<32x256xf32>
    %c0_3 = arith.constant 0 : index
    %c0_4 = arith.constant 0 : index
    %4 = vector.load %arg2[%c0_3, %c0_4] : memref<1x256xf32, #tpu.memory_space<vmem>>, vector<1x256xf32>
    %5 = vector.broadcast %4 : vector<1x256xf32> to vector<32x256xf32>
    %6 = arith.addf %3, %5 : vector<32x256xf32>
    %c0_5 = arith.constant 0 : index
    %c0_6 = arith.constant 0 : index
    %7 = vector.load %arg3[%c0_5, %c0_6] : memref<1x256xf32, #tpu.memory_space<vmem>>, vector<1x256xf32>
    %c0_7 = arith.constant 0 : index
    %c0_8 = arith.constant 0 : index
    %8 = vector.load %arg4[%c0_7, %c0_8] : memref<1x256xf32, #tpu.memory_space<vmem>>, vector<1x256xf32>
    %9 = vector.extract_strided_slice %6 {offsets = [0, 0], sizes = [8, 256], strides = [1, 1]} : vector<32x256xf32> to vector<8x256xf32>
    %cst_9 = arith.constant dense<0.000000e+00> : vector<256xf32>
    %10 = vector.multi_reduction <add>, %9, %cst_9 [0] : vector<8x256xf32> to vector<256xf32>
    %11 = vector.shape_cast %10 : vector<256xf32> to vector<1x256xf32>
    %cst_10 = arith.constant 8.000000e+00 : f32
    %12 = vector.broadcast %cst_10 : f32 to vector<1x256xf32>
    %13 = arith.divf %11, %12 : vector<1x256xf32>
    %14 = vector.broadcast %13 : vector<1x256xf32> to vector<8x256xf32>
    %15 = arith.subf %9, %14 : vector<8x256xf32>
    %16 = arith.mulf %15, %15 : vector<8x256xf32>
    %cst_11 = arith.constant dense<0.000000e+00> : vector<256xf32>
    %17 = vector.multi_reduction <add>, %16, %cst_11 [0] : vector<8x256xf32> to vector<256xf32>
    %18 = vector.shape_cast %17 : vector<256xf32> to vector<1x256xf32>
    %cst_12 = arith.constant 8.000000e+00 : f32
    %19 = vector.broadcast %cst_12 : f32 to vector<1x256xf32>
    %20 = arith.divf %18, %19 : vector<1x256xf32>
    %cst_13 = arith.constant 9.99999974E-6 : f32
    %21 = vector.broadcast %cst_13 : f32 to vector<1x256xf32>
    %22 = arith.addf %20, %21 : vector<1x256xf32>
    %23 = math.rsqrt %22 : vector<1x256xf32>
    %24 = vector.broadcast %23 : vector<1x256xf32> to vector<8x256xf32>
    %25 = arith.mulf %15, %24 : vector<8x256xf32>
    %26 = vector.broadcast %7 : vector<1x256xf32> to vector<8x256xf32>
    %27 = arith.mulf %25, %26 : vector<8x256xf32>
    %28 = vector.broadcast %8 : vector<1x256xf32> to vector<8x256xf32>
    %29 = arith.addf %27, %28 : vector<8x256xf32>
    %cst_14 = arith.constant 0.000000e+00 : f32
    %30 = vector.broadcast %cst_14 : f32 to vector<8x256xf32>
    %31 = arith.maximumf %29, %30 : vector<8x256xf32>
    %32 = vector.extract_strided_slice %6 {offsets = [8, 0], sizes = [8, 256], strides = [1, 1]} : vector<32x256xf32> to vector<8x256xf32>
    %cst_15 = arith.constant dense<0.000000e+00> : vector<256xf32>
    %33 = vector.multi_reduction <add>, %32, %cst_15 [0] : vector<8x256xf32> to vector<256xf32>
    %34 = vector.shape_cast %33 : vector<256xf32> to vector<1x256xf32>
    %cst_16 = arith.constant 8.000000e+00 : f32
    %35 = vector.broadcast %cst_16 : f32 to vector<1x256xf32>
    %36 = arith.divf %34, %35 : vector<1x256xf32>
    %37 = vector.broadcast %36 : vector<1x256xf32> to vector<8x256xf32>
    %38 = arith.subf %32, %37 : vector<8x256xf32>
    %39 = arith.mulf %38, %38 : vector<8x256xf32>
    %cst_17 = arith.constant dense<0.000000e+00> : vector<256xf32>
    %40 = vector.multi_reduction <add>, %39, %cst_17 [0] : vector<8x256xf32> to vector<256xf32>
    %41 = vector.shape_cast %40 : vector<256xf32> to vector<1x256xf32>
    %cst_18 = arith.constant 8.000000e+00 : f32
    %42 = vector.broadcast %cst_18 : f32 to vector<1x256xf32>
    %43 = arith.divf %41, %42 : vector<1x256xf32>
    %cst_19 = arith.constant 9.99999974E-6 : f32
    %44 = vector.broadcast %cst_19 : f32 to vector<1x256xf32>
    %45 = arith.addf %43, %44 : vector<1x256xf32>
    %46 = math.rsqrt %45 : vector<1x256xf32>
    %47 = vector.broadcast %46 : vector<1x256xf32> to vector<8x256xf32>
    %48 = arith.mulf %38, %47 : vector<8x256xf32>
    %49 = vector.broadcast %7 : vector<1x256xf32> to vector<8x256xf32>
    %50 = arith.mulf %48, %49 : vector<8x256xf32>
    %51 = vector.broadcast %8 : vector<1x256xf32> to vector<8x256xf32>
    %52 = arith.addf %50, %51 : vector<8x256xf32>
    %cst_20 = arith.constant 0.000000e+00 : f32
    %53 = vector.broadcast %cst_20 : f32 to vector<8x256xf32>
    %54 = arith.maximumf %52, %53 : vector<8x256xf32>
    %55 = vector.extract_strided_slice %6 {offsets = [16, 0], sizes = [8, 256], strides = [1, 1]} : vector<32x256xf32> to vector<8x256xf32>
    %cst_21 = arith.constant dense<0.000000e+00> : vector<256xf32>
    %56 = vector.multi_reduction <add>, %55, %cst_21 [0] : vector<8x256xf32> to vector<256xf32>
    %57 = vector.shape_cast %56 : vector<256xf32> to vector<1x256xf32>
    %cst_22 = arith.constant 8.000000e+00 : f32
    %58 = vector.broadcast %cst_22 : f32 to vector<1x256xf32>
    %59 = arith.divf %57, %58 : vector<1x256xf32>
    %60 = vector.broadcast %59 : vector<1x256xf32> to vector<8x256xf32>
    %61 = arith.subf %55, %60 : vector<8x256xf32>
    %62 = arith.mulf %61, %61 : vector<8x256xf32>
    %cst_23 = arith.constant dense<0.000000e+00> : vector<256xf32>
    %63 = vector.multi_reduction <add>, %62, %cst_23 [0] : vector<8x256xf32> to vector<256xf32>
    %64 = vector.shape_cast %63 : vector<256xf32> to vector<1x256xf32>
    %cst_24 = arith.constant 8.000000e+00 : f32
    %65 = vector.broadcast %cst_24 : f32 to vector<1x256xf32>
    %66 = arith.divf %64, %65 : vector<1x256xf32>
    %cst_25 = arith.constant 9.99999974E-6 : f32
    %67 = vector.broadcast %cst_25 : f32 to vector<1x256xf32>
    %68 = arith.addf %66, %67 : vector<1x256xf32>
    %69 = math.rsqrt %68 : vector<1x256xf32>
    %70 = vector.broadcast %69 : vector<1x256xf32> to vector<8x256xf32>
    %71 = arith.mulf %61, %70 : vector<8x256xf32>
    %72 = vector.broadcast %7 : vector<1x256xf32> to vector<8x256xf32>
    %73 = arith.mulf %71, %72 : vector<8x256xf32>
    %74 = vector.broadcast %8 : vector<1x256xf32> to vector<8x256xf32>
    %75 = arith.addf %73, %74 : vector<8x256xf32>
    %cst_26 = arith.constant 0.000000e+00 : f32
    %76 = vector.broadcast %cst_26 : f32 to vector<8x256xf32>
    %77 = arith.maximumf %75, %76 : vector<8x256xf32>
    %78 = vector.extract_strided_slice %6 {offsets = [24, 0], sizes = [8, 256], strides = [1, 1]} : vector<32x256xf32> to vector<8x256xf32>
    %cst_27 = arith.constant dense<0.000000e+00> : vector<256xf32>
    %79 = vector.multi_reduction <add>, %78, %cst_27 [0] : vector<8x256xf32> to vector<256xf32>
    %80 = vector.shape_cast %79 : vector<256xf32> to vector<1x256xf32>
    %cst_28 = arith.constant 8.000000e+00 : f32
    %81 = vector.broadcast %cst_28 : f32 to vector<1x256xf32>
    %82 = arith.divf %80, %81 : vector<1x256xf32>
    %83 = vector.broadcast %82 : vector<1x256xf32> to vector<8x256xf32>
    %84 = arith.subf %78, %83 : vector<8x256xf32>
    %85 = arith.mulf %84, %84 : vector<8x256xf32>
    %cst_29 = arith.constant dense<0.000000e+00> : vector<256xf32>
    %86 = vector.multi_reduction <add>, %85, %cst_29 [0] : vector<8x256xf32> to vector<256xf32>
    %87 = vector.shape_cast %86 : vector<256xf32> to vector<1x256xf32>
    %cst_30 = arith.constant 8.000000e+00 : f32
    %88 = vector.broadcast %cst_30 : f32 to vector<1x256xf32>
    %89 = arith.divf %87, %88 : vector<1x256xf32>
    %cst_31 = arith.constant 9.99999974E-6 : f32
    %90 = vector.broadcast %cst_31 : f32 to vector<1x256xf32>
    %91 = arith.addf %89, %90 : vector<1x256xf32>
    %92 = math.rsqrt %91 : vector<1x256xf32>
    %93 = vector.broadcast %92 : vector<1x256xf32> to vector<8x256xf32>
    %94 = arith.mulf %84, %93 : vector<8x256xf32>
    %95 = vector.broadcast %7 : vector<1x256xf32> to vector<8x256xf32>
    %96 = arith.mulf %94, %95 : vector<8x256xf32>
    %97 = vector.broadcast %8 : vector<1x256xf32> to vector<8x256xf32>
    %98 = arith.addf %96, %97 : vector<8x256xf32>
    %cst_32 = arith.constant 0.000000e+00 : f32
    %99 = vector.broadcast %cst_32 : f32 to vector<8x256xf32>
    %100 = arith.maximumf %98, %99 : vector<8x256xf32>
    %101 = tpu.concatenate %31, %54, %77, %100 in 0 : vector<8x256xf32>, vector<8x256xf32>, vector<8x256xf32>, vector<8x256xf32> -> vector<32x256xf32>
    %102 = arith.truncf %101 : vector<32x256xf32> to vector<32x256xbf16>
    %c0_33 = arith.constant 0 : index
    %c0_34 = arith.constant 0 : index
    %103 = vector.load %arg5[%c0_33, %c0_34] : memref<256x256xbf16, #tpu.memory_space<vmem>>, vector<256x256xbf16>
    %cst_35 = arith.constant dense<0.000000e+00> : vector<32x256xf32>
    %104 = tpu.matmul %102, %103, %cst_35 {dimension_numbers = #tpu.dot_dimension_numbers<[1], [0], [0], [1], [0, 0, 1, 1], [], []>} : vector<32x256xbf16>, vector<256x256xbf16>, vector<32x256xf32> -> vector<32x256xf32>
    %c0_36 = arith.constant 0 : index
    %c0_37 = arith.constant 0 : index
    %105 = vector.load %arg6[%c0_36, %c0_37] : memref<1x256xf32, #tpu.memory_space<vmem>>, vector<1x256xf32>
    %106 = vector.broadcast %105 : vector<1x256xf32> to vector<32x256xf32>
    %107 = arith.addf %104, %106 : vector<32x256xf32>
    %c0_38 = arith.constant 0 : index
    %c0_39 = arith.constant 0 : index
    %108 = vector.load %arg7[%c0_38, %c0_39] : memref<1x256xf32, #tpu.memory_space<vmem>>, vector<1x256xf32>
    %c0_40 = arith.constant 0 : index
    %c0_41 = arith.constant 0 : index
    %109 = vector.load %arg8[%c0_40, %c0_41] : memref<1x256xf32, #tpu.memory_space<vmem>>, vector<1x256xf32>
    %110 = vector.extract_strided_slice %107 {offsets = [0, 0], sizes = [8, 256], strides = [1, 1]} : vector<32x256xf32> to vector<8x256xf32>
    %cst_42 = arith.constant dense<0.000000e+00> : vector<256xf32>
    %111 = vector.multi_reduction <add>, %110, %cst_42 [0] : vector<8x256xf32> to vector<256xf32>
    %112 = vector.shape_cast %111 : vector<256xf32> to vector<1x256xf32>
    %cst_43 = arith.constant 8.000000e+00 : f32
    %113 = vector.broadcast %cst_43 : f32 to vector<1x256xf32>
    %114 = arith.divf %112, %113 : vector<1x256xf32>
    %115 = vector.broadcast %114 : vector<1x256xf32> to vector<8x256xf32>
    %116 = arith.subf %110, %115 : vector<8x256xf32>
    %117 = arith.mulf %116, %116 : vector<8x256xf32>
    %cst_44 = arith.constant dense<0.000000e+00> : vector<256xf32>
    %118 = vector.multi_reduction <add>, %117, %cst_44 [0] : vector<8x256xf32> to vector<256xf32>
    %119 = vector.shape_cast %118 : vector<256xf32> to vector<1x256xf32>
    %cst_45 = arith.constant 8.000000e+00 : f32
    %120 = vector.broadcast %cst_45 : f32 to vector<1x256xf32>
    %121 = arith.divf %119, %120 : vector<1x256xf32>
    %cst_46 = arith.constant 9.99999974E-6 : f32
    %122 = vector.broadcast %cst_46 : f32 to vector<1x256xf32>
    %123 = arith.addf %121, %122 : vector<1x256xf32>
    %124 = math.rsqrt %123 : vector<1x256xf32>
    %125 = vector.broadcast %124 : vector<1x256xf32> to vector<8x256xf32>
    %126 = arith.mulf %116, %125 : vector<8x256xf32>
    %127 = vector.broadcast %108 : vector<1x256xf32> to vector<8x256xf32>
    %128 = arith.mulf %126, %127 : vector<8x256xf32>
    %129 = vector.broadcast %109 : vector<1x256xf32> to vector<8x256xf32>
    %130 = arith.addf %128, %129 : vector<8x256xf32>
    %cst_47 = arith.constant 0.000000e+00 : f32
    %131 = vector.broadcast %cst_47 : f32 to vector<8x256xf32>
    %132 = arith.maximumf %130, %131 : vector<8x256xf32>
    %133 = vector.extract_strided_slice %107 {offsets = [8, 0], sizes = [8, 256], strides = [1, 1]} : vector<32x256xf32> to vector<8x256xf32>
    %cst_48 = arith.constant dense<0.000000e+00> : vector<256xf32>
    %134 = vector.multi_reduction <add>, %133, %cst_48 [0] : vector<8x256xf32> to vector<256xf32>
    %135 = vector.shape_cast %134 : vector<256xf32> to vector<1x256xf32>
    %cst_49 = arith.constant 8.000000e+00 : f32
    %136 = vector.broadcast %cst_49 : f32 to vector<1x256xf32>
    %137 = arith.divf %135, %136 : vector<1x256xf32>
    %138 = vector.broadcast %137 : vector<1x256xf32> to vector<8x256xf32>
    %139 = arith.subf %133, %138 : vector<8x256xf32>
    %140 = arith.mulf %139, %139 : vector<8x256xf32>
    %cst_50 = arith.constant dense<0.000000e+00> : vector<256xf32>
    %141 = vector.multi_reduction <add>, %140, %cst_50 [0] : vector<8x256xf32> to vector<256xf32>
    %142 = vector.shape_cast %141 : vector<256xf32> to vector<1x256xf32>
    %cst_51 = arith.constant 8.000000e+00 : f32
    %143 = vector.broadcast %cst_51 : f32 to vector<1x256xf32>
    %144 = arith.divf %142, %143 : vector<1x256xf32>
    %cst_52 = arith.constant 9.99999974E-6 : f32
    %145 = vector.broadcast %cst_52 : f32 to vector<1x256xf32>
    %146 = arith.addf %144, %145 : vector<1x256xf32>
    %147 = math.rsqrt %146 : vector<1x256xf32>
    %148 = vector.broadcast %147 : vector<1x256xf32> to vector<8x256xf32>
    %149 = arith.mulf %139, %148 : vector<8x256xf32>
    %150 = vector.broadcast %108 : vector<1x256xf32> to vector<8x256xf32>
    %151 = arith.mulf %149, %150 : vector<8x256xf32>
    %152 = vector.broadcast %109 : vector<1x256xf32> to vector<8x256xf32>
    %153 = arith.addf %151, %152 : vector<8x256xf32>
    %cst_53 = arith.constant 0.000000e+00 : f32
    %154 = vector.broadcast %cst_53 : f32 to vector<8x256xf32>
    %155 = arith.maximumf %153, %154 : vector<8x256xf32>
    %156 = vector.extract_strided_slice %107 {offsets = [16, 0], sizes = [8, 256], strides = [1, 1]} : vector<32x256xf32> to vector<8x256xf32>
    %cst_54 = arith.constant dense<0.000000e+00> : vector<256xf32>
    %157 = vector.multi_reduction <add>, %156, %cst_54 [0] : vector<8x256xf32> to vector<256xf32>
    %158 = vector.shape_cast %157 : vector<256xf32> to vector<1x256xf32>
    %cst_55 = arith.constant 8.000000e+00 : f32
    %159 = vector.broadcast %cst_55 : f32 to vector<1x256xf32>
    %160 = arith.divf %158, %159 : vector<1x256xf32>
    %161 = vector.broadcast %160 : vector<1x256xf32> to vector<8x256xf32>
    %162 = arith.subf %156, %161 : vector<8x256xf32>
    %163 = arith.mulf %162, %162 : vector<8x256xf32>
    %cst_56 = arith.constant dense<0.000000e+00> : vector<256xf32>
    %164 = vector.multi_reduction <add>, %163, %cst_56 [0] : vector<8x256xf32> to vector<256xf32>
    %165 = vector.shape_cast %164 : vector<256xf32> to vector<1x256xf32>
    %cst_57 = arith.constant 8.000000e+00 : f32
    %166 = vector.broadcast %cst_57 : f32 to vector<1x256xf32>
    %167 = arith.divf %165, %166 : vector<1x256xf32>
    %cst_58 = arith.constant 9.99999974E-6 : f32
    %168 = vector.broadcast %cst_58 : f32 to vector<1x256xf32>
    %169 = arith.addf %167, %168 : vector<1x256xf32>
    %170 = math.rsqrt %169 : vector<1x256xf32>
    %171 = vector.broadcast %170 : vector<1x256xf32> to vector<8x256xf32>
    %172 = arith.mulf %162, %171 : vector<8x256xf32>
    %173 = vector.broadcast %108 : vector<1x256xf32> to vector<8x256xf32>
    %174 = arith.mulf %172, %173 : vector<8x256xf32>
    %175 = vector.broadcast %109 : vector<1x256xf32> to vector<8x256xf32>
    %176 = arith.addf %174, %175 : vector<8x256xf32>
    %cst_59 = arith.constant 0.000000e+00 : f32
    %177 = vector.broadcast %cst_59 : f32 to vector<8x256xf32>
    %178 = arith.maximumf %176, %177 : vector<8x256xf32>
    %179 = vector.extract_strided_slice %107 {offsets = [24, 0], sizes = [8, 256], strides = [1, 1]} : vector<32x256xf32> to vector<8x256xf32>
    %cst_60 = arith.constant dense<0.000000e+00> : vector<256xf32>
    %180 = vector.multi_reduction <add>, %179, %cst_60 [0] : vector<8x256xf32> to vector<256xf32>
    %181 = vector.shape_cast %180 : vector<256xf32> to vector<1x256xf32>
    %cst_61 = arith.constant 8.000000e+00 : f32
    %182 = vector.broadcast %cst_61 : f32 to vector<1x256xf32>
    %183 = arith.divf %181, %182 : vector<1x256xf32>
    %184 = vector.broadcast %183 : vector<1x256xf32> to vector<8x256xf32>
    %185 = arith.subf %179, %184 : vector<8x256xf32>
    %186 = arith.mulf %185, %185 : vector<8x256xf32>
    %cst_62 = arith.constant dense<0.000000e+00> : vector<256xf32>
    %187 = vector.multi_reduction <add>, %186, %cst_62 [0] : vector<8x256xf32> to vector<256xf32>
    %188 = vector.shape_cast %187 : vector<256xf32> to vector<1x256xf32>
    %cst_63 = arith.constant 8.000000e+00 : f32
    %189 = vector.broadcast %cst_63 : f32 to vector<1x256xf32>
    %190 = arith.divf %188, %189 : vector<1x256xf32>
    %cst_64 = arith.constant 9.99999974E-6 : f32
    %191 = vector.broadcast %cst_64 : f32 to vector<1x256xf32>
    %192 = arith.addf %190, %191 : vector<1x256xf32>
    %193 = math.rsqrt %192 : vector<1x256xf32>
    %194 = vector.broadcast %193 : vector<1x256xf32> to vector<8x256xf32>
    %195 = arith.mulf %185, %194 : vector<8x256xf32>
    %196 = vector.broadcast %108 : vector<1x256xf32> to vector<8x256xf32>
    %197 = arith.mulf %195, %196 : vector<8x256xf32>
    %198 = vector.broadcast %109 : vector<1x256xf32> to vector<8x256xf32>
    %199 = arith.addf %197, %198 : vector<8x256xf32>
    %cst_65 = arith.constant 0.000000e+00 : f32
    %200 = vector.broadcast %cst_65 : f32 to vector<8x256xf32>
    %201 = arith.maximumf %199, %200 : vector<8x256xf32>
    %202 = tpu.concatenate %132, %155, %178, %201 in 0 : vector<8x256xf32>, vector<8x256xf32>, vector<8x256xf32>, vector<8x256xf32> -> vector<32x256xf32>
    %203 = arith.truncf %202 : vector<32x256xf32> to vector<32x256xbf16>
    %c0_66 = arith.constant 0 : index
    %c0_67 = arith.constant 0 : index
    %204 = vector.load %arg9[%c0_66, %c0_67] : memref<256x128xbf16, #tpu.memory_space<vmem>>, vector<256x128xbf16>
    %cst_68 = arith.constant dense<0.000000e+00> : vector<32x128xf32>
    %205 = tpu.matmul %203, %204, %cst_68 {dimension_numbers = #tpu.dot_dimension_numbers<[1], [0], [0], [1], [0, 0, 1, 1], [], []>} : vector<32x256xbf16>, vector<256x128xbf16>, vector<32x128xf32> -> vector<32x128xf32>
    %c0_69 = arith.constant 0 : index
    %c0_70 = arith.constant 0 : index
    %206 = vector.load %arg10[%c0_69, %c0_70] : memref<1x128xf32, #tpu.memory_space<vmem>>, vector<1x128xf32>
    %207 = vector.broadcast %206 : vector<1x128xf32> to vector<32x128xf32>
    %208 = arith.addf %205, %207 : vector<32x128xf32>
    %209 = vector.extract_strided_slice %208 {offsets = [0, 0], sizes = [8, 128], strides = [1, 1]} : vector<32x128xf32> to vector<8x128xf32>
    %210 = vector.extract_strided_slice %208 {offsets = [8, 0], sizes = [8, 128], strides = [1, 1]} : vector<32x128xf32> to vector<8x128xf32>
    %211 = arith.subf %209, %210 : vector<8x128xf32>
    %212 = arith.mulf %211, %211 : vector<8x128xf32>
    %213 = vector.shape_cast %212 : vector<8x128xf32> to vector<1x8x128xf32>
    %cst_71 = arith.constant dense<0.000000e+00> : vector<1xf32>
    %214 = vector.multi_reduction <add>, %213, %cst_71 [1, 2] : vector<1x8x128xf32> to vector<1xf32>
    %215 = vector.shape_cast %214 : vector<1xf32> to vector<1x1x1xf32>
    %216 = vector.extract %215[0, 0, 0] : f32 from vector<1x1x1xf32>
    %cst_72 = arith.constant 1.024000e+03 : f32
    %217 = arith.divf %216, %cst_72 : f32
    %cst_73 = arith.constant dense<0.000000e+00> : vector<128xf32>
    %218 = vector.multi_reduction <add>, %209, %cst_73 [0] : vector<8x128xf32> to vector<128xf32>
    %219 = vector.shape_cast %218 : vector<128xf32> to vector<1x128xf32>
    %cst_74 = arith.constant 8.000000e+00 : f32
    %220 = vector.broadcast %cst_74 : f32 to vector<1x128xf32>
    %221 = arith.divf %219, %220 : vector<1x128xf32>
    %222 = vector.broadcast %221 : vector<1x128xf32> to vector<8x128xf32>
    %223 = arith.subf %209, %222 : vector<8x128xf32>
    %cst_75 = arith.constant dense<0.000000e+00> : vector<128xf32>
    %224 = vector.multi_reduction <add>, %210, %cst_75 [0] : vector<8x128xf32> to vector<128xf32>
    %225 = vector.shape_cast %224 : vector<128xf32> to vector<1x128xf32>
    %cst_76 = arith.constant 8.000000e+00 : f32
    %226 = vector.broadcast %cst_76 : f32 to vector<1x128xf32>
    %227 = arith.divf %225, %226 : vector<1x128xf32>
    %228 = vector.broadcast %227 : vector<1x128xf32> to vector<8x128xf32>
    %229 = arith.subf %210, %228 : vector<8x128xf32>
    %230 = arith.mulf %223, %223 : vector<8x128xf32>
    %cst_77 = arith.constant dense<0.000000e+00> : vector<128xf32>
    %231 = vector.multi_reduction <add>, %230, %cst_77 [0] : vector<8x128xf32> to vector<128xf32>
    %232 = vector.shape_cast %231 : vector<128xf32> to vector<1x128xf32>
    %cst_78 = arith.constant 7.000000e+00 : f32
    %233 = vector.broadcast %cst_78 : f32 to vector<1x128xf32>
    %234 = arith.divf %232, %233 : vector<1x128xf32>
    %235 = arith.mulf %229, %229 : vector<8x128xf32>
    %cst_79 = arith.constant dense<0.000000e+00> : vector<128xf32>
    %236 = vector.multi_reduction <add>, %235, %cst_79 [0] : vector<8x128xf32> to vector<128xf32>
    %237 = vector.shape_cast %236 : vector<128xf32> to vector<1x128xf32>
    %cst_80 = arith.constant 7.000000e+00 : f32
    %238 = vector.broadcast %cst_80 : f32 to vector<1x128xf32>
    %239 = arith.divf %237, %238 : vector<1x128xf32>
    %cst_81 = arith.constant 9.99999974E-5 : f32
    %240 = vector.broadcast %cst_81 : f32 to vector<1x128xf32>
    %241 = arith.addf %234, %240 : vector<1x128xf32>
    %242 = math.sqrt %241 : vector<1x128xf32>
    %cst_82 = arith.constant 1.000000e+00 : f32
    %243 = vector.broadcast %cst_82 : f32 to vector<1x128xf32>
    %244 = arith.subf %243, %242 : vector<1x128xf32>
    %cst_83 = arith.constant 0.000000e+00 : f32
    %245 = vector.broadcast %cst_83 : f32 to vector<1x128xf32>
    %246 = arith.maximumf %244, %245 : vector<1x128xf32>
    %247 = vector.shape_cast %246 : vector<1x128xf32> to vector<1x1x128xf32>
    %cst_84 = arith.constant dense<0.000000e+00> : vector<1xf32>
    %248 = vector.multi_reduction <add>, %247, %cst_84 [1, 2] : vector<1x1x128xf32> to vector<1xf32>
    %249 = vector.shape_cast %248 : vector<1xf32> to vector<1x1x1xf32>
    %250 = vector.extract %249[0, 0, 0] : f32 from vector<1x1x1xf32>
    %cst_85 = arith.constant 1.280000e+02 : f32
    %251 = arith.divf %250, %cst_85 : f32
    %cst_86 = arith.constant 9.99999974E-5 : f32
    %252 = vector.broadcast %cst_86 : f32 to vector<1x128xf32>
    %253 = arith.addf %239, %252 : vector<1x128xf32>
    %254 = math.sqrt %253 : vector<1x128xf32>
    %cst_87 = arith.constant 1.000000e+00 : f32
    %255 = vector.broadcast %cst_87 : f32 to vector<1x128xf32>
    %256 = arith.subf %255, %254 : vector<1x128xf32>
    %cst_88 = arith.constant 0.000000e+00 : f32
    %257 = vector.broadcast %cst_88 : f32 to vector<1x128xf32>
    %258 = arith.maximumf %256, %257 : vector<1x128xf32>
    %259 = vector.shape_cast %258 : vector<1x128xf32> to vector<1x1x128xf32>
    %cst_89 = arith.constant dense<0.000000e+00> : vector<1xf32>
    %260 = vector.multi_reduction <add>, %259, %cst_89 [1, 2] : vector<1x1x128xf32> to vector<1xf32>
    %261 = vector.shape_cast %260 : vector<1xf32> to vector<1x1x1xf32>
    %262 = vector.extract %261[0, 0, 0] : f32 from vector<1x1x1xf32>
    %cst_90 = arith.constant 1.280000e+02 : f32
    %263 = arith.divf %262, %cst_90 : f32
    %264 = arith.addf %251, %263 : f32
    %265 = arith.truncf %223 : vector<8x128xf32> to vector<8x128xbf16>
    %266 = arith.truncf %229 : vector<8x128xf32> to vector<8x128xbf16>
    %cst_91 = arith.constant dense<0.000000e+00> : vector<128x128xf32>
    %267 = tpu.matmul %265, %265, %cst_91 {dimension_numbers = #tpu.dot_dimension_numbers<[0], [0], [1], [1], [0, 1, 1, 1], [], []>} : vector<8x128xbf16>, vector<8x128xbf16>, vector<128x128xf32> -> vector<128x128xf32>
    %cst_92 = arith.constant 7.000000e+00 : f32
    %268 = vector.broadcast %cst_92 : f32 to vector<128x128xf32>
    %269 = arith.divf %267, %268 : vector<128x128xf32>
    %cst_93 = arith.constant dense<0.000000e+00> : vector<128x128xf32>
    %270 = tpu.matmul %266, %266, %cst_93 {dimension_numbers = #tpu.dot_dimension_numbers<[0], [0], [1], [1], [0, 1, 1, 1], [], []>} : vector<8x128xbf16>, vector<8x128xbf16>, vector<128x128xf32> -> vector<128x128xf32>
    %cst_94 = arith.constant 7.000000e+00 : f32
    %271 = vector.broadcast %cst_94 : f32 to vector<128x128xf32>
    %272 = arith.divf %270, %271 : vector<128x128xf32>
    %273 = arith.extf %265 : vector<8x128xbf16> to vector<8x128xf32>
    %274 = arith.extf %266 : vector<8x128xbf16> to vector<8x128xf32>
    %275 = arith.mulf %273, %273 : vector<8x128xf32>
    %cst_95 = arith.constant dense<0.000000e+00> : vector<128xf32>
    %276 = vector.multi_reduction <add>, %275, %cst_95 [0] : vector<8x128xf32> to vector<128xf32>
    %277 = vector.shape_cast %276 : vector<128xf32> to vector<1x128xf32>
    %cst_96 = arith.constant 7.000000e+00 : f32
    %278 = vector.broadcast %cst_96 : f32 to vector<1x128xf32>
    %279 = arith.divf %277, %278 : vector<1x128xf32>
    %280 = arith.mulf %274, %274 : vector<8x128xf32>
    %cst_97 = arith.constant dense<0.000000e+00> : vector<128xf32>
    %281 = vector.multi_reduction <add>, %280, %cst_97 [0] : vector<8x128xf32> to vector<128xf32>
    %282 = vector.shape_cast %281 : vector<128xf32> to vector<1x128xf32>
    %cst_98 = arith.constant 7.000000e+00 : f32
    %283 = vector.broadcast %cst_98 : f32 to vector<1x128xf32>
    %284 = arith.divf %282, %283 : vector<1x128xf32>
    %285 = arith.mulf %269, %269 : vector<128x128xf32>
    %286 = vector.shape_cast %285 : vector<128x128xf32> to vector<1x128x128xf32>
    %cst_99 = arith.constant dense<0.000000e+00> : vector<1xf32>
    %287 = vector.multi_reduction <add>, %286, %cst_99 [1, 2] : vector<1x128x128xf32> to vector<1xf32>
    %288 = vector.shape_cast %287 : vector<1xf32> to vector<1x1x1xf32>
    %289 = vector.extract %288[0, 0, 0] : f32 from vector<1x1x1xf32>
    %290 = arith.mulf %279, %279 : vector<1x128xf32>
    %291 = vector.shape_cast %290 : vector<1x128xf32> to vector<1x1x128xf32>
    %cst_100 = arith.constant dense<0.000000e+00> : vector<1xf32>
    %292 = vector.multi_reduction <add>, %291, %cst_100 [1, 2] : vector<1x1x128xf32> to vector<1xf32>
    %293 = vector.shape_cast %292 : vector<1xf32> to vector<1x1x1xf32>
    %294 = vector.extract %293[0, 0, 0] : f32 from vector<1x1x1xf32>
    %295 = arith.subf %289, %294 : f32
    %296 = arith.mulf %272, %272 : vector<128x128xf32>
    %297 = vector.shape_cast %296 : vector<128x128xf32> to vector<1x128x128xf32>
    %cst_101 = arith.constant dense<0.000000e+00> : vector<1xf32>
    %298 = vector.multi_reduction <add>, %297, %cst_101 [1, 2] : vector<1x128x128xf32> to vector<1xf32>
    %299 = vector.shape_cast %298 : vector<1xf32> to vector<1x1x1xf32>
    %300 = vector.extract %299[0, 0, 0] : f32 from vector<1x1x1xf32>
    %301 = arith.mulf %284, %284 : vector<1x128xf32>
    %302 = vector.shape_cast %301 : vector<1x128xf32> to vector<1x1x128xf32>
    %cst_102 = arith.constant dense<0.000000e+00> : vector<1xf32>
    %303 = vector.multi_reduction <add>, %302, %cst_102 [1, 2] : vector<1x1x128xf32> to vector<1xf32>
    %304 = vector.shape_cast %303 : vector<1xf32> to vector<1x1x1xf32>
    %305 = vector.extract %304[0, 0, 0] : f32 from vector<1x1x1xf32>
    %306 = arith.subf %300, %305 : f32
    %307 = arith.addf %295, %306 : f32
    %cst_103 = arith.constant 1.280000e+02 : f32
    %308 = arith.divf %307, %cst_103 : f32
    %cst_104 = arith.constant 2.500000e+01 : f32
    %309 = arith.mulf %cst_104, %217 : f32
    %cst_105 = arith.constant 2.500000e+01 : f32
    %310 = arith.mulf %cst_105, %264 : f32
    %311 = arith.addf %309, %310 : f32
    %cst_106 = arith.constant 1.000000e+00 : f32
    %312 = arith.mulf %cst_106, %308 : f32
    %313 = arith.addf %311, %312 : f32
    %314 = vector.extract_strided_slice %208 {offsets = [0, 0], sizes = [16, 128], strides = [1, 1]} : vector<32x128xf32> to vector<16x128xf32>
    %315 = vector.extract_strided_slice %208 {offsets = [16, 0], sizes = [16, 128], strides = [1, 1]} : vector<32x128xf32> to vector<16x128xf32>
    %316 = arith.truncf %314 : vector<16x128xf32> to vector<16x128xbf16>
    %c0_107 = arith.constant 0 : index
    %c0_108 = arith.constant 0 : index
    %317 = vector.load %arg11[%c0_107, %c0_108] : memref<128x256xbf16, #tpu.memory_space<vmem>>, vector<128x256xbf16>
    %cst_109 = arith.constant dense<0.000000e+00> : vector<16x256xf32>
    %318 = tpu.matmul %316, %317, %cst_109 {dimension_numbers = #tpu.dot_dimension_numbers<[1], [0], [0], [1], [0, 0, 1, 1], [], []>} : vector<16x128xbf16>, vector<128x256xbf16>, vector<16x256xf32> -> vector<16x256xf32>
    %c0_110 = arith.constant 0 : index
    %c0_111 = arith.constant 0 : index
    %319 = vector.load %arg12[%c0_110, %c0_111] : memref<1x256xf32, #tpu.memory_space<vmem>>, vector<1x256xf32>
    %320 = vector.broadcast %319 : vector<1x256xf32> to vector<16x256xf32>
    %321 = arith.addf %318, %320 : vector<16x256xf32>
    %c0_112 = arith.constant 0 : index
    %c0_113 = arith.constant 0 : index
    %322 = vector.load %arg13[%c0_112, %c0_113] : memref<1x256xf32, #tpu.memory_space<vmem>>, vector<1x256xf32>
    %c0_114 = arith.constant 0 : index
    %c0_115 = arith.constant 0 : index
    %323 = vector.load %arg14[%c0_114, %c0_115] : memref<1x256xf32, #tpu.memory_space<vmem>>, vector<1x256xf32>
    %324 = vector.extract_strided_slice %321 {offsets = [0, 0], sizes = [8, 256], strides = [1, 1]} : vector<16x256xf32> to vector<8x256xf32>
    %cst_116 = arith.constant dense<0.000000e+00> : vector<256xf32>
    %325 = vector.multi_reduction <add>, %324, %cst_116 [0] : vector<8x256xf32> to vector<256xf32>
    %326 = vector.shape_cast %325 : vector<256xf32> to vector<1x256xf32>
    %cst_117 = arith.constant 8.000000e+00 : f32
    %327 = vector.broadcast %cst_117 : f32 to vector<1x256xf32>
    %328 = arith.divf %326, %327 : vector<1x256xf32>
    %329 = vector.broadcast %328 : vector<1x256xf32> to vector<8x256xf32>
    %330 = arith.subf %324, %329 : vector<8x256xf32>
    %331 = arith.mulf %330, %330 : vector<8x256xf32>
    %cst_118 = arith.constant dense<0.000000e+00> : vector<256xf32>
    %332 = vector.multi_reduction <add>, %331, %cst_118 [0] : vector<8x256xf32> to vector<256xf32>
    %333 = vector.shape_cast %332 : vector<256xf32> to vector<1x256xf32>
    %cst_119 = arith.constant 8.000000e+00 : f32
    %334 = vector.broadcast %cst_119 : f32 to vector<1x256xf32>
    %335 = arith.divf %333, %334 : vector<1x256xf32>
    %cst_120 = arith.constant 9.99999974E-6 : f32
    %336 = vector.broadcast %cst_120 : f32 to vector<1x256xf32>
    %337 = arith.addf %335, %336 : vector<1x256xf32>
    %338 = math.rsqrt %337 : vector<1x256xf32>
    %339 = vector.broadcast %338 : vector<1x256xf32> to vector<8x256xf32>
    %340 = arith.mulf %330, %339 : vector<8x256xf32>
    %341 = vector.broadcast %322 : vector<1x256xf32> to vector<8x256xf32>
    %342 = arith.mulf %340, %341 : vector<8x256xf32>
    %343 = vector.broadcast %323 : vector<1x256xf32> to vector<8x256xf32>
    %344 = arith.addf %342, %343 : vector<8x256xf32>
    %cst_121 = arith.constant 0.000000e+00 : f32
    %345 = vector.broadcast %cst_121 : f32 to vector<8x256xf32>
    %346 = arith.maximumf %344, %345 : vector<8x256xf32>
    %347 = vector.extract_strided_slice %321 {offsets = [8, 0], sizes = [8, 256], strides = [1, 1]} : vector<16x256xf32> to vector<8x256xf32>
    %cst_122 = arith.constant dense<0.000000e+00> : vector<256xf32>
    %348 = vector.multi_reduction <add>, %347, %cst_122 [0] : vector<8x256xf32> to vector<256xf32>
    %349 = vector.shape_cast %348 : vector<256xf32> to vector<1x256xf32>
    %cst_123 = arith.constant 8.000000e+00 : f32
    %350 = vector.broadcast %cst_123 : f32 to vector<1x256xf32>
    %351 = arith.divf %349, %350 : vector<1x256xf32>
    %352 = vector.broadcast %351 : vector<1x256xf32> to vector<8x256xf32>
    %353 = arith.subf %347, %352 : vector<8x256xf32>
    %354 = arith.mulf %353, %353 : vector<8x256xf32>
    %cst_124 = arith.constant dense<0.000000e+00> : vector<256xf32>
    %355 = vector.multi_reduction <add>, %354, %cst_124 [0] : vector<8x256xf32> to vector<256xf32>
    %356 = vector.shape_cast %355 : vector<256xf32> to vector<1x256xf32>
    %cst_125 = arith.constant 8.000000e+00 : f32
    %357 = vector.broadcast %cst_125 : f32 to vector<1x256xf32>
    %358 = arith.divf %356, %357 : vector<1x256xf32>
    %cst_126 = arith.constant 9.99999974E-6 : f32
    %359 = vector.broadcast %cst_126 : f32 to vector<1x256xf32>
    %360 = arith.addf %358, %359 : vector<1x256xf32>
    %361 = math.rsqrt %360 : vector<1x256xf32>
    %362 = vector.broadcast %361 : vector<1x256xf32> to vector<8x256xf32>
    %363 = arith.mulf %353, %362 : vector<8x256xf32>
    %364 = vector.broadcast %322 : vector<1x256xf32> to vector<8x256xf32>
    %365 = arith.mulf %363, %364 : vector<8x256xf32>
    %366 = vector.broadcast %323 : vector<1x256xf32> to vector<8x256xf32>
    %367 = arith.addf %365, %366 : vector<8x256xf32>
    %cst_127 = arith.constant 0.000000e+00 : f32
    %368 = vector.broadcast %cst_127 : f32 to vector<8x256xf32>
    %369 = arith.maximumf %367, %368 : vector<8x256xf32>
    %370 = tpu.concatenate %346, %369 in 0 : vector<8x256xf32>, vector<8x256xf32> -> vector<16x256xf32>
    %371 = arith.truncf %370 : vector<16x256xf32> to vector<16x256xbf16>
    %c0_128 = arith.constant 0 : index
    %c0_129 = arith.constant 0 : index
    %372 = vector.load %arg15[%c0_128, %c0_129] : memref<256x128xbf16, #tpu.memory_space<vmem>>, vector<256x128xbf16>
    %cst_130 = arith.constant dense<0.000000e+00> : vector<16x128xf32>
    %373 = tpu.matmul %371, %372, %cst_130 {dimension_numbers = #tpu.dot_dimension_numbers<[1], [0], [0], [1], [0, 0, 1, 1], [], []>} : vector<16x256xbf16>, vector<256x128xbf16>, vector<16x128xf32> -> vector<16x128xf32>
    %c0_131 = arith.constant 0 : index
    %c0_132 = arith.constant 0 : index
    %374 = vector.load %arg16[%c0_131, %c0_132] : memref<1x128xf32, #tpu.memory_space<vmem>>, vector<1x128xf32>
    %375 = vector.broadcast %374 : vector<1x128xf32> to vector<16x128xf32>
    %376 = arith.addf %373, %375 : vector<16x128xf32>
    %377 = arith.subf %376, %315 : vector<16x128xf32>
    %378 = arith.mulf %377, %377 : vector<16x128xf32>
    %379 = vector.shape_cast %378 : vector<16x128xf32> to vector<1x16x128xf32>
    %cst_133 = arith.constant dense<0.000000e+00> : vector<1xf32>
    %380 = vector.multi_reduction <add>, %379, %cst_133 [1, 2] : vector<1x16x128xf32> to vector<1xf32>
    %381 = vector.shape_cast %380 : vector<1xf32> to vector<1x1x1xf32>
    %382 = vector.extract %381[0, 0, 0] : f32 from vector<1x1x1xf32>
    %cst_134 = arith.constant 2.048000e+03 : f32
    %383 = arith.divf %382, %cst_134 : f32
    %cst_135 = arith.constant 1.000000e+00 : f32
    %384 = arith.mulf %cst_135, %383 : f32
    %385 = arith.addf %313, %384 : f32
    %c0_136 = arith.constant 0 : index
    %386 = memref.load %arg17[%c0_136] : memref<1xf32, #tpu.memory_space<smem>>
    memref.store %385, %arg17[%c0_136] : memref<1xf32, #tpu.memory_space<smem>>
    return
  }
}

</mosaic_0001>

<bundles_post_ra>
// kernel: _vicreg_loss_from_features.1
= control target key start
LH: loop header
LB: loop body
LE: loop exit
PB: predicated region body
PF: predicated region fallthrough
CT: control target
= control target key end

     0   :  { %s3848_s0 = inlined_call_operand.hbm [shape: f32[32,128], index: 0, kind: input, shape index: {}]   ;;  %s3849_s1 = inlined_call_operand.hbm [shape: bf16[128,256], index: 1, kind: input, shape index: {}]   ;;  %s3850_s2 = inlined_call_operand.hbm [shape: f32[1,256], index: 2, kind: input, shape index: {}]   ;;  %s3851_s3 = inlined_call_operand.vmem [shape: f32[1,256], index: 3, kind: input, shape index: {}]   ;;  %s3852_s4 = inlined_call_operand.hbm [shape: f32[1,256], index: 4, kind: input, shape index: {}]   ;;  %s3853_s5 = inlined_call_operand.hbm [shape: bf16[256,256], index: 5, kind: input, shape index: {}]   ;;  %s3854_s6 = inlined_call_operand.hbm [shape: f32[1,256], index: 6, kind: input, shape index: {}]   ;;  %s3855_s7 = inlined_call_operand.vmem [shape: f32[1,256], index: 7, kind: input, shape index: {}]   ;;  %s3856_s8 = inlined_call_operand.hbm [shape: f32[1,256], index: 8, kind: input, shape index: {}]   ;;  %s3857_s9 = inlined_call_operand.hbm [shape: bf16[256,128], index: 9, kind: input, shape index: {}]   ;;  %s3858_s10 = inlined_call_operand.hbm [shape: f32[1,128], index: 10, kind: input, shape index: {}]   ;;  %s3859_s11 = inlined_call_operand.hbm [shape: bf16[128,256], index: 11, kind: input, shape index: {}]   ;;  %s3860_s12 = inlined_call_operand.vmem [shape: f32[1,256], index: 12, kind: input, shape index: {}]   ;;  %s3861_s13 = inlined_call_operand.vmem [shape: f32[1,256], index: 13, kind: input, shape index: {}]   ;;  %s3862_s14 = inlined_call_operand.vmem [shape: f32[1,256], index: 14, kind: input, shape index: {}]   ;;  %s3863_s15 = inlined_call_operand.hbm [shape: bf16[256,128], index: 15, kind: input, shape index: {}]   ;;  %s3864_s16 = inlined_call_operand.vmem [shape: f32[1,128], index: 16, kind: input, shape index: {}]   ;;  %s3865_s17 = inlined_call_operand.hbm [shape: f32[1], index: 17, kind: output, shape index: {}]  }
   0x1   :  { %3866 = sst [smem:[#allocation28_spill]] %s3848_s0 }
   0x2   :  { %3867 = sst [smem:[#allocation29_spill]] %s3849_s1 }
   0x3   :  { %22 = vsyncpa [#allocation3], 0 }
   0x4   :  { %23 = vsyncpa [#allocation6], 0 }
   0x5   :  { %24 = vsyncpa [#allocation9], 0 }
   0x6   :  { %25 = vsyncpa [#allocation12], 0 }
   0x7   :  { %26 = vsyncpa [#allocation15], 0 }
   0x8   :  { %27 = vsyncpa [#allocation18], 0 }
   0x9   :  { %28 = vsyncpa [#allocation4], 0  ;;  %s3868_s26 = sld [smem:[#allocation29_spill]]  ;;  %s3208_s28 = smov [#allocation5]  }
   0xa   :  { %s48_s29 = sshll.u32 %s3208_s28, 4  ;;  %s73_s18 = sshll.u32 %s3852_s4, 4  ;;  %s49_s29 = int_to_ptr.vmem [resolvable:$true] %s48_s29  ;;  %s74_s18 = int_to_ptr.hbm [resolvable:$true] %s73_s18 }
   0xb   :  { %s3209_s19 = smov 128   ;;  %s3210_s1 = smov 8  }
   0xc   :  { %s3211_s20 = smov [#allocation8]   ;;  %s97_s24 = sshll.u32 %s3854_s6, 4  ;;  %s98_s24 = int_to_ptr.hbm [resolvable:$true] %s97_s24 }
   0xd   :  { %s75_s21 = sshll.u32 %s3211_s20, 4  ;;  %s120_s4 = sshll.u32 %s3857_s9, 4  ;;  %s76_s21 = int_to_ptr.vmem [resolvable:$true] %s75_s21  ;;  %s121_s4 = int_to_ptr.hbm [resolvable:$true] %s120_s4 }
   0xe   :  { %78 = dma.hbm_to_vmem [thread:$0]  %s74_s18, 32, %s76_s21, [#allocation9]  }
   0xf   :  { %s46_s27 = sshll.u32 %s3868_s26, 4  ;;  %s3212_s28 = smov [#allocation11]   ;;  %s47_s27 = int_to_ptr.hbm [resolvable:$true] %s46_s27 }
  0x10   :  { %54 = dma.hbm_to_vmem [thread:$0]  %s47_s27, 2048, %s49_s29, [#allocation6], %s3209_s19, %s3209_s19, %s3210_s1  }
  0x11   :  { %s99_s0 = sshll.u32 %s3212_s28, 4  ;;  %s3213_s27 = smov [#allocation14]   ;;  %s100_s0 = int_to_ptr.vmem [resolvable:$true] %s99_s0 }
  0x12   :  { %102 = dma.hbm_to_vmem [thread:$0]  %s98_s24, 32, %s100_s0, [#allocation12]  }
  0x13   :  { %s122_s29 = sshll.u32 %s3213_s27, 4  ;;  %s3214_s30 = smov 64   ;;  %s123_s29 = int_to_ptr.vmem [resolvable:$true] %s122_s29 }
  0x14   :  { %s3215_s20 = smov 4   ;;  %s144_s21 = sshll.u32 %s3859_s11, 4  ;;  %s145_s21 = int_to_ptr.hbm [resolvable:$true] %s144_s21 }
  0x15   :  { %128 = dma.hbm_to_vmem [thread:$0]  %s121_s4, 2048, %s123_s29, [#allocation15], %s3214_s30, %s3214_s30, %s3215_s20  }
  0x16   :  { %s3216_s9 = smov [#allocation17]   ;;  %s3869_s24 = sld [smem:[#allocation28_spill]] }
  0x17   :  { %s146_s22 = sshll.u32 %s3216_s9, 4  ;;  %s3217_s28 = smov [#allocation2]   ;;  %s147_s22 = int_to_ptr.vmem [resolvable:$true] %s146_s22 }
  0x18   :  { %152 = dma.hbm_to_vmem [thread:$0]  %s145_s21, 2048, %s147_s22, [#allocation18], %s3209_s19, %s3209_s19, %s3210_s1  }
  0x19   :  { %s35_s0 = sshll.u32 %s3217_s28, 4  ;;  %s60_s29 = sshll.u32 %s3850_s2, 4  ;;  %s36_s0 = int_to_ptr.vmem [resolvable:$true] %s35_s0  ;;  %s61_s29 = int_to_ptr.hbm [resolvable:$true] %s60_s29 }
  0x1a   :  { %s83_s18 = sshll.u32 %s3853_s5, 4  ;;  %s3218_s9 = smov [#allocation7]   ;;  %s84_s18 = int_to_ptr.hbm [resolvable:$true] %s83_s18 }
  0x1b   :  { %s62_s23 = sshll.u32 %s3218_s9, 4  ;;  %s3219_s21 = smov [#allocation10]   ;;  %s63_s23 = int_to_ptr.vmem [resolvable:$true] %s62_s23 }
  0x1c   :  { %s33_s26 = sshll.u32 %s3869_s24, 4  ;;  %s85_s22 = sshll.u32 %s3219_s21, 4  ;;  %s34_s26 = int_to_ptr.hbm [resolvable:$true] %s33_s26  ;;  %s86_s22 = int_to_ptr.vmem [resolvable:$true] %s85_s22 }
  0x1d   :  { %41 = dma.hbm_to_vmem [thread:$0]  %s34_s26, 512, %s36_s0, [#allocation3], %s3209_s19, %s3209_s19, %s3210_s1  }
  0x1e   :  { %65 = dma.hbm_to_vmem [thread:$0]  %s61_s29, 32, %s63_s23, [#allocation6]  }
  0x1f   :  { %s110_s2 = sshll.u32 %s3856_s8, 4  ;;  %s134_s5 = sshll.u32 %s3858_s10, 4  ;;  %s111_s2 = int_to_ptr.hbm [resolvable:$true] %s110_s2  ;;  %s135_s5 = int_to_ptr.hbm [resolvable:$true] %s134_s5 }
  0x20   :  { %91 = dma.hbm_to_vmem [thread:$0]  %s84_s18, 4096, %s86_s22, [#allocation9], %s3209_s19, %s3209_s19, %s3210_s1  }
  0x21   :  { %s3220_s0 = smov [#allocation13]   ;;  %s3221_s27 = smov [#allocation16]  }
  0x22   :  { %s112_s4 = sshll.u32 %s3220_s0, 4  ;;  %s136_s29 = sshll.u32 %s3221_s27, 4  ;;  %s113_s4 = int_to_ptr.vmem [resolvable:$true] %s112_s4  ;;  %s137_s29 = int_to_ptr.vmem [resolvable:$true] %s136_s29 }
  0x23   :  { %115 = dma.hbm_to_vmem [thread:$0]  %s111_s2, 32, %s113_s4, [#allocation12]  }
  0x24   :  { %s163_s8 = sshll.u32 %s3863_s15, 4  ;;  %s3222_s9 = smov [#allocation19]   ;;  %s164_s8 = int_to_ptr.hbm [resolvable:$true] %s163_s8 }
  0x25   :  { %139 = dma.hbm_to_vmem [thread:$0]  %s135_s5, 16, %s137_s29, [#allocation15]  }
  0x26   :  { %s165_s19 = sshll.u32 %s3222_s9, 4  ;;  %s166_s19 = int_to_ptr.vmem [resolvable:$true] %s165_s19 }
  0x27   :  { %171 = dma.hbm_to_vmem [thread:$0]  %s164_s8, 2048, %s166_s19, [#allocation18], %s3214_s30, %s3214_s30, %s3215_s20  }
  0x28   :  { %3194 = dma.done.wait [#allocation3], 512  }
  0x29   :  { %3195 = vsyncadd [#allocation3], 4294966784 }
  0x2a   :  { %3196 = dma.done.wait [#allocation6], 2080  }
  0x2b   :  { %3197 = vsyncadd [#allocation6], 4294965216 }
  0x2c   :  { %3198 = dma.done.wait [#allocation9], 4128  }
  0x2d   :  { %3199 = vsyncadd [#allocation9], 4294963168 }
  0x2e   :  { %3200 = dma.done.wait [#allocation12], 64  }
  0x2f   :  { %3201 = vsyncadd [#allocation12], 4294967232 }
  0x30   :  { %3202 = dma.done.wait [#allocation15], 2064  }
  0x31   :  { %3203 = vsyncadd [#allocation15], 4294965232 }
  0x32   :  { %3204 = dma.done.wait [#allocation18], 4096  }
  0x33   :  { %3205 = vsyncadd [#allocation18], 4294963200  ;;  %v2363_v0 = vld [vmem:[#allocation5 + $0x70] sm:$0xf]  ;;  %v2720_v1 = vld [vmem:[#allocation5 + $0x74] sm:$0xf0] }
  0x34   :  { %v2719_v2 = vld [vmem:[#allocation5 + $0x74] sm:$0xf]  ;;  %v2364_v3 = vor.u32 %v2720_v1, %v2363_v0  ;;  %v2365_v4 = vld [vmem:[#allocation5 + $0x78] sm:$0xf0]  ;;  %v2355_v5 = vld [vmem:[#allocation5 + $0x60] sm:$0xf] }
  0x35   :  { %v2718_v6 = vld [vmem:[#allocation5 + $0x64] sm:$0xf0]  ;;  %v2368_v7 = vor.u32 %v2719_v2, %v2365_v4  ;;  %v2717_v8 = vld [vmem:[#allocation5 + $0x64] sm:$0xf]  ;;  %v2357_v9 = vld [vmem:[#allocation5 + $0x68] sm:$0xf0] }
  0x36   :  { %327 = vmatpush.bf16.msra.mxu2 %v2364_v3  ;;  %v2356_v10 = vor.u32 %v2718_v6, %v2355_v5  ;;  %v2360_v11 = vor.u32 %v2717_v8, %v2357_v9  ;;  %v2347_v12 = vld [vmem:[#allocation5 + $0x50] sm:$0xf]  ;;  %v2716_v13 = vld [vmem:[#allocation5 + $0x54] sm:$0xf0]  ;;  %v2715_v14 = vld [vmem:[#allocation5 + $0x54] sm:$0xf] }
  0x37   :  { %346 = vmatpush.bf16.msra.mxu3 %v2368_v7  ;;  %v2349_v15 = vld [vmem:[#allocation5 + $0x58] sm:$0xf0]  ;;  %v2348_v16 = vor.u32 %v2716_v13, %v2347_v12  ;;  %v2339_v18 = vld [vmem:[#allocation5 + $0x40] sm:$0xf]  ;;  %v2714_v19 = vld [vmem:[#allocation5 + $0x44] sm:$0xf0] }
  0x38   :  { %v2352_v17 = vor.u32 %v2715_v14, %v2349_v15  ;;  %v2713_v20 = vld [vmem:[#allocation5 + $0x44] sm:$0xf]  ;;  %v2341_v21 = vld [vmem:[#allocation5 + $0x48] sm:$0xf0]  ;;  %v2340_v22 = vor.u32 %v2714_v19, %v2339_v18  ;;  %v2331_v23 = vld [vmem:[#allocation5 + $0x30] sm:$0xf] }
  0x39   :  { %v2344_v24 = vor.u32 %v2713_v20, %v2341_v21  ;;  %v2712_v25 = vld [vmem:[#allocation5 + $0x34] sm:$0xf0]  ;;  %v2711_v26 = vld [vmem:[#allocation5 + $0x34] sm:$0xf]  ;;  %v2333_v27 = vld [vmem:[#allocation5 + $0x38] sm:$0xf0] }
  0x3a   :  { %328 = vmatpush.bf16.msra.mxu2 %v2356_v10  ;;  %v2332_v28 = vor.u32 %v2712_v25, %v2331_v23  ;;  %v2336_v29 = vor.u32 %v2711_v26, %v2333_v27  ;;  %v2323_v30 = vld [vmem:[#allocation5 + $0x20] sm:$0xf]  ;;  %v2710_v31 = vld [vmem:[#allocation5 + $0x24] sm:$0xf0]  ;;  %v2709_v32 = vld [vmem:[#allocation5 + $0x24] sm:$0xf] }
  0x3b   :  { %347 = vmatpush.bf16.msra.mxu3 %v2360_v11  ;;  %v2325_v33 = vld [vmem:[#allocation5 + $0x28] sm:$0xf0]  ;;  %v2324_v34 = vor.u32 %v2710_v31, %v2323_v30  ;;  %v2315_v36 = vld [vmem:[#allocation5 + $0x10] sm:$0xf]  ;;  %v2708_v37 = vld [vmem:[#allocation5 + $0x14] sm:$0xf0] }
  0x3c   :  { %v2328_v35 = vor.u32 %v2709_v32, %v2325_v33  ;;  %v2707_v38 = vld [vmem:[#allocation5 + $0x14] sm:$0xf]  ;;  %v2317_v39 = vld [vmem:[#allocation5 + $0x18] sm:$0xf0]  ;;  %v2316_v40 = vor.u32 %v2708_v37, %v2315_v36  ;;  %v2307_v42 = vld [vmem:[#allocation5] sm:$0xf] }
  0x3d   :  { %v2320_v41 = vor.u32 %v2707_v38, %v2317_v39  ;;  %v2706_v43 = vld [vmem:[#allocation5 + $0x4] sm:$0xf0]  ;;  %v2705_v44 = vld [vmem:[#allocation5 + $0x4] sm:$0xf]  ;;  %v2309_v45 = vld [vmem:[#allocation5 + $0x8] sm:$0xf0] }
  0x3e   :  { %329 = vmatpush.bf16.msra.mxu2 %v2348_v16  ;;  %v2308_v46 = vor.u32 %v2706_v43, %v2307_v42  ;;  %v219_v47 = vld [vmem:[#allocation2] sm:$0xff]  ;;  %v220_v48 = vld [vmem:[#allocation2 + $0x8] sm:$0xff]  ;;  %v2312_v49 = vor.u32 %v2705_v44, %v2309_v45  ;;  %v221_v51 = vld [vmem:[#allocation2 + $0x10] sm:$0xff]  ;;  %v3223_v54 = vmov 8.0  }
  0x3f   :  { %348 = vmatpush.bf16.msra.mxu3 %v2352_v17  ;;  %v223_v50 = vpack.c.bf16 %v220_v48, %v219_v47  ;;  %v222_v52 = vld [vmem:[#allocation2 + $0x18] sm:$0xff]  ;;  %2864 = vrcp.f32 %v3223_v54  ;;  %v241_v56 = vld [vmem:[#allocation7] sm:$0x3]  ;;  %v2427_v10 = vld [vmem:[#allocation10 + $0x70] sm:$0xf] }
  0x40   :  { %v224_v53 = vpack.c.bf16 %v222_v52, %v221_v51  ;;  %v3370_v58 = vperm.slane %v241_v56, 0  ;;  %v3372_v59 = vperm.slane %v241_v56, 1  ;;  %v2736_v11 = vld [vmem:[#allocation10 + $0x74] sm:$0xf0]  ;;  %v2491_v16 = vld [vmem:[#allocation10 + $0xf0] sm:$0xf] }
  0x41   :  { %v2428_v15 = vor.u32 %v2736_v11, %v2427_v10  ;;  %v2752_v17 = vld [vmem:[#allocation10 + $0xf4] sm:$0xf0]  ;;  %v2735_v18 = vld [vmem:[#allocation10 + $0x74] sm:$0xf]  ;;  %v2419_v32 = vld [vmem:[#allocation10 + $0x60] sm:$0xf] }
  0x42   :  { %330 = vmatpush.bf16.msra.mxu2 %v2340_v22  ;;  %v2492_v21 = vor.u32 %v2752_v17, %v2491_v16  ;;  %v2429_v22 = vld [vmem:[#allocation10 + $0x78] sm:$0xf0]  ;;  %v2751_v23 = vld [vmem:[#allocation10 + $0xf4] sm:$0xf]  ;;  %v2734_v33 = vld [vmem:[#allocation10 + $0x64] sm:$0xf0] }
  0x43   :  { %349 = vmatpush.bf16.msra.mxu3 %v2344_v24  ;;  %v2493_v24 = vld [vmem:[#allocation10 + $0xf8] sm:$0xf0]  ;;  %v2432_v27 = vor.u32 %v2735_v18, %v2429_v22  ;;  %v2420_v36 = vor.u32 %v2734_v33, %v2419_v32  ;;  %v2483_v37 = vld [vmem:[#allocation10 + $0xe0] sm:$0xf]  ;;  %v2750_v38 = vld [vmem:[#allocation10 + $0xe4] sm:$0xf0] }
  0x44   :  { %v2733_v39 = vld [vmem:[#allocation10 + $0x64] sm:$0xf]  ;;  %v2484_v42 = vor.u32 %v2750_v38, %v2483_v37  ;;  %v2421_v43 = vld [vmem:[#allocation10 + $0x68] sm:$0xf0]  ;;  %v2411_v52 = vld [vmem:[#allocation10 + $0x50] sm:$0xf] }
  0x45   :  { %v2865_v55 = vpop.eup %2864  ;;  %872 = vmatpush.bf16.msra.mxu0 %v2432_v27  ;;  %v2749_v44 = vld [vmem:[#allocation10 + $0xe4] sm:$0xf]  ;;  %v2485_v45 = vld [vmem:[#allocation10 + $0xe8] sm:$0xf0]  ;;  %v2424_v48 = vor.u32 %v2733_v39, %v2421_v43  ;;  %v2403_v11 = vld [vmem:[#allocation10 + $0x40] sm:$0xf] }
  0x46   :  { %331 = vmatpush.bf16.msra.mxu2 %v2332_v28  ;;  %v380_v57 = vmul.f32 8.0, %v2865_v55  ;;  %vm384_vm0 = vweird.f32 %v2865_v55  ;;  %v2496_v28 = vor.u32 %v2751_v23, %v2493_v24  ;;  %v2467_v16 = vld [vmem:[#allocation10 + $0xc0] sm:$0xf]  ;;  %v2746_v17 = vld [vmem:[#allocation10 + $0xc4] sm:$0xf0] }
  0x47   :  { %350 = vmatpush.bf16.msra.mxu3 %v2336_v29  ;;  %v2729_v22 = vld [vmem:[#allocation10 + $0x44] sm:$0xf]  ;;  %v2405_v23 = vld [vmem:[#allocation10 + $0x48] sm:$0xf0]  ;;  %v2395_v33 = vld [vmem:[#allocation10 + $0x30] sm:$0xf] }
  0x48   :  { %v381_v61 = vsub.f32 1.0, %v380_v57  ;;  %891 = vmatpush.bf16.msra.mxu1 %v2496_v28  ;;  %v2475_v57 = vld [vmem:[#allocation10 + $0xd0] sm:$0xf]  ;;  %v2745_v27 = vld [vmem:[#allocation10 + $0xc4] sm:$0xf] }
  0x49   :  { %873 = vmatpush.bf16.msra.mxu0 %v2424_v48  ;;  %v2469_v28 = vld [vmem:[#allocation10 + $0xc8] sm:$0xf0] }
  0x4a   :  { %332 = vmatpush.bf16.msra.mxu2 %v2324_v34  ;;  %v382_v2 = vmul.f32 %v2865_v55, %v381_v61  ;;  %v2731_v61 = vld [vmem:[#allocation10 + $0x54] sm:$0xf]  ;;  %v2472_v32 = vor.u32 %v2745_v27, %v2469_v28 }
  0x4b   :  { %351 = vmatpush.bf16.msra.mxu3 %v2328_v35 }
  0x4c   :  { %v383_v7 = vadd.f32 %v2865_v55, %v382_v2 }
  0x4e   :  { %333 = vmatpush.bf16.msra.mxu2 %v2316_v40  ;;  %v3392_v29 = vsel %vm384_vm0, %v2865_v55, %v383_v7 }
  0x4f   :  { %352 = vmatpush.bf16.msra.mxu3 %v2320_v41 }
  0x52   :  { %334 = vmatpush.bf16.msra.mxu2 %v2308_v46 }
  0x53   :  { %353 = vmatpush.bf16.msra.mxu3 %v2312_v49  ;;  %v2488_v49 = vor.u32 %v2749_v44, %v2485_v45  ;;  %v2397_v45 = vld [vmem:[#allocation10 + $0x38] sm:$0xf0] }
  0x55   :  { %335 = vmatmul.bf16.vlgmr.msra.gmra.mxu2 %v223_v50  ;;  %892 = vmatpush.bf16.msra.mxu1 %v2488_v49 }
  0x56   :  { %354 = vmatmul.bf16.vlgmr.msra.gmra.mxu3 %v223_v50  ;;  %834 = vmatpush.bf16.msrb.mxu2 %v2428_v15 }
  0x57   :  { %853 = vmatpush.bf16.msrb.mxu3 %v2492_v21  ;;  %v2468_v21 = vor.u32 %v2746_v17, %v2467_v16  ;;  %v2724_v16 = vld [vmem:[#allocation10 + $0x14] sm:$0xf0]  ;;  %v2443_v17 = vld [vmem:[#allocation10 + $0x90] sm:$0xf] }
  0x5a   :  { %835 = vmatpush.bf16.msrb.mxu2 %v2420_v36 }
  0x5b   :  { %854 = vmatpush.bf16.msrb.mxu3 %v2484_v42 }
  0x65   :  { %340 = vmatmul.bf16.gmra.mxu2 %v224_v53 }
  0x66   :  { %359 = vmatmul.bf16.gmra.mxu3 %v224_v53  ;;  %v2732_v53 = vld [vmem:[#allocation10 + $0x54] sm:$0xf0] }
  0x67   :  { %v2412_v56 = vor.u32 %v2732_v53, %v2411_v52 }
  0x69   :  { %836 = vmatpush.bf16.msrb.mxu2 %v2412_v56  ;;  %v2451_v56 = vld [vmem:[#allocation10 + $0xa0] sm:$0xf] }
  0xd8   :  { %v336_v60 = vpop.f32.mrf.mxu2 }
  0xd9   :  { %v3375_v62 = vadd.f32 %v336_v60, %v3370_v58  ;;  %v355_v63 = vpop.f32.mrf.mxu3  ;;  %v2748_v60 = vld [vmem:[#allocation10 + $0xd4] sm:$0xf0] }
  0xda   :  { %v3378_v0 = vadd.f32 %v355_v63, %v3372_v59  ;;  %v2476_v2 = vor.u32 %v2748_v60, %v2475_v57 }
  0xdb   :  { %v367_v1 = vrot.slane %v3375_v62, 4 }
  0xdc   :  { %v373_v3 = vrot.slane %v3378_v0, 4  ;;  %855 = vmatpush.bf16.msrb.mxu3 %v2476_v2  ;;  %v2725_v2 = vld [vmem:[#allocation10 + $0x24] sm:$0xf] }
  0xdd   :  { %v368_v4 = vadd.f32 %v367_v1, %v3375_v62 }
  0xde   :  { %v374_v5 = vadd.f32 %v373_v3, %v3378_v0  ;;  %v2413_v3 = vld [vmem:[#allocation10 + $0x58] sm:$0xf0] }
  0xdf   :  { %v369_v6 = vrot.slane %v368_v4, 2  ;;  %v2416_v7 = vor.u32 %v2731_v61, %v2413_v3 }
  0xe0   :  { %v375_v8 = vrot.slane %v374_v5, 2  ;;  %v338_v9 = vpop.f32.mrf.mxu2  ;;  %856 = vmatpush.bf16.msrb.mxu3 %v2468_v21 }
  0xe1   :  { %v370_v12 = vadd.f32 %v369_v6, %v368_v4  ;;  %v3385_v13 = vadd.f32 %v338_v9, %v3370_v58  ;;  %v357_v14 = vpop.f32.mrf.mxu3  ;;  %v2747_v4 = vld [vmem:[#allocation10 + $0xd4] sm:$0xf]  ;;  %874 = vmatpush.bf16.msra.mxu0 %v2416_v7 }
  0xe2   :  { %v376_v19 = vadd.f32 %v375_v8, %v374_v5  ;;  %v3388_v20 = vadd.f32 %v357_v14, %v3372_v59  ;;  %v2477_v5 = vld [vmem:[#allocation10 + $0xd8] sm:$0xf0] }
  0xe3   :  { %v371_v25 = vrot.slane %v370_v12, 1  ;;  %v446_v26 = vrot.slane %v3385_v13, 4  ;;  %v2480_v8 = vor.u32 %v2747_v4, %v2477_v5 }
  0xe4   :  { %v377_v30 = vrot.slane %v376_v19, 1  ;;  %v452_v31 = vrot.slane %v3388_v20, 4 }
  0xe5   :  { %v372_v34 = vadd.f32 %v371_v25, %v370_v12  ;;  %v447_v35 = vadd.f32 %v446_v26, %v3385_v13  ;;  %893 = vmatpush.bf16.msra.mxu1 %v2480_v8  ;;  %v2408_v26 = vor.u32 %v2729_v22, %v2405_v23  ;;  %v2740_v23 = vld [vmem:[#allocation10 + $0x94] sm:$0xf0] }
  0xe6   :  { %v378_v40 = vadd.f32 %v377_v30, %v376_v19  ;;  %v453_v41 = vadd.f32 %v452_v31, %v3388_v20 }
  0xe7   :  { %v386_v46 = vmul.f32 %v3392_v29, %v372_v34  ;;  %v448_v47 = vrot.slane %v447_v35, 2  ;;  %v2728_v34 = vld [vmem:[#allocation10 + $0x34] sm:$0xf0]  ;;  %875 = vmatpush.bf16.msra.mxu0 %v2408_v26 }
  0xe8   :  { %v387_v50 = vmul.f32 %v3392_v29, %v378_v40  ;;  %v454_v51 = vrot.slane %v453_v41, 2  ;;  %v341_v38 = vpop.f32.mrf.mxu2  ;;  %v2396_v39 = vor.u32 %v2728_v34, %v2395_v33  ;;  %v2744_v40 = vld [vmem:[#allocation10 + $0xb4] sm:$0xf0]  ;;  %v2444_v33 = vor.u32 %v2740_v23, %v2443_v17 }
  0xe9   :  { %v3400_v54 = vsub.f32 %v3375_v62, %v386_v46  ;;  %v449_v55 = vadd.f32 %v448_v47, %v447_v35  ;;  %v2459_v35 = vld [vmem:[#allocation10 + $0xb0] sm:$0xf]  ;;  %894 = vmatpush.bf16.msra.mxu1 %v2472_v32  ;;  %v2743_v46 = vld [vmem:[#allocation10 + $0xb4] sm:$0xf] }
  0xea   :  { %v3403_v63 = vsub.f32 %v3378_v0, %v387_v50  ;;  %v455_v1 = vadd.f32 %v454_v51, %v453_v41  ;;  %v2730_v0 = vld [vmem:[#allocation10 + $0x44] sm:$0xf0]  ;;  %v2727_v41 = vld [vmem:[#allocation10 + $0x34] sm:$0xf]  ;;  %v2460_v44 = vor.u32 %v2744_v40, %v2459_v35  ;;  %v2461_v50 = vld [vmem:[#allocation10 + $0xb8] sm:$0xf0] }
  0xeb   :  { %v390_v6 = vmul.f32 %v3400_v54, %v3400_v54  ;;  %v450_v62 = vrot.slane %v449_v55, 1  ;;  %v2404_v15 = vor.u32 %v2730_v0, %v2403_v11  ;;  %v2400_v49 = vor.u32 %v2727_v41, %v2397_v45  ;;  %v2739_v41 = vld [vmem:[#allocation10 + $0x94] sm:$0xf]  ;;  %v2371_v45 = vld [vmem:[#allocation10] sm:$0xf] }
  0xec   :  { %v391_v9 = vmul.f32 %v3403_v63, %v3403_v63  ;;  %v456_v10 = vrot.slane %v455_v1, 1  ;;  %857 = vmatpush.bf16.msrb.mxu3 %v2460_v44  ;;  %v2464_v53 = vor.u32 %v2743_v46, %v2461_v50  ;;  %v2722_v46 = vld [vmem:[#allocation10 + $0x4] sm:$0xf0] }
  0xed   :  { %v392_v12 = vrot.slane %v390_v6, 4  ;;  %v451_v14 = vadd.f32 %v450_v62, %v449_v55  ;;  %837 = vmatpush.bf16.msrb.mxu2 %v2404_v15  ;;  %v2726_v55 = vld [vmem:[#allocation10 + $0x24] sm:$0xf0]  ;;  %876 = vmatpush.bf16.msra.mxu0 %v2400_v49  ;;  %v2741_v62 = vld [vmem:[#allocation10 + $0xa4] sm:$0xf] }
  0xee   :  { %v398_v18 = vrot.slane %v391_v9, 4  ;;  %v457_v19 = vadd.f32 %v456_v10, %v455_v1  ;;  %v2742_v1 = vld [vmem:[#allocation10 + $0xa4] sm:$0xf0]  ;;  %895 = vmatpush.bf16.msra.mxu1 %v2464_v53  ;;  %v2453_v10 = vld [vmem:[#allocation10 + $0xa8] sm:$0xf0] }
  0xef   :  { %v393_v24 = vadd.f32 %v392_v12, %v390_v6  ;;  %v458_v25 = vmul.f32 %v451_v14, %v3392_v29  ;;  %v2452_v5 = vor.u32 %v2742_v1, %v2451_v56  ;;  %v2389_v6 = vld [vmem:[#allocation10 + $0x28] sm:$0xf0]  ;;  %v3422_v12 = vadd.f32 %v341_v38, %v3370_v58  ;;  %v2379_v15 = vld [vmem:[#allocation10 + $0x10] sm:$0xf]  ;;  %v2435_v49 = vld [vmem:[#allocation10 + $0x80] sm:$0xf] }
  0xf0   :  { %v399_v30 = vadd.f32 %v398_v18, %v391_v9  ;;  %v459_v31 = vmul.f32 %v457_v19, %v3392_v29  ;;  %v2392_v9 = vor.u32 %v2725_v2, %v2389_v6  ;;  %v2456_v14 = vor.u32 %v2741_v62, %v2453_v10  ;;  %v343_v21 = vpop.f32.mrf.mxu2  ;;  %v2738_v50 = vld [vmem:[#allocation10 + $0x84] sm:$0xf0] }
  0xf1   :  { %v394_v36 = vrot.slane %v393_v24, 2  ;;  %v3412_v37 = vsub.f32 %v3385_v13, %v458_v25  ;;  %838 = vmatpush.bf16.msrb.mxu2 %v2396_v39  ;;  %v360_v13 = vpop.f32.mrf.mxu3  ;;  %858 = vmatpush.bf16.msrb.mxu3 %v2452_v5  ;;  %v2380_v22 = vor.u32 %v2724_v16, %v2379_v15  ;;  %v508_v27 = vrot.slane %v3422_v12, 4 }
  0xf2   :  { %v400_v42 = vrot.slane %v399_v30, 2  ;;  %v3415_v43 = vsub.f32 %v3388_v20, %v459_v31  ;;  %v2387_v20 = vld [vmem:[#allocation10 + $0x20] sm:$0xf]  ;;  %877 = vmatpush.bf16.msra.mxu0 %v2392_v9  ;;  %896 = vmatpush.bf16.msra.mxu1 %v2456_v14  ;;  %v3428_v28 = vadd.f32 %v343_v21, %v3370_v58  ;;  %v3436_v39 = vadd.f32 %v360_v13, %v3372_v59  ;;  %v366_v14 = vld [vmem:[#allocation8] sm:$0x3] }
  0xf3   :  { %v395_v47 = vadd.f32 %v394_v36, %v393_v24  ;;  %v462_v48 = vmul.f32 %v3412_v37, %v3412_v37  ;;  %v2388_v61 = vor.u32 %v2726_v55, %v2387_v20  ;;  %v2723_v24 = vld [vmem:[#allocation10 + $0x14] sm:$0xf]  ;;  %v509_v38 = vadd.f32 %v508_v27, %v3422_v12  ;;  %v2721_v20 = vld [vmem:[#allocation10 + $0x4] sm:$0xf]  ;;  %v2373_v55 = vld [vmem:[#allocation10 + $0x8] sm:$0xf0] }
  0xf4   :  { %v401_v51 = vadd.f32 %v400_v42, %v399_v30  ;;  %v463_v52 = vmul.f32 %v3415_v43, %v3415_v43  ;;  %v2381_v30 = vld [vmem:[#allocation10 + $0x18] sm:$0xf0]  ;;  %v570_v44 = vrot.slane %v3428_v28, 4  ;;  %v2376_v62 = vor.u32 %v2721_v20, %v2373_v55  ;;  %v2737_v21 = vld [vmem:[#allocation10 + $0x84] sm:$0xf] }
  0xf5   :  { %v396_v57 = vrot.slane %v395_v47, 1  ;;  %v464_v60 = vrot.slane %v462_v48, 4  ;;  %839 = vmatpush.bf16.msrb.mxu2 %v2388_v61  ;;  %v2384_v34 = vor.u32 %v2723_v24, %v2381_v30  ;;  %v2445_v42 = vld [vmem:[#allocation10 + $0x98] sm:$0xf0]  ;;  %859 = vmatpush.bf16.msrb.mxu3 %v2444_v33  ;;  %v2372_v61 = vor.u32 %v2722_v46, %v2371_v45 }
  0xf6   :  { %v402_v3 = vrot.slane %v401_v51, 1  ;;  %v470_v4 = vrot.slane %v463_v52, 4  ;;  %v3474_v27 = vperm.slane %v366_v14, 0 }
  0xf7   :  { %v397_v7 = vadd.f32 %v396_v57, %v395_v47  ;;  %v465_v8 = vadd.f32 %v464_v60, %v462_v48  ;;  %878 = vmatpush.bf16.msra.mxu0 %v2384_v34  ;;  %v510_v48 = vrot.slane %v509_v38, 2  ;;  %v2448_v60 = vor.u32 %v2739_v41, %v2445_v42 }
  0xf8   :  { %v403_v11 = vadd.f32 %v402_v3, %v401_v51  ;;  %v471_v0 = vadd.f32 %v470_v4, %v463_v52  ;;  %v514_v51 = vrot.slane %v3436_v39, 4  ;;  %v571_v52 = vadd.f32 %v570_v44, %v3428_v28 }
  0xf9   :  { %v404_v18 = vmul.f32 %v397_v7, %v3392_v29  ;;  %v466_v19 = vrot.slane %v465_v8, 2  ;;  %840 = vmatpush.bf16.msrb.mxu2 %v2380_v22  ;;  %v362_v40 = vpop.f32.mrf.mxu3  ;;  %v511_v57 = vadd.f32 %v510_v48, %v509_v38  ;;  %897 = vmatpush.bf16.msra.mxu1 %v2448_v60  ;;  %v365_v7 = vld [vmem:[%s3851_s3] sm:$0x3]  ;;  %v2437_v22 = vld [vmem:[#allocation10 + $0x88] sm:$0xf0]  ;;  %v3480_v41 = vperm.slane %v366_v14, 1 }
  0xfa   :  { %v405_v25 = vmul.f32 %v403_v11, %v3392_v29  ;;  %v472_v26 = vrot.slane %v471_v0, 2  ;;  %v3444_v53 = vadd.f32 %v362_v40, %v3372_v59  ;;  %v515_v2 = vadd.f32 %v514_v51, %v3436_v39 }
  0xfb   :  { %v3430_v31 = vadd.f32 1e-05, %v404_v18  ;;  %v467_v32 = vadd.f32 %v466_v19, %v465_v8  ;;  %v572_v3 = vrot.slane %v571_v52, 2  ;;  %v512_v6 = vrot.slane %v511_v57, 1  ;;  %879 = vmatpush.bf16.msra.mxu0 %v2376_v62 }
  0xfc   :  { %v3432_v35 = vadd.f32 1e-05, %v405_v25  ;;  %v473_v36 = vadd.f32 %v472_v26, %v471_v0  ;;  %v576_v4 = vrot.slane %v3444_v53, 4  ;;  %v2436_v59 = vor.u32 %v2738_v50, %v2435_v49 }
  0xfd   :  { %2866 = vrsqrt.f32 %v3430_v31  ;;  %v468_v58 = vrot.slane %v467_v32, 1  ;;  %841 = vmatpush.bf16.msrb.mxu2 %v2372_v61  ;;  %v516_v10 = vrot.slane %v515_v2, 2  ;;  %v573_v11 = vadd.f32 %v572_v3, %v571_v52 }
  0xfe   :  { %2868 = vrsqrt.f32 %v3432_v35  ;;  %v474_v47 = vrot.slane %v473_v36, 1  ;;  %v577_v0 = vadd.f32 %v576_v4, %v3444_v53  ;;  %v513_v18 = vadd.f32 %v512_v6, %v511_v57  ;;  %860 = vmatpush.bf16.msrb.mxu3 %v2436_v59 }
  0xff   :  { %v469_v13 = vadd.f32 %v468_v58, %v467_v32  ;;  %v3467_v23 = vperm.slane %v365_v7, 0  ;;  %v3469_v24 = vperm.slane %v365_v7, 1  ;;  %v517_v32 = vadd.f32 %v516_v10, %v515_v2 }
 0x100   :  { %v475_v56 = vadd.f32 %v474_v47, %v473_v36  ;;  %v520_v26 = vmul.f32 %v513_v18, %v3392_v29  ;;  %v574_v33 = vrot.slane %v573_v11, 1  ;;  %v578_v34 = vrot.slane %v577_v0, 2 }
 0x101   :  { %v476_v1 = vmul.f32 %v469_v13, %v3392_v29  ;;  %v2440_v40 = vor.u32 %v2737_v21, %v2437_v22  ;;  %v518_v58 = vrot.slane %v517_v32, 1  ;;  %vm414_vm1 = vweird.f32 %v3430_v31 }
 0x102   :  { %v477_v5 = vmul.f32 %v475_v56, %v3392_v29  ;;  %v3478_v38 = vsub.f32 %v3422_v12, %v520_v26  ;;  %v575_v44 = vadd.f32 %v574_v33, %v573_v11  ;;  %v579_v45 = vadd.f32 %v578_v34, %v577_v0 }
 0x103   :  { %v3453_v8 = vpop.eup %2866  ;;  %v3455_v9 = vadd.f32 1e-05, %v476_v1  ;;  %898 = vmatpush.bf16.msra.mxu1 %v2440_v40  ;;  %v519_v12 = vadd.f32 %v518_v58, %v517_v32  ;;  %vm424_vm4 = vweird.f32 %v3432_v35 }
 0x104   :  { %v3458_v15 = vpop.eup %2868  ;;  %v409_v16 = vmul.f32 %v3453_v8, %v3430_v31  ;;  %v3462_v17 = vadd.f32 1e-05, %v477_v5  ;;  %vm415_vm2 = vweird.f32 %v3453_v8  ;;  %v524_v47 = vmul.f32 %v3478_v38, %v3478_v38 }
 0x105   :  { %v419_v19 = vmul.f32 %v3458_v15, %v3432_v35  ;;  %2870 = vrsqrt.f32 %v3455_v9  ;;  %vm425_vm3 = vweird.f32 %v3458_v15  ;;  %v582_v50 = vmul.f32 %v575_v44, %v3392_v29  ;;  %vm3491_vm5 = vmor %vm414_vm1, %vm415_vm2 }
 0x106   :  { %v410_v25 = vmul.f32 %v3453_v8, %v409_v16  ;;  %2872 = vrsqrt.f32 %v3462_v17  ;;  %v526_v52 = vrot.slane %v524_v47, 4  ;;  %v521_v57 = vmul.f32 %v519_v12, %v3392_v29  ;;  %vm3501_vm6 = vmor %vm424_vm4, %vm425_vm3 }
 0x107   :  { %v420_v30 = vmul.f32 %v3458_v15, %v419_v19  ;;  %v580_v60 = vrot.slane %v579_v45, 1  ;;  %v3506_v3 = vsub.f32 %v3428_v28, %v582_v50  ;;  %vm486_vm7 = vweird.f32 %v3455_v9 }
 0x108   :  { %v411_v36 = vmul.f32 0.5, %v410_v25  ;;  %v527_v2 = vadd.f32 %v526_v52, %v524_v47  ;;  %v3513_v6 = vsub.f32 %v3436_v39, %v521_v57  ;;  %vm496_vm10 = vweird.f32 %v3462_v17 }
 0x109   :  { %v421_v42 = vmul.f32 0.5, %v420_v30  ;;  %v586_v7 = vmul.f32 %v3506_v3, %v3506_v3  ;;  %v581_v11 = vadd.f32 %v580_v60, %v579_v45 }
 0x10a   :  { %v412_v46 = vsub.f32 1.5, %v411_v36  ;;  %v528_v62 = vrot.slane %v527_v2, 2  ;;  %v525_v10 = vmul.f32 %v3513_v6, %v3513_v6 }
 0x10b   :  { %v2871_v48 = vpop.eup %2870  ;;  %v422_v49 = vsub.f32 1.5, %v421_v42  ;;  %v588_v16 = vrot.slane %v586_v7, 4  ;;  %v583_v19 = vmul.f32 %v581_v11, %v3392_v29 }
 0x10c   :  { %v2873_v13 = vpop.eup %2872  ;;  %v413_v51 = vmul.f32 %v3453_v8, %v412_v46  ;;  %v481_v31 = vmul.f32 %v2871_v48, %v3455_v9  ;;  %vm487_vm8 = vweird.f32 %v2871_v48  ;;  %v532_v18 = vrot.slane %v525_v10, 4 }
 0x10d   :  { %v423_v55 = vmul.f32 %v3458_v15, %v422_v49  ;;  %v491_v56 = vmul.f32 %v2873_v13, %v3462_v17  ;;  %vm497_vm9 = vweird.f32 %v2873_v13  ;;  %vm488_vm11 = vmor %vm486_vm7, %vm487_vm8 }
 0x10e   :  { %v417_v61 = vsel %vm3491_vm5, %v3453_v8, %v413_v51  ;;  %v482_v1 = vmul.f32 %v2871_v48, %v481_v31  ;;  %v533_v26 = vadd.f32 %v532_v18, %v525_v10  ;;  %vm498_vm12 = vmor %vm496_vm10, %vm497_vm9 }
 0x10f   :  { %v427_v4 = vsel %vm3501_vm6, %v3458_v15, %v423_v55  ;;  %v492_v5 = vmul.f32 %v2873_v13, %v491_v56  ;;  %v428_v8 = vmul.f32 %v417_v61, %v3400_v54  ;;  %v529_v15 = vadd.f32 %v528_v62, %v527_v2 }
 0x110   :  { %v483_v59 = vmul.f32 0.5, %v482_v1  ;;  %v429_v0 = vmul.f32 %v427_v4, %v3403_v63  ;;  %v589_v54 = vadd.f32 %v588_v16, %v586_v7  ;;  %v3527_v63 = vsub.f32 %v3444_v53, %v583_v19 }
 0x111   :  { %v493_v28 = vmul.f32 0.5, %v492_v5  ;;  %v530_v22 = vrot.slane %v529_v15, 1  ;;  %v435_v30 = vmul.f32 %v3467_v23, %v428_v8  ;;  %v534_v42 = vrot.slane %v533_v26, 2 }
 0x112   :  { %v484_v14 = vsub.f32 1.5, %v483_v59  ;;  %v590_v34 = vrot.slane %v589_v54, 2  ;;  %v436_v36 = vmul.f32 %v3469_v24, %v429_v0  ;;  %v587_v9 = vmul.f32 %v3527_v63, %v3527_v63 }
 0x113   :  { %v494_v39 = vsub.f32 1.5, %v493_v28  ;;  %v531_v33 = vadd.f32 %v530_v22, %v529_v15  ;;  %v535_v45 = vadd.f32 %v534_v42, %v533_v26  ;;  %v442_v47 = vadd.f32 %v3474_v27, %v435_v30 }
 0x114   :  { %v485_v21 = vmul.f32 %v2871_v48, %v484_v14  ;;  %v591_v44 = vadd.f32 %v590_v34, %v589_v54  ;;  %v594_v46 = vrot.slane %v587_v9, 4 }
 0x115   :  { %v495_v25 = vmul.f32 %v2873_v13, %v494_v39  ;;  %v538_v53 = vmul.f32 %v531_v33, %v3392_v29  ;;  %v444_v56 = vmax.f32 %v442_v47, 0.0 }
 0x116   :  { %v489_v32 = vsel %vm488_vm11, %v2871_v48, %v485_v21  ;;  %v592_v12 = vrot.slane %v591_v44, 1  ;;  %v595_v51 = vadd.f32 %v594_v46, %v587_v9 }
 0x117   :  { %v500_v17 = vmul.f32 %v489_v32, %v3412_v37  ;;  %v499_v40 = vsel %vm498_vm12, %v2873_v13, %v495_v25  ;;  %v540_v49 = vadd.f32 1e-05, %v538_v53  ;;  %v443_v37 = vadd.f32 %v3480_v41, %v436_v36 }
 0x118   :  { %v501_v58 = vmul.f32 %v499_v40, %v3415_v43  ;;  %v536_v13 = vrot.slane %v535_v45, 1  ;;  %v593_v43 = vadd.f32 %v592_v12, %v591_v44  ;;  %v596_v55 = vrot.slane %v595_v51, 2 }
 0x119   :  { %v502_v48 = vmul.f32 %v500_v17, %v3467_v23  ;;  %2874 = vrsqrt.f32 %v540_v49  ;;  %v445_v61 = vmax.f32 %v443_v37, 0.0  ;;  %vm548_vm13 = vweird.f32 %v540_v49 }
 0x11a   :  { %v503_v50 = vmul.f32 %v501_v58, %v3469_v24  ;;  %v537_v20 = vadd.f32 %v536_v13, %v535_v45  ;;  %v600_v60 = vmul.f32 %v593_v43, %v3392_v29  ;;  %v597_v2 = vadd.f32 %v596_v55, %v595_v51 }
 0x11b   :  { %v504_v31 = vadd.f32 %v502_v48, %v3474_v27 }
 0x11c   :  { %v505_v52 = vadd.f32 %v503_v50, %v3480_v41  ;;  %v539_v1 = vmul.f32 %v537_v20, %v3392_v29  ;;  %v602_v5 = vadd.f32 1e-05, %v600_v60  ;;  %v598_v7 = vrot.slane %v597_v2, 1 }
 0x11d   :  { %v506_v57 = vmax.f32 %v504_v31, 0.0 }
 0x11e   :  { %v507_v35 = vmax.f32 %v505_v52, 0.0  ;;  %v541_v62 = vadd.f32 1e-05, %v539_v1  ;;  %2876 = vrsqrt.f32 %v602_v5  ;;  %v599_v10 = vadd.f32 %v598_v7, %v597_v2 }
 0x11f   :  { %v632_v4 = vpack.c.bf16 %v506_v57, %v444_v56  ;;  %v2875_v8 = vpop.eup %2874  ;;  %vm610_vm0 = vweird.f32 %v602_v5 }
 0x120   :  { %v633_v59 = vpack.c.bf16 %v507_v35, %v445_v61  ;;  %v543_v28 = vmul.f32 %v2875_v8, %v540_v49  ;;  %2878 = vrsqrt.f32 %v541_v62  ;;  %v601_v0 = vmul.f32 %v599_v10, %v3392_v29 }
 0x121   :  { %842 = vmatmul.bf16.vlgmr.msrb.gmra.mxu2 %v632_v4  ;;  %880 = vmatmul.bf16.vlgmr.msra.gmra.mxu0 %v632_v4  ;;  %vm549_vm14 = vweird.f32 %v2875_v8  ;;  %vm558_vm2 = vweird.f32 %v541_v62 }
 0x122   :  { %861 = vmatmul.bf16.vlgmr.msrb.gmra.mxu3 %v633_v59  ;;  %899 = vmatmul.bf16.vlgmr.msra.gmra.mxu1 %v633_v59  ;;  %v544_v11 = vmul.f32 %v2875_v8, %v543_v28  ;;  %v603_v16 = vadd.f32 1e-05, %v601_v0  ;;  %vm550_vm15 = vmor %vm548_vm13, %vm549_vm14 }
 0x124   :  { %v545_v14 = vmul.f32 0.5, %v544_v11  ;;  %v2877_v15 = vpop.eup %2876  ;;  %2880 = vrsqrt.f32 %v603_v16  ;;  %vm620_vm6 = vweird.f32 %v603_v16 }
 0x125   :  { %v605_v19 = vmul.f32 %v2877_v15, %v602_v5  ;;  %vm611_vm1 = vweird.f32 %v2877_v15 }
 0x126   :  { %v2879_v39 = vpop.eup %2878  ;;  %v546_v18 = vsub.f32 1.5, %v545_v14  ;;  %vm612_vm4 = vmor %vm610_vm0, %vm611_vm1 }
 0x127   :  { %v553_v21 = vmul.f32 %v2879_v39, %v541_v62  ;;  %v606_v54 = vmul.f32 %v2877_v15, %v605_v19  ;;  %vm559_vm3 = vweird.f32 %v2879_v39 }
 0x128   :  { %v547_v22 = vmul.f32 %v2875_v8, %v546_v18  ;;  %vm560_vm5 = vmor %vm558_vm2, %vm559_vm3 }
 0x129   :  { %v554_v25 = vmul.f32 %v2879_v39, %v553_v21  ;;  %v607_v30 = vmul.f32 0.5, %v606_v54 }
 0x12a   :  { %v551_v26 = vsel %vm550_vm15, %v2875_v8, %v547_v22  ;;  %v2881_v36 = vpop.eup %2880 }
 0x12b   :  { %v562_v32 = vmul.f32 %v551_v26, %v3478_v38  ;;  %v555_v33 = vmul.f32 0.5, %v554_v25  ;;  %v608_v34 = vsub.f32 1.5, %v607_v30  ;;  %v615_v9 = vmul.f32 %v2881_v36, %v603_v16  ;;  %v2767_v30 = vld [vmem:[#allocation14 + $0x70] sm:$0xff] }
 0x12c   :  { %vm621_vm7 = vweird.f32 %v2881_v36 }
 0x12d   :  { %v556_v17 = vsub.f32 1.5, %v555_v33  ;;  %v564_v40 = vmul.f32 %v562_v32, %v3467_v23  ;;  %v609_v42 = vmul.f32 %v2877_v15, %v608_v34  ;;  %v616_v44 = vmul.f32 %v2881_v36, %v615_v9  ;;  %vm622_vm8 = vmor %vm620_vm6, %vm621_vm7 }
 0x12f   :  { %v557_v58 = vmul.f32 %v2879_v39, %v556_v17  ;;  %v613_v53 = vsel %vm612_vm4, %v2877_v15, %v609_v42  ;;  %v566_v38 = vadd.f32 %v564_v40, %v3474_v27  ;;  %v617_v48 = vmul.f32 0.5, %v616_v44  ;;  %v2768_v15 = vld [vmem:[#allocation14 + $0x78] sm:$0xff] }
 0x130   :  { %v624_v46 = vmul.f32 %v613_v53, %v3506_v3  ;;  %1325 = vmatpush.bf16.msra.mxu3 %v2768_v15  ;;  %v2760_v17 = vld [vmem:[#allocation14 + $0x38] sm:$0xff]  ;;  %v2766_v53 = vld [vmem:[#allocation14 + $0x68] sm:$0xff] }
 0x131   :  { %v561_v45 = vsel %vm560_vm5, %v2879_v39, %v557_v58  ;;  %v618_v12 = vsub.f32 1.5, %v617_v48  ;;  %v568_v37 = vmax.f32 %v566_v38, 0.0  ;;  %1306 = vmatpush.bf16.msra.mxu2 %v2760_v17 }
 0x132   :  { %v563_v47 = vmul.f32 %v561_v45, %v3513_v6  ;;  %v626_v49 = vmul.f32 %v624_v46, %v3467_v23 }
 0x133   :  { %v619_v51 = vmul.f32 %v2881_v36, %v618_v12 }
 0x134   :  { %v628_v50 = vadd.f32 %v626_v49, %v3474_v27  ;;  %v565_v13 = vmul.f32 %v563_v47, %v3469_v24  ;;  %v668_v27 = vld [vmem:[#allocation11] sm:$0x3]  ;;  %1326 = vmatpush.bf16.msra.mxu3 %v2767_v30  ;;  %v2759_v47 = vld [vmem:[#allocation14 + $0x30] sm:$0xff] }
 0x135   :  { %v623_v43 = vsel %vm622_vm8, %v2881_v36, %v619_v51  ;;  %v3557_v60 = vperm.slane %v668_v27, 1  ;;  %v3560_v2 = vperm.slane %v668_v27, 0  ;;  %1307 = vmatpush.bf16.msra.mxu2 %v2759_v47 }
 0x136   :  { %v630_v31 = vmax.f32 %v628_v50, 0.0  ;;  %v625_v3 = vmul.f32 %v623_v43, %v3527_v63  ;;  %v567_v6 = vadd.f32 %v565_v13, %v3480_v41  ;;  %v2765_v50 = vld [vmem:[#allocation14 + $0x60] sm:$0xff] }
 0x138   :  { %v634_v52 = vpack.c.bf16 %v630_v31, %v568_v37  ;;  %v627_v20 = vmul.f32 %v625_v3, %v3469_v24  ;;  %v569_v23 = vmax.f32 %v567_v6, 0.0  ;;  %1327 = vmatpush.bf16.msra.mxu3 %v2766_v53  ;;  %v2758_v3 = vld [vmem:[#allocation14 + $0x28] sm:$0xff] }
 0x139   :  { %1308 = vmatpush.bf16.msra.mxu2 %v2758_v3  ;;  %v2753_v3 = vld [vmem:[#allocation14] sm:$0xff] }
 0x13a   :  { %847 = vmatmul.bf16.gmra.mxu2 %v634_v52  ;;  %885 = vmatmul.bf16.gmra.mxu0 %v634_v52  ;;  %v629_v55 = vadd.f32 %v627_v20, %v3480_v41 }
 0x13c   :  { %v631_v56 = vmax.f32 %v629_v55, 0.0  ;;  %1328 = vmatpush.bf16.msra.mxu3 %v2765_v50  ;;  %v2764_v55 = vld [vmem:[#allocation14 + $0x58] sm:$0xff] }
 0x13e   :  { %v635_v57 = vpack.c.bf16 %v631_v56, %v569_v23 }
 0x140   :  { %866 = vmatmul.bf16.gmra.mxu3 %v635_v57  ;;  %904 = vmatmul.bf16.gmra.mxu1 %v635_v57 }
 0x141   :  { %1329 = vmatpush.bf16.msra.mxu3 %v2764_v55 }
 0x19e   :  { %v881_v61 = vpop.f32.mrf.mxu0 }
 0x19f   :  { %v882_v63 = vadd.f32 %v881_v61, %v3557_v60  ;;  %v900_v35 = vpop.f32.mrf.mxu1 }
 0x1a1   :  { %v901_v1 = vadd.f32 %v900_v35, %v882_v63  ;;  %v2757_v63 = vld [vmem:[#allocation14 + $0x20] sm:$0xff] }
 0x1a2   :  { %1309 = vmatpush.bf16.msra.mxu2 %v2757_v63 }
 0x1a3   :  { %v918_v4 = vrot.slane %v901_v1, 4 }
 0x1a4   :  { %v843_v24 = vpop.f32.mrf.mxu2 }
 0x1a5   :  { %v919_v5 = vadd.f32 %v918_v4, %v901_v1  ;;  %v844_v59 = vadd.f32 %v843_v24, %v3560_v2  ;;  %v862_v41 = vpop.f32.mrf.mxu3 }
 0x1a6   :  { %v883_v62 = vpop.f32.mrf.mxu0 }
 0x1a7   :  { %v920_v7 = vrot.slane %v919_v5, 2  ;;  %v863_v8 = vadd.f32 %v862_v41, %v844_v59  ;;  %v884_v28 = vadd.f32 %v883_v62, %v3557_v60  ;;  %v902_v10 = vpop.f32.mrf.mxu1 }
 0x1a9   :  { %v921_v11 = vadd.f32 %v920_v7, %v919_v5  ;;  %v912_v0 = vrot.slane %v863_v8, 4  ;;  %v903_v14 = vadd.f32 %v902_v10, %v884_v28  ;;  %v2763_v5 = vld [vmem:[#allocation14 + $0x50] sm:$0xff]  ;;  %v2756_v28 = vld [vmem:[#allocation14 + $0x18] sm:$0xff] }
 0x1aa   :  { %1330 = vmatpush.bf16.msra.mxu3 %v2763_v5  ;;  %1310 = vmatpush.bf16.msra.mxu2 %v2756_v28 }
 0x1ab   :  { %v922_v16 = vrot.slane %v921_v11, 1  ;;  %v913_v39 = vadd.f32 %v912_v0, %v863_v8  ;;  %v990_v18 = vrot.slane %v903_v14, 4 }
 0x1ac   :  { %v845_v19 = vpop.f32.mrf.mxu2 }
 0x1ad   :  { %v923_v21 = vadd.f32 %v922_v16, %v921_v11  ;;  %v914_v22 = vrot.slane %v913_v39, 2  ;;  %v991_v54 = vadd.f32 %v990_v18, %v903_v14  ;;  %v846_v25 = vadd.f32 %v845_v19, %v3560_v2  ;;  %v864_v26 = vpop.f32.mrf.mxu3  ;;  %v2762_v16 = vld [vmem:[#allocation14 + $0x48] sm:$0xff] }
 0x1ae   :  { %1331 = vmatpush.bf16.msra.mxu3 %v2762_v16 }
 0x1af   :  { %v925_v32 = vmul.f32 %v923_v21, %v3392_v29  ;;  %v915_v33 = vadd.f32 %v914_v22, %v913_v39  ;;  %v992_v34 = vrot.slane %v991_v54, 2  ;;  %v865_v36 = vadd.f32 %v864_v26, %v846_v25 }
 0x1b1   :  { %v3566_v40 = vsub.f32 %v901_v1, %v925_v32  ;;  %v916_v42 = vrot.slane %v915_v33, 1  ;;  %v993_v9 = vadd.f32 %v992_v34, %v991_v54  ;;  %v984_v58 = vrot.slane %v865_v36, 4  ;;  %v2755_v54 = vld [vmem:[#allocation14 + $0x10] sm:$0xff]  ;;  %v2761_v32 = vld [vmem:[#allocation14 + $0x40] sm:$0xff] }
 0x1b2   :  { %1311 = vmatpush.bf16.msra.mxu2 %v2755_v54  ;;  %1332 = vmatpush.bf16.msra.mxu3 %v2761_v32 }
 0x1b3   :  { %v929_v44 = vmul.f32 %v3566_v40, %v3566_v40  ;;  %v917_v45 = vadd.f32 %v916_v42, %v915_v33  ;;  %v994_v46 = vrot.slane %v993_v9, 1  ;;  %v985_v38 = vadd.f32 %v984_v58, %v865_v36 }
 0x1b5   :  { %v936_v48 = vrot.slane %v929_v44, 4  ;;  %v924_v49 = vmul.f32 %v917_v45, %v3392_v29  ;;  %v995_v12 = vadd.f32 %v994_v46, %v993_v9  ;;  %v986_v37 = vrot.slane %v985_v38, 2  ;;  %v2754_v9 = vld [vmem:[#allocation14 + $0x8] sm:$0xff] }
 0x1b6   :  { %1312 = vmatpush.bf16.msra.mxu2 %v2754_v9 }
 0x1b7   :  { %v937_v13 = vadd.f32 %v936_v48, %v929_v44  ;;  %v3571_v51 = vsub.f32 %v863_v8, %v924_v49  ;;  %v997_v31 = vmul.f32 %v995_v12, %v3392_v29  ;;  %v987_v43 = vadd.f32 %v986_v37, %v985_v38  ;;  %v886_v8 = vpop.f32.mrf.mxu0 }
 0x1b8   :  { %v887_v45 = vadd.f32 %v886_v8, %v3557_v60 }
 0x1b9   :  { %v938_v52 = vrot.slane %v937_v13, 2  ;;  %v928_v6 = vmul.f32 %v3571_v51, %v3571_v51  ;;  %v3576_v20 = vsub.f32 %v903_v14, %v997_v31  ;;  %v988_v23 = vrot.slane %v987_v43, 1 }
 0x1ba   :  { %1313 = vmatpush.bf16.msra.mxu2 %v2753_v3 }
 0x1bb   :  { %v939_v56 = vadd.f32 %v938_v52, %v937_v13  ;;  %v930_v57 = vrot.slane %v928_v6, 4  ;;  %v1001_v27 = vmul.f32 %v3576_v20, %v3576_v20  ;;  %v989_v61 = vadd.f32 %v988_v23, %v987_v43 }
 0x1bd   :  { %v940_v35 = vrot.slane %v939_v56, 1  ;;  %v931_v1 = vadd.f32 %v930_v57, %v928_v6  ;;  %v1008_v4 = vrot.slane %v1001_v27, 4  ;;  %v996_v24 = vmul.f32 %v989_v61, %v3392_v29  ;;  %v848_v15 = vpop.f32.mrf.mxu2  ;;  %v905_v21 = vpop.f32.mrf.mxu1 }
 0x1be   :  { %v3601_v12 = vadd.f32 %v905_v21, %v887_v45 }
 0x1bf   :  { %v941_v59 = vadd.f32 %v940_v35, %v939_v56  ;;  %v932_v41 = vrot.slane %v931_v1, 2  ;;  %v1009_v62 = vadd.f32 %v1008_v4, %v1001_v27  ;;  %v3581_v7 = vsub.f32 %v865_v36, %v996_v24  ;;  %v888_v42 = vpop.f32.mrf.mxu0 }
 0x1c0   :  { %v849_v36 = vadd.f32 %v848_v15, %v3560_v2  ;;  %v889_v46 = vadd.f32 %v888_v42, %v3557_v60  ;;  %v1052_v60 = vrot.slane %v3601_v12, 4 }
 0x1c1   :  { %v943_v10 = vmul.f32 %v941_v59, %v3392_v29  ;;  %v933_v11 = vadd.f32 %v932_v41, %v931_v1  ;;  %v1010_v0 = vrot.slane %v1009_v62, 2  ;;  %v1000_v14 = vmul.f32 %v3581_v7, %v3581_v7  ;;  %v910_v59 = vld [vmem:[%s3855_s7] sm:$0x3] }
 0x1c2   :  { %v1053_v56 = vadd.f32 %v1052_v60, %v3601_v12 }
 0x1c3   :  { %v3586_v39 = vadd.f32 1e-05, %v943_v10  ;;  %v934_v18 = vrot.slane %v933_v11, 1  ;;  %v1011_v19 = vadd.f32 %v1010_v0, %v1009_v62  ;;  %v1002_v22 = vrot.slane %v1000_v14, 4  ;;  %v867_v44 = vpop.f32.mrf.mxu3 }
 0x1c4   :  { %v3596_v47 = vadd.f32 %v867_v44, %v849_v36  ;;  %v1054_v4 = vrot.slane %v1053_v56, 2 }
 0x1c5   :  { %2882 = vrsqrt.f32 %v3586_v39  ;;  %v935_v25 = vadd.f32 %v934_v18, %v933_v11  ;;  %v1012_v26 = vrot.slane %v1011_v19, 1  ;;  %v1003_v30 = vadd.f32 %v1002_v22, %v1000_v14  ;;  %v907_v37 = vpop.f32.mrf.mxu1  ;;  %v850_v43 = vpop.f32.mrf.mxu2  ;;  %v911_v18 = vld [vmem:[#allocation13] sm:$0x3] }
 0x1c6   :  { %v1046_v31 = vrot.slane %v3596_v47, 4  ;;  %v3607_v52 = vadd.f32 %v907_v37, %v889_v46  ;;  %v851_v57 = vadd.f32 %v850_v43, %v3560_v2  ;;  %v1055_v10 = vadd.f32 %v1054_v4, %v1053_v56 }
 0x1c7   :  { %v942_v33 = vmul.f32 %v935_v25, %v3392_v29  ;;  %v1013_v34 = vadd.f32 %v1012_v26, %v1011_v19  ;;  %v1004_v17 = vrot.slane %v1003_v30, 2  ;;  %vm962_vm10 = vweird.f32 %v3586_v39 }
 0x1c8   :  { %v1047_v55 = vadd.f32 %v1046_v31, %v3596_v47  ;;  %v1114_v27 = vrot.slane %v3607_v52, 4  ;;  %v3629_v19 = vperm.slane %v910_v59, 1  ;;  %v1056_v22 = vrot.slane %v1055_v10, 1 }
 0x1c9   :  { %v3591_v58 = vadd.f32 1e-05, %v942_v33  ;;  %v1015_v53 = vmul.f32 %v1013_v34, %v3392_v29  ;;  %v1005_v38 = vadd.f32 %v1004_v17, %v1003_v30  ;;  %v3633_v34 = vperm.slane %v911_v18, 1 }
 0x1ca   :  { %v1048_v35 = vrot.slane %v1047_v55, 2  ;;  %v1115_v5 = vadd.f32 %v1114_v27, %v3607_v52  ;;  %v1057_v33 = vadd.f32 %v1056_v22, %v1055_v10 }
 0x1cb   :  { %v2883_v48 = vpop.eup %2882  ;;  %2884 = vrsqrt.f32 %v3591_v58  ;;  %v3599_v49 = vadd.f32 1e-05, %v1015_v53  ;;  %v1006_v13 = vrot.slane %v1005_v38, 1  ;;  %v869_v24 = vpop.f32.mrf.mxu3  ;;  %vm952_vm14 = vweird.f32 %v3591_v58 }
 0x1cc   :  { %v957_v50 = vmul.f32 %v2883_v48, %v3586_v39  ;;  %vm963_vm9 = vweird.f32 %v2883_v48  ;;  %v1049_v28 = vadd.f32 %v1048_v35, %v1047_v55  ;;  %v3624_v11 = vadd.f32 %v869_v24, %v851_v57 }
 0x1cd   :  { %2886 = vrsqrt.f32 %v3599_v49  ;;  %v1007_v23 = vadd.f32 %v1006_v13, %v1005_v38  ;;  %v1116_v0 = vrot.slane %v1115_v5, 2  ;;  %vm964_vm11 = vmor %vm962_vm10, %vm963_vm9  ;;  %v1059_v44 = vmul.f32 %v1057_v33, %v3392_v29 }
 0x1ce   :  { %v958_v6 = vmul.f32 %v2883_v48, %v957_v50  ;;  %v1050_v21 = vrot.slane %v1049_v28, 1  ;;  %v1108_v30 = vrot.slane %v3624_v11, 4  ;;  %vm1034_vm0 = vweird.f32 %v3599_v49 }
 0x1cf   :  { %v1014_v63 = vmul.f32 %v1007_v23, %v3392_v29  ;;  %v1117_v39 = vadd.f32 %v1116_v0, %v1115_v5  ;;  %v3646_v50 = vsub.f32 %v3601_v12, %v1059_v44 }
 0x1d0   :  { %v959_v61 = vmul.f32 0.5, %v958_v6  ;;  %v1051_v32 = vadd.f32 %v1050_v21, %v1049_v28  ;;  %v1109_v9 = vadd.f32 %v1108_v30, %v3624_v11  ;;  %v3655_v6 = vperm.slane %v910_v59, 0 }
 0x1d1   :  { %v3614_v1 = vpop.eup %2884  ;;  %v3622_v62 = vadd.f32 1e-05, %v1014_v63  ;;  %v1118_v45 = vrot.slane %v1117_v39, 1  ;;  %v3666_v63 = vperm.slane %v911_v18, 0 }
 0x1d2   :  { %v960_v41 = vsub.f32 1.5, %v959_v61  ;;  %v947_v2 = vmul.f32 %v3614_v1, %v3591_v58  ;;  %vm953_vm12 = vweird.f32 %v3614_v1  ;;  %v1058_v53 = vmul.f32 %v1051_v32, %v3392_v29 }
 0x1d3   :  { %v2887_v8 = vpop.eup %2886  ;;  %2888 = vrsqrt.f32 %v3622_v62  ;;  %v1119_v13 = vadd.f32 %v1118_v45, %v1117_v39  ;;  %vm3649_vm15 = vmor %vm952_vm14, %vm953_vm12  ;;  %vm1024_vm3 = vweird.f32 %v3622_v62 }
 0x1d4   :  { %v961_v14 = vmul.f32 %v2883_v48, %v960_v41  ;;  %v948_v15 = vmul.f32 %v3614_v1, %v947_v2  ;;  %v1029_v16 = vmul.f32 %v2887_v8, %v3599_v49  ;;  %vm1035_vm13 = vweird.f32 %v2887_v8 }
 0x1d5   :  { %vm1036_vm1 = vmor %vm1034_vm0, %vm1035_vm13  ;;  %v1121_v49 = vmul.f32 %v1119_v13, %v3392_v29 }
 0x1d6   :  { %v965_v54 = vsel %vm964_vm11, %v2883_v48, %v961_v14  ;;  %v949_v25 = vmul.f32 0.5, %v948_v15  ;;  %v1030_v26 = vmul.f32 %v2887_v8, %v1029_v16  ;;  %v1110_v48 = vrot.slane %v1109_v9, 2 }
 0x1d7   :  { %v967_v36 = vmul.f32 %v965_v54, %v3566_v40  ;;  %v3643_v40 = vsub.f32 %v3596_v47, %v1058_v53  ;;  %v1063_v47 = vmul.f32 %v3646_v50, %v3646_v50  ;;  %v3669_v24 = vsub.f32 %v3607_v52, %v1121_v49 }
 0x1d8   :  { %v950_v17 = vsub.f32 1.5, %v949_v25  ;;  %v1031_v42 = vmul.f32 0.5, %v1030_v26  ;;  %v1111_v12 = vadd.f32 %v1110_v48, %v1109_v9 }
 0x1d9   :  { %v2889_v37 = vpop.eup %2888  ;;  %v974_v31 = vmul.f32 %v3629_v19, %v967_v36  ;;  %v1062_v58 = vmul.f32 %v3643_v40, %v3643_v40  ;;  %v1070_v61 = vrot.slane %v1063_v47, 4  ;;  %v1125_v28 = vmul.f32 %v3669_v24, %v3669_v24 }
 0x1da   :  { %v951_v46 = vmul.f32 %v3614_v1, %v950_v17  ;;  %v1032_v38 = vsub.f32 1.5, %v1031_v42  ;;  %v1019_v60 = vmul.f32 %v2889_v37, %v3622_v62  ;;  %v1112_v4 = vrot.slane %v1111_v12, 1 }
 0x1db   :  { %v1064_v27 = vrot.slane %v1062_v58, 4  ;;  %v981_v5 = vadd.f32 %v3633_v34, %v974_v31  ;;  %v1071_v2 = vadd.f32 %v1070_v61, %v1063_v47  ;;  %vm1025_vm2 = vweird.f32 %v2889_v37 }
 0x1dc   :  { %v1033_v3 = vmul.f32 %v2887_v8, %v1032_v38  ;;  %v955_v23 = vsel %vm3649_vm15, %v3614_v1, %v951_v46  ;;  %v1020_v56 = vmul.f32 %v2889_v37, %v1019_v60  ;;  %vm1026_vm4 = vmor %vm1024_vm3, %vm1025_vm2  ;;  %vm1418_vm3 = vcmask 1040384  }
 0x1dd   :  { %v966_v59 = vmul.f32 %v955_v23, %v3571_v51  ;;  %v1065_v41 = vadd.f32 %v1064_v27, %v1062_v58  ;;  %v1072_v0 = vrot.slane %v1071_v2, 2  ;;  %v1132_v51 = vrot.slane %v1125_v28, 4 }
 0x1de   :  { %v1037_v55 = vsel %vm1036_vm1, %v2887_v8, %v1033_v3  ;;  %v1021_v35 = vmul.f32 0.5, %v1020_v56  ;;  %v983_v16 = vmax.f32 %v981_v5, 0.0  ;;  %v2784_v5 = vld [vmem:[#allocation17 + $0x74] sm:$0xf0]  ;;  %vm1516_vm1 = vcmask 1043456  }
 0x1df   :  { %v1039_v57 = vmul.f32 %v1037_v55, %v3576_v20  ;;  %v1113_v20 = vadd.f32 %v1112_v4, %v1111_v12  ;;  %v1066_v10 = vrot.slane %v1065_v41, 2  ;;  %v973_v18 = vmul.f32 %v3655_v6, %v966_v59  ;;  %v2635_v4 = vld [vmem:[#allocation17 + $0x70] sm:$0xf]  ;;  %v2783_v59 = vld [vmem:[#allocation17 + $0x74] sm:$0xf] }
 0x1e0   :  { %v1022_v8 = vsub.f32 1.5, %v1021_v35  ;;  %v1073_v22 = vadd.f32 %v1072_v0, %v1071_v2  ;;  %v1133_v62 = vadd.f32 %v1132_v51, %v1125_v28  ;;  %v2637_v2 = vld [vmem:[#allocation17 + $0x78] sm:$0xf0]  ;;  %v2782_v0 = vld [vmem:[#allocation17 + $0x64] sm:$0xf0] }
 0x1e1   :  { %v1041_v1 = vmul.f32 %v1039_v57, %v3629_v19  ;;  %v1120_v15 = vmul.f32 %v1113_v20, %v3392_v29  ;;  %v1067_v21 = vadd.f32 %v1066_v10, %v1065_v41  ;;  %v980_v44 = vadd.f32 %v3666_v63, %v973_v18  ;;  %v2629_v51 = vld [vmem:[#allocation17 + $0x68] sm:$0xf0] }
 0x1e2   :  { %v1023_v14 = vmul.f32 %v2889_v37, %v1022_v8  ;;  %v1074_v33 = vrot.slane %v1073_v22, 1  ;;  %v1134_v17 = vrot.slane %v1133_v62, 2  ;;  %v2636_v41 = vor.u32 %v2784_v5, %v2635_v4  ;;  %v2627_v8 = vld [vmem:[#allocation17 + $0x60] sm:$0xf] }
 0x1e3   :  { %v1043_v52 = vadd.f32 %v1041_v1, %v3633_v34  ;;  %v3681_v26 = vsub.f32 %v3624_v11, %v1120_v15  ;;  %v1068_v32 = vrot.slane %v1067_v21, 1  ;;  %v982_v43 = vmax.f32 %v980_v44, 0.0 }
 0x1e4   :  { %v1027_v25 = vsel %vm1026_vm4, %v2889_v37, %v1023_v14  ;;  %v1075_v53 = vadd.f32 %v1074_v33, %v1073_v22  ;;  %v1135_v11 = vadd.f32 %v1134_v17, %v1133_v62  ;;  %v2640_v10 = vor.u32 %v2783_v59, %v2637_v2  ;;  %1932 = vmatpush.bf16.msrb.mxu2 %v2636_v41  ;;  %v2619_v22 = vld [vmem:[#allocation17 + $0x50] sm:$0xf]  ;;  %v2778_v2 = vld [vmem:[#allocation17 + $0x44] sm:$0xf0] }
 0x1e5   :  { %v1045_v54 = vmax.f32 %v1043_v52, 0.0  ;;  %v1038_v30 = vmul.f32 %v1027_v25, %v3581_v7  ;;  %v1124_v36 = vmul.f32 %v3681_v26, %v3681_v26  ;;  %v1069_v9 = vadd.f32 %v1068_v32, %v1067_v21  ;;  %v2781_v52 = vld [vmem:[#allocation17 + $0x64] sm:$0xf]  ;;  %v2621_v32 = vld [vmem:[#allocation17 + $0x58] sm:$0xf0] }
 0x1e6   :  { %v1077_v7 = vmul.f32 %v1075_v53, %v3392_v29  ;;  %v1136_v37 = vrot.slane %v1135_v11, 1  ;;  %v2628_v15 = vor.u32 %v2782_v0, %v2627_v8  ;;  %1946 = vmatpush.bf16.msrb.mxu3 %v2640_v10  ;;  %v2632_v21 = vor.u32 %v2781_v52, %v2629_v51  ;;  %v2777_v8 = vld [vmem:[#allocation17 + $0x44] sm:$0xf]  ;;  %v2776_v10 = vld [vmem:[#allocation17 + $0x34] sm:$0xf0] }
 0x1e7   :  { %v1171_v39 = vpack.c.bf16 %v1045_v54, %v983_v16  ;;  %v1040_v42 = vmul.f32 %v1038_v30, %v3655_v6  ;;  %v1126_v45 = vrot.slane %v1124_v36, 4  ;;  %v1076_v46 = vmul.f32 %v1069_v9, %v3392_v29  ;;  %v2780_v54 = vld [vmem:[#allocation17 + $0x54] sm:$0xf0]  ;;  %v2779_v30 = vld [vmem:[#allocation17 + $0x54] sm:$0xf] }
 0x1e8   :  { %v1079_v31 = vadd.f32 1e-05, %v1077_v7  ;;  %v1137_v58 = vadd.f32 %v1136_v37, %v1135_v11  ;;  %1933 = vmatpush.bf16.msrb.mxu2 %v2628_v15  ;;  %v2624_v53 = vor.u32 %v2779_v30, %v2621_v32  ;;  %v2775_v0 = vld [vmem:[#allocation17 + $0x34] sm:$0xf]  ;;  %v2605_v52 = vld [vmem:[#allocation17 + $0x38] sm:$0xf0] }
 0x1e9   :  { %1333 = vmatmul.bf16.vlgmr.msra.gmra.mxu3 %v1171_v39  ;;  %v1042_v38 = vadd.f32 %v1040_v42, %v3666_v63  ;;  %v1127_v48 = vadd.f32 %v1126_v45, %v1124_v36  ;;  %v1078_v13 = vadd.f32 1e-05, %v1076_v46  ;;  %v2620_v42 = vor.u32 %v2780_v54, %v2619_v22  ;;  %v2774_v15 = vld [vmem:[#allocation17 + $0x24] sm:$0xf0]  ;;  %v2773_v51 = vld [vmem:[#allocation17 + $0x24] sm:$0xf] }
 0x1ea   :  { %v1139_v23 = vmul.f32 %v1137_v58, %v3392_v29  ;;  %vm1096_vm7 = vweird.f32 %v1079_v31  ;;  %1947 = vmatpush.bf16.msrb.mxu3 %v2632_v21  ;;  %v2587_v22 = vld [vmem:[#allocation17 + $0x10] sm:$0xf]  ;;  %v2772_v54 = vld [vmem:[#allocation17 + $0x14] sm:$0xf0]  ;;  %v2589_v30 = vld [vmem:[#allocation17 + $0x18] sm:$0xf0] }
 0x1eb   :  { %v1044_v3 = vmax.f32 %v1042_v38, 0.0  ;;  %v1128_v60 = vrot.slane %v1127_v48, 2  ;;  %2890 = vrsqrt.f32 %v1078_v13  ;;  %vm1086_vm5 = vweird.f32 %v1078_v13  ;;  %v2770_v39 = vld [vmem:[#allocation17 + $0x4] sm:$0xf0] }
 0x1ec   :  { %2892 = vrsqrt.f32 %v1079_v31  ;;  %v1141_v56 = vadd.f32 1e-05, %v1139_v23  ;;  %1934 = vmatpush.bf16.msrb.mxu2 %v2620_v42  ;;  %v2581_v42 = vld [vmem:[#allocation17 + $0x8] sm:$0xf0] }
 0x1ed   :  { %v1170_v47 = vpack.c.bf16 %v1044_v3, %v982_v43  ;;  %v1129_v12 = vadd.f32 %v1128_v60, %v1127_v48 }
 0x1ee   :  { %2894 = vrsqrt.f32 %v1141_v56  ;;  %vm1158_vm11 = vweird.f32 %v1141_v56  ;;  %1948 = vmatpush.bf16.msrb.mxu3 %v2624_v53  ;;  %v3712_v53 = vld [vmem:[#allocation16] ss:$0 sm:$0xff] }
 0x1ef   :  { %1314 = vmatmul.bf16.vlgmr.msra.gmra.mxu2 %v1170_v47  ;;  %v1130_v55 = vrot.slane %v1129_v12, 1 }
 0x1f1   :  { %v1131_v49 = vadd.f32 %v1130_v55, %v1129_v12  ;;  %v2891_v57 = vpop.eup %2890 }
 0x1f2   :  { %v2893_v27 = vpop.eup %2892  ;;  %v1081_v61 = vmul.f32 %v2891_v57, %v1078_v13  ;;  %vm1087_vm6 = vweird.f32 %v2891_v57 }
 0x1f3   :  { %v1138_v35 = vmul.f32 %v1131_v49, %v3392_v29  ;;  %v1091_v1 = vmul.f32 %v2893_v27, %v1079_v31  ;;  %vm1097_vm8 = vweird.f32 %v2893_v27  ;;  %vm3694_vm9 = vmor %vm1086_vm5, %vm1087_vm6 }
 0x1f4   :  { %v1082_v20 = vmul.f32 %v2891_v57, %v1081_v61  ;;  %v2895_v16 = vpop.eup %2894  ;;  %vm1098_vm10 = vmor %vm1096_vm7, %vm1097_vm8 }
 0x1f5   :  { %v1140_v28 = vadd.f32 1e-05, %v1138_v35  ;;  %v1092_v14 = vmul.f32 %v2893_v27, %v1091_v1  ;;  %v1153_v62 = vmul.f32 %v2895_v16, %v1141_v56  ;;  %vm1159_vm12 = vweird.f32 %v2895_v16 }
 0x1f6   :  { %v1083_v18 = vmul.f32 0.5, %v1082_v20  ;;  %vm1160_vm13 = vmor %vm1158_vm11, %vm1159_vm12 }
 0x1f7   :  { %2896 = vrsqrt.f32 %v1140_v28  ;;  %v1093_v25 = vmul.f32 0.5, %v1092_v14  ;;  %v1154_v17 = vmul.f32 %v2895_v16, %v1153_v62  ;;  %vm1148_vm14 = vweird.f32 %v1140_v28 }
 0x1f8   :  { %v1084_v33 = vsub.f32 1.5, %v1083_v18  ;;  %v2608_v14 = vor.u32 %v2775_v0, %v2605_v52  ;;  %v2597_v18 = vld [vmem:[#allocation17 + $0x28] sm:$0xf0]  ;;  %v2588_v62 = vor.u32 %v2772_v54, %v2587_v22 }
 0x1f9   :  { %v1094_v36 = vsub.f32 1.5, %v1093_v25  ;;  %v1155_v45 = vmul.f32 0.5, %v1154_v17  ;;  %v2600_v21 = vor.u32 %v2773_v51, %v2597_v18  ;;  %v2771_v25 = vld [vmem:[#allocation17 + $0x14] sm:$0xf] }
 0x1fa   :  { %v1085_v9 = vmul.f32 %v2891_v57, %v1084_v33  ;;  %v2592_v32 = vor.u32 %v2771_v25, %v2589_v30  ;;  %v2579_v33 = vld [vmem:[#allocation17] sm:$0xf] }
 0x1fb   :  { %v1095_v44 = vmul.f32 %v2893_v27, %v1094_v36  ;;  %v1156_v37 = vsub.f32 1.5, %v1155_v45  ;;  %v2769_v36 = vld [vmem:[#allocation17 + $0x4] sm:$0xf]  ;;  %v2580_v17 = vor.u32 %v2770_v39, %v2579_v33 }
 0x1fc   :  { %v1089_v46 = vsel %vm3694_vm9, %v2891_v57, %v1085_v9  ;;  %v2584_v9 = vor.u32 %v2769_v36, %v2581_v42 }
 0x1fd   :  { %v2897_v11 = vpop.eup %2896  ;;  %v1099_v7 = vsel %vm1098_vm10, %v2893_v27, %v1095_v44  ;;  %v1100_v31 = vmul.f32 %v1089_v46, %v3643_v40  ;;  %v1157_v43 = vmul.f32 %v2895_v16, %v1156_v37 }
 0x1fe   :  { %v1143_v38 = vmul.f32 %v2897_v11, %v1140_v28  ;;  %v1101_v48 = vmul.f32 %v1099_v7, %v3646_v50  ;;  %vm1149_vm15 = vweird.f32 %v2897_v11 }
 0x1ff   :  { %v1161_v58 = vsel %vm1160_vm13, %v2895_v16, %v1157_v43  ;;  %vm1150_vm0 = vmor %vm1148_vm14, %vm1149_vm15  ;;  %v1102_v50 = vmul.f32 %v1100_v31, %v3655_v6  ;;  %vm1491_vm14 = vcmask 64512  }
 0x200   :  { %v1144_v13 = vmul.f32 %v2897_v11, %v1143_v38  ;;  %v1103_v3 = vmul.f32 %v1101_v48, %v3629_v19  ;;  %v1163_v12 = vmul.f32 %v1161_v58, %v3669_v24  ;;  %v3224_v48 = vmov 7.0  }
 0x201   :  { %v1104_v61 = vadd.f32 %v1102_v50, %v3666_v63  ;;  %2898 = vrcp.f32 %v3224_v48 }
 0x202   :  { %v1145_v60 = vmul.f32 0.5, %v1144_v13  ;;  %v1105_v23 = vadd.f32 %v1103_v3, %v3633_v34  ;;  %v1165_v56 = vmul.f32 %v1163_v12, %v3629_v19  ;;  %v2611_v19 = vld [vmem:[#allocation17 + $0x40] sm:$0xf] }
 0x203   :  { %v1106_v5 = vmax.f32 %v1104_v61, 0.0  ;;  %v2612_v20 = vor.u32 %v2778_v2, %v2611_v19 }
 0x204   :  { %v1146_v47 = vsub.f32 1.5, %v1145_v60  ;;  %v1107_v40 = vmax.f32 %v1105_v23, 0.0  ;;  %v1167_v57 = vadd.f32 %v1165_v56, %v3633_v34  ;;  %v2613_v34 = vld [vmem:[#allocation17 + $0x48] sm:$0xf0] }
 0x205   :  { %v2616_v28 = vor.u32 %v2777_v8, %v2613_v34  ;;  %1935 = vmatpush.bf16.msrb.mxu2 %v2612_v20 }
 0x206   :  { %v1147_v55 = vmul.f32 %v2897_v11, %v1146_v47  ;;  %v1169_v35 = vmax.f32 %v1167_v57, 0.0 }
 0x207   :  { %1949 = vmatpush.bf16.msrb.mxu3 %v2616_v28  ;;  %v2899_v58 = vpop.eup %2898 }
 0x208   :  { %v1151_v49 = vsel %vm1150_vm0, %v2897_v11, %v1147_v55  ;;  %v1173_v24 = vpack.c.bf16 %v1169_v35, %v1107_v40  ;;  %vm1392_vm2 = vweird.f32 %v2899_v58 }
 0x209   :  { %v1162_v27 = vmul.f32 %v1151_v49, %v3681_v26  ;;  %v2603_v26 = vld [vmem:[#allocation17 + $0x30] sm:$0xf]  ;;  %v1388_v49 = vmul.f32 7.0, %v2899_v58 }
 0x20a   :  { %1338 = vmatmul.bf16.gmra.mxu3 %v1173_v24 }
 0x20b   :  { %v1164_v4 = vmul.f32 %v1162_v27, %v3655_v6  ;;  %v2604_v6 = vor.u32 %v2776_v10, %v2603_v26  ;;  %1950 = vmatpush.bf16.msrb.mxu3 %v2608_v14  ;;  %v1389_v35 = vsub.f32 1.0, %v1388_v49 }
 0x20d   :  { %v1166_v59 = vadd.f32 %v1164_v4, %v3666_v63  ;;  %1936 = vmatpush.bf16.msrb.mxu2 %v2604_v6  ;;  %v2595_v63 = vld [vmem:[#allocation17 + $0x20] sm:$0xf]  ;;  %v1390_v2 = vmul.f32 %v2899_v58, %v1389_v35 }
 0x20e   :  { %v2596_v16 = vor.u32 %v2774_v15, %v2595_v63 }
 0x20f   :  { %v1168_v1 = vmax.f32 %v1166_v59, 0.0  ;;  %1951 = vmatpush.bf16.msrb.mxu3 %v2600_v21  ;;  %v1391_v0 = vadd.f32 %v2899_v58, %v1390_v2 }
 0x211   :  { %v1172_v41 = vpack.c.bf16 %v1168_v1, %v1106_v5  ;;  %1937 = vmatpush.bf16.msrb.mxu2 %v2596_v16  ;;  %v3722_v21 = vsel %vm1392_vm2, %v2899_v58, %v1391_v0 }
 0x213   :  { %1319 = vmatmul.bf16.gmra.mxu2 %v1172_v41  ;;  %1952 = vmatpush.bf16.msrb.mxu3 %v2592_v32 }
 0x215   :  { %1938 = vmatpush.bf16.msrb.mxu2 %v2588_v62 }
 0x217   :  { %1953 = vmatpush.bf16.msrb.mxu3 %v2584_v9 }
 0x219   :  { %1939 = vmatpush.bf16.msrb.mxu2 %v2580_v17 }
 0x26c   :  { %v1334_v44 = vpop.f32.mrf.mxu3 }
 0x272   :  { %v1315_v45 = vpop.f32.mrf.mxu2 }
 0x273   :  { %v1316_v11 = vadd.f32 %v3712_v53, %v1315_v45 }
 0x274   :  { %v1336_v43 = vpop.f32.mrf.mxu3 }
 0x275   :  { %v1335_v46 = vadd.f32 %v1334_v44, %v1316_v11 }
 0x277   :  { %v1364_v7 = vrot.slane %v1335_v46, 4 }
 0x279   :  { %v1365_v38 = vadd.f32 %v1364_v7, %v1335_v46 }
 0x27a   :  { %v1317_v37 = vpop.f32.mrf.mxu2 }
 0x27b   :  { %v1318_v13 = vadd.f32 %v3712_v53, %v1317_v37  ;;  %v1366_v31 = vrot.slane %v1365_v38, 2 }
 0x27d   :  { %v1337_v3 = vadd.f32 %v1336_v43, %v1318_v13  ;;  %v1367_v60 = vadd.f32 %v1366_v31, %v1365_v38 }
 0x27f   :  { %v1372_v47 = vrot.slane %v1337_v3, 4  ;;  %v1829_v12 = vpack.c.bf16 %v1337_v3, %v1335_v46  ;;  %v1368_v23 = vrot.slane %v1367_v60, 1  ;;  %v3716_v50 = vsub.f32 %v1335_v46, %v1337_v3 }
 0x281   :  { %1940 = vmatmul.bf16.vlgmr.msrb.gmra.mxu2 %v1829_v12  ;;  %1954 = vmatmul.bf16.vlgmr.msrb.gmra.mxu3 %v1829_v12  ;;  %v1369_v55 = vadd.f32 %v1368_v23, %v1367_v60  ;;  %v1373_v56 = vadd.f32 %v1372_v47, %v1337_v3 }
 0x283   :  { %v1370_v40 = vmul.f32 %v1369_v55, %v3392_v29  ;;  %v1374_v57 = vrot.slane %v1373_v56, 2 }
 0x285   :  { %v1371_v27 = vsub.f32 %v1335_v46, %v1370_v40  ;;  %v1375_v61 = vadd.f32 %v1374_v57, %v1373_v56 }
 0x287   :  { %v1380_v4 = vmul.f32 %v1371_v27, %v1371_v27  ;;  %v1473_v24 = vpack.c.bf16 %v1371_v27, %v1371_v27  ;;  %v1376_v5 = vrot.slane %v1375_v61, 1 }
 0x289   :  { %v1381_v59 = vrot.slane %v1380_v4, 4  ;;  %v1518_v1 = vsel %vm1516_vm1, %v1473_v24, 0  ;;  %v1693_v41 = vunpack.c.l.bf16 %v1473_v24  ;;  %v1377_v19 = vadd.f32 %v1376_v5, %v1375_v61 }
 0x28a   :  { %1527 = vmatpush.bf16.msrb.mxu0 %v1518_v1 }
 0x28b   :  { %v1382_v8 = vadd.f32 %v1381_v59, %v1380_v4  ;;  %v1695_v20 = vmul.f32 %v1693_v41, %v1693_v41  ;;  %v1378_v34 = vmul.f32 %v1377_v19, %v3392_v29 }
 0x28d   :  { %v1383_v28 = vrot.slane %v1382_v8, 2  ;;  %v1379_v26 = vsub.f32 %v1337_v3, %v1378_v34  ;;  %v1696_v10 = vrot.slane %v1695_v20, 4  ;;  %v1339_v7 = vpop.f32.mrf.mxu3 }
 0x28f   :  { %v1384_v6 = vadd.f32 %v1383_v28, %v1382_v8  ;;  %v1395_v52 = vmul.f32 %v1379_v26, %v1379_v26  ;;  %v1474_v14 = vpack.c.bf16 %v1379_v26, %v1379_v26  ;;  %v1697_v63 = vadd.f32 %v1696_v10, %v1695_v20 }
 0x291   :  { %v1385_v15 = vrot.slane %v1384_v6, 1  ;;  %v1396_v51 = vrot.slane %v1395_v52, 4  ;;  %v1694_v16 = vunpack.c.l.bf16 %v1474_v14  ;;  %2845 = vxpose.binary.xlu0.c.b16.start.end [1/2] (short) %v1474_v14, %v1473_v24, 128  ;;  %v1626_v18 = vsel %vm1516_vm1, %v1474_v14, 0 }
 0x292   :  { %1635 = vmatpush.bf16.msrb.mxu1 %v1626_v18  ;;  %v1698_v22 = vrot.slane %v1697_v63, 2  ;;  %v1846_v18 = vld [vmem:[%s3860_s12] sm:$0x3]  ;;  %s2289_s12 = sshll.u32 %s3865_s17, 4  ;;  %s2290_s12 = int_to_ptr.hbm [resolvable:$true] %s2289_s12 }
 0x293   :  { %v1386_v54 = vadd.f32 %v1385_v15, %v1384_v6  ;;  %v1397_v25 = vadd.f32 %v1396_v51, %v1395_v52  ;;  %v1703_v62 = vmul.f32 %v1694_v16, %v1694_v16 }
 0x294   :  { %v1699_v30 = vadd.f32 %v1698_v22, %v1697_v63  ;;  %v1848_v22 = vperm.slane %v1846_v18, 0 }
 0x295   :  { %v1394_v32 = vmul.f32 %v3722_v21, %v1386_v54  ;;  %v1398_v33 = vrot.slane %v1397_v25, 2  ;;  %v1704_v39 = vrot.slane %v1703_v62, 4  ;;  %v3739_v16 = vpop.f32.mrf.mxu3  ;;  %v1849_v54 = vperm.slane %v1846_v18, 1 }
 0x296   :  { %v1700_v36 = vrot.slane %v1699_v30, 1  ;;  %v1320_v9 = vpop.f32.mrf.mxu2 }
 0x297   :  { %v1403_v17 = vadd.f32 0.0001, %v1394_v32  ;;  %v1399_v42 = vadd.f32 %v1398_v33, %v1397_v25  ;;  %v1705_v44 = vadd.f32 %v1704_v39, %v1703_v62  ;;  %v1321_v11 = vadd.f32 %v3712_v53, %v1320_v9 }
 0x298   :  { %v1701_v45 = vadd.f32 %v1700_v36, %v1699_v30 }
 0x299   :  { %v1400_v46 = vrot.slane %v1399_v42, 1  ;;  %2900 = vrsqrt.f32 %v1403_v17  ;;  %v3727_v48 = vadd.f32 %v1339_v7, %v1321_v11  ;;  %v1706_v37 = vrot.slane %v1705_v44, 2 }
 0x29a   :  { %v1702_v38 = vmul.f32 %v1701_v45, %v3722_v21  ;;  %vm1411_vm4 = vcmp.eq.f32.partialorder %v1403_v17, inf  ;;  %v1414_v1 = vand.u32 2147483648, %v1403_v17  ;;  %vm1413_vm5 = vcmp.eq.f32.partialorder %v1403_v17, 0.0 }
 0x29b   :  { %v1401_v13 = vadd.f32 %v1400_v46, %v1399_v42  ;;  %v1707_v43 = vadd.f32 %v1706_v37, %v1705_v44  ;;  %v2792_v37 = vld [vmem:[#allocation19 + $0x38] sm:$0xff] }
 0x29c   :  { %v1751_v31 = vmul.f32 %v1702_v38, %v1702_v38  ;;  %2230 = vmatpush.bf16.msra.mxu2 %v2792_v37 }
 0x29d   :  { %v1402_v3 = vmul.f32 %v1401_v13, %v3722_v21  ;;  %v1708_v58 = vrot.slane %v1707_v43, 1  ;;  %v2800_v13 = vld [vmem:[#allocation19 + $0x78] sm:$0xff] }
 0x29e   :  { %v1752_v60 = vsel %vm1418_vm3, %v1751_v31, 0.0  ;;  %v3737_v51 = vpop.f32.mrf.mxu2  ;;  %2244 = vmatpush.bf16.msra.mxu3 %v2800_v13 }
 0x29f   :  { %v2901_v47 = vpop.eup %2900  ;;  %v1438_v12 = vadd.f32 0.0001, %v1402_v3  ;;  %1753 = vadd.xlane.f32.xlu2 %v1752_v60  ;;  %v1709_v55 = vadd.f32 %v1708_v58, %v1707_v43 }
 0x2a0   :  { %v1405_v23 = vmul.f32 %v2901_v47, %v1403_v17 }
 0x2a1   :  { %2902 = vrsqrt.f32 %v1438_v12  ;;  %v1710_v49 = vmul.f32 %v1709_v55, %v3722_v21  ;;  %vm1446_vm6 = vcmp.eq.f32.partialorder %v1438_v12, inf  ;;  %v1449_v0 = vand.u32 2147483648, %v1438_v12  ;;  %v2791_v55 = vld [vmem:[#allocation19 + $0x30] sm:$0xff] }
 0x2a2   :  { %v1406_v56 = vmul.f32 %v2901_v47, %v1405_v23  ;;  %vm1448_vm7 = vcmp.eq.f32.partialorder %v1438_v12, 0.0  ;;  %2231 = vmatpush.bf16.msra.mxu2 %v2791_v55  ;;  %v2785_v55 = vld [vmem:[#allocation19] sm:$0xff] }
 0x2a3   :  { %v1803_v57 = vmul.f32 %v1710_v49, %v1710_v49 }
 0x2a4   :  { %v1407_v40 = vmul.f32 0.5, %v1406_v56  ;;  %v2799_v56 = vld [vmem:[#allocation19 + $0x70] sm:$0xff] }
 0x2a5   :  { %v3733_v61 = vsel %vm1418_vm3, %v1803_v57, 0.0  ;;  %2245 = vmatpush.bf16.msra.mxu3 %v2799_v56  ;;  %v2793_v56 = vld [vmem:[#allocation19 + $0x40] sm:$0xff] }
 0x2a6   :  { %v1408_v27 = vsub.f32 1.5, %v1407_v40 }
 0x2a7   :  { %v2903_v35 = vpop.eup %2902 }
 0x2a8   :  { %v1409_v4 = vmul.f32 %v2901_v47, %v1408_v27  ;;  %v1440_v24 = vmul.f32 %v2903_v35, %v1438_v12 }
 0x2aa   :  { %v1410_v5 = vmul.f32 %v1409_v4, %v1403_v17  ;;  %v1441_v59 = vmul.f32 %v2903_v35, %v1440_v24 }
 0x2ac   :  { %v1412_v41 = vsel %vm1411_vm4, %v1403_v17, %v1410_v5  ;;  %v1442_v19 = vmul.f32 0.5, %v1441_v59  ;;  %v2790_v59 = vld [vmem:[#allocation19 + $0x28] sm:$0xff] }
 0x2ad   :  { %v1415_v2 = vsel %vm1413_vm5, %v1414_v1, %v1412_v41  ;;  %v2798_v1 = vld [vmem:[#allocation19 + $0x68] sm:$0xff]  ;;  %2232 = vmatpush.bf16.msra.mxu2 %v2790_v59 }
 0x2ae   :  { %v1416_v8 = vsub.f32 1.0, %v1415_v2  ;;  %v1443_v20 = vsub.f32 1.5, %v1442_v19  ;;  %2246 = vmatpush.bf16.msra.mxu3 %v2798_v1 }
 0x2b0   :  { %v1417_v34 = vmax.f32 %v1416_v8, 0.0  ;;  %v1444_v28 = vmul.f32 %v2903_v35, %v1443_v20 }
 0x2b2   :  { %v1419_v26 = vsel %vm1418_vm3, %v1417_v34, 0.0  ;;  %v1445_v10 = vmul.f32 %v1444_v28, %v1438_v12 }
 0x2b3   :  { %1420 = vadd.xlane.f32.xlu1 %v1419_v26 }
 0x2b4   :  { %v1447_v6 = vsel %vm1446_vm6, %v1438_v12, %v1445_v10  ;;  %v2789_v10 = vld [vmem:[#allocation19 + $0x20] sm:$0xff] }
 0x2b5   :  { %v1450_v52 = vsel %vm1448_vm7, %v1449_v0, %v1447_v6  ;;  %v2797_v0 = vld [vmem:[#allocation19 + $0x60] sm:$0xff]  ;;  %2233 = vmatpush.bf16.msra.mxu2 %v2789_v10 }
 0x2b6   :  { %v1451_v14 = vsub.f32 1.0, %v1450_v52  ;;  %2247 = vmatpush.bf16.msra.mxu3 %v2797_v0 }
 0x2b8   :  { %v1452_v63 = vmax.f32 %v1451_v14, 0.0 }
 0x2ba   :  { %v1453_v15 = vsel %vm1418_vm3, %v1452_v63, 0.0 }
 0x2bb   :  { %1454 = vadd.xlane.f32.xlu1 %v1453_v15 }
 0x304   :  { %v1941_v25 = vpop.f32.mrf.mxu2  ;;  %v1955_v62 = vpop.f32.mrf.mxu3 }
 0x305   :  { %v1942_v30 = vadd.f32 %v1941_v25, %v1848_v22  ;;  %v1956_v32 = vadd.f32 %v1955_v62, %v1849_v54  ;;  %v2788_v25 = vld [vmem:[#allocation19 + $0x18] sm:$0xff] }
 0x306   :  { %v2796_v62 = vld [vmem:[#allocation19 + $0x58] sm:$0xff]  ;;  %2234 = vmatpush.bf16.msra.mxu2 %v2788_v25 }
 0x307   :  { %v1962_v33 = vrot.slane %v1942_v30, 4  ;;  %v1968_v39 = vrot.slane %v1956_v32, 4  ;;  %2248 = vmatpush.bf16.msra.mxu3 %v2796_v62 }
 0x309   :  { %v1963_v36 = vadd.f32 %v1962_v33, %v1942_v30  ;;  %v1969_v17 = vadd.f32 %v1968_v39, %v1956_v32 }
 0x30b   :  { %v1964_v42 = vrot.slane %v1963_v36, 2  ;;  %v1970_v9 = vrot.slane %v1969_v17, 2 }
 0x30c   :  { %v1943_v44 = vpop.f32.mrf.mxu2  ;;  %v1957_v45 = vpop.f32.mrf.mxu3 }
 0x30d   :  { %v1965_v11 = vadd.f32 %v1964_v42, %v1963_v36  ;;  %v1971_v46 = vadd.f32 %v1970_v9, %v1969_v17  ;;  %v1944_v7 = vadd.f32 %v1943_v44, %v1848_v22  ;;  %v1958_v38 = vadd.f32 %v1957_v45, %v1849_v54  ;;  %v2787_v44 = vld [vmem:[#allocation19 + $0x10] sm:$0xff] }
 0x30e   :  { %v2795_v45 = vld [vmem:[#allocation19 + $0x50] sm:$0xff]  ;;  %2235 = vmatpush.bf16.msra.mxu2 %v2787_v44 }
 0x30f   :  { %v1966_v31 = vrot.slane %v1965_v11, 1  ;;  %v1972_v43 = vrot.slane %v1971_v46, 1  ;;  %v2034_v3 = vrot.slane %v1944_v7, 4  ;;  %v2040_v60 = vrot.slane %v1958_v38, 4  ;;  %2249 = vmatpush.bf16.msra.mxu3 %v2795_v45 }
 0x311   :  { %v1967_v58 = vadd.f32 %v1966_v31, %v1965_v11  ;;  %v1973_v47 = vadd.f32 %v1972_v43, %v1971_v46  ;;  %v2035_v12 = vadd.f32 %v2034_v3, %v1944_v7  ;;  %v2041_v23 = vadd.f32 %v2040_v60, %v1958_v38  ;;  %v2786_v3 = vld [vmem:[#allocation19 + $0x8] sm:$0xff] }
 0x312   :  { %v2794_v60 = vld [vmem:[#allocation19 + $0x48] sm:$0xff]  ;;  %2236 = vmatpush.bf16.msra.mxu2 %v2786_v3 }
 0x313   :  { %v1974_v49 = vmul.f32 %v1967_v58, %v3392_v29  ;;  %v1975_v40 = vmul.f32 %v1973_v47, %v3392_v29  ;;  %v2036_v57 = vrot.slane %v2035_v12, 2  ;;  %v2042_v27 = vrot.slane %v2041_v23, 2  ;;  %2250 = vmatpush.bf16.msra.mxu3 %v2794_v60 }
 0x315   :  { %v3746_v35 = vsub.f32 %v1942_v30, %v1974_v49  ;;  %v3748_v4 = vsub.f32 %v1956_v32, %v1975_v40  ;;  %v2037_v24 = vadd.f32 %v2036_v57, %v2035_v12  ;;  %v2043_v5 = vadd.f32 %v2042_v27, %v2041_v23 }
 0x316   :  { %2237 = vmatpush.bf16.msra.mxu2 %v2785_v55 }
 0x317   :  { %v1978_v41 = vmul.f32 %v3746_v35, %v3746_v35  ;;  %v1979_v19 = vmul.f32 %v3748_v4, %v3748_v4  ;;  %v2038_v2 = vrot.slane %v2037_v24, 1  ;;  %v2044_v8 = vrot.slane %v2043_v5, 1  ;;  %2251 = vmatpush.bf16.msra.mxu3 %v2793_v56 }
 0x319   :  { %v1980_v20 = vrot.slane %v1978_v41, 4  ;;  %v1986_v34 = vrot.slane %v1979_v19, 4  ;;  %v2039_v28 = vadd.f32 %v2038_v2, %v2037_v24  ;;  %v2045_v26 = vadd.f32 %v2044_v8, %v2043_v5 }
 0x31b   :  { %v1981_v6 = vadd.f32 %v1980_v20, %v1978_v41  ;;  %v1987_v52 = vadd.f32 %v1986_v34, %v1979_v19  ;;  %v2046_v14 = vmul.f32 %v2039_v28, %v3392_v29  ;;  %v2047_v63 = vmul.f32 %v2045_v26, %v3392_v29 }
 0x31d   :  { %v1982_v15 = vrot.slane %v1981_v6, 2  ;;  %v1988_v18 = vrot.slane %v1987_v52, 2  ;;  %v3756_v22 = vsub.f32 %v1944_v7, %v2046_v14  ;;  %v3758_v54 = vsub.f32 %v1958_v38, %v2047_v63 }
 0x31f   :  { %v1983_v30 = vadd.f32 %v1982_v15, %v1981_v6  ;;  %v1989_v32 = vadd.f32 %v1988_v18, %v1987_v52  ;;  %v2050_v33 = vmul.f32 %v3756_v22, %v3756_v22  ;;  %v2051_v39 = vmul.f32 %v3758_v54, %v3758_v54  ;;  %v1960_v18 = vld [vmem:[%s3861_s13] sm:$0x3] }
 0x320   :  { %v2020_v44 = vperm.slane %v1960_v18, 1 }
 0x321   :  { %v1984_v36 = vrot.slane %v1983_v30, 1  ;;  %v1990_v17 = vrot.slane %v1989_v32, 1  ;;  %v2052_v42 = vrot.slane %v2050_v33, 4  ;;  %v2058_v9 = vrot.slane %v2051_v39, 4 }
 0x323   :  { %v1985_v11 = vadd.f32 %v1984_v36, %v1983_v30  ;;  %v1991_v46 = vadd.f32 %v1990_v17, %v1989_v32  ;;  %v2053_v7 = vadd.f32 %v2052_v42, %v2050_v33  ;;  %v2059_v38 = vadd.f32 %v2058_v9, %v2051_v39 }
 0x324   :  { %v2019_v36 = vperm.slane %v1960_v18, 0 }
 0x325   :  { %v1992_v37 = vmul.f32 %v1985_v11, %v3392_v29  ;;  %v1993_v13 = vmul.f32 %v1991_v46, %v3392_v29  ;;  %v2054_v31 = vrot.slane %v2053_v7, 2  ;;  %v2060_v43 = vrot.slane %v2059_v38, 2  ;;  %v1961_v11 = vld [vmem:[%s3862_s14] sm:$0x3]  ;;  %s3228_s14 = smov [#allocation20]  }
 0x327   :  { %v1994_v58 = vadd.f32 1e-05, %v1992_v37  ;;  %v1995_v47 = vadd.f32 1e-05, %v1993_v13  ;;  %v2055_v12 = vadd.f32 %v2054_v31, %v2053_v7  ;;  %v2061_v23 = vadd.f32 %v2060_v43, %v2059_v38 }
 0x328   :  { %v2026_v37 = vperm.slane %v1961_v11, 0  ;;  %v2027_v31 = vperm.slane %v1961_v11, 1 }
 0x329   :  { %2904 = vrsqrt.f32 %v1994_v58  ;;  %v2056_v49 = vrot.slane %v2055_v12, 1  ;;  %v2062_v40 = vrot.slane %v2061_v23, 1  ;;  %vm2002_vm10 = vweird.f32 %v1994_v58 }
 0x32a   :  { %2906 = vrsqrt.f32 %v1995_v47  ;;  %vm2012_vm12 = vweird.f32 %v1995_v47 }
 0x32b   :  { %v2057_v57 = vadd.f32 %v2056_v49, %v2055_v12  ;;  %v2063_v27 = vadd.f32 %v2062_v40, %v2061_v23 }
 0x32d   :  { %v2064_v24 = vmul.f32 %v2057_v57, %v3392_v29  ;;  %v2065_v5 = vmul.f32 %v2063_v27, %v3392_v29 }
 0x32f   :  { %v2905_v59 = vpop.eup %2904  ;;  %v2066_v1 = vadd.f32 1e-05, %v2064_v24  ;;  %v2067_v2 = vadd.f32 1e-05, %v2065_v5 }
 0x330   :  { %v2907_v41 = vpop.eup %2906  ;;  %v1997_v19 = vmul.f32 %v2905_v59, %v1994_v58  ;;  %vm2003_vm8 = vweird.f32 %v2905_v59 }
 0x331   :  { %v2007_v8 = vmul.f32 %v2907_v41, %v1995_v47  ;;  %2908 = vrsqrt.f32 %v2066_v1  ;;  %vm2013_vm9 = vweird.f32 %v2907_v41  ;;  %vm2004_vm11 = vmor %vm2002_vm10, %vm2003_vm8  ;;  %vm2074_vm1 = vweird.f32 %v2066_v1 }
 0x332   :  { %v1998_v20 = vmul.f32 %v2905_v59, %v1997_v19  ;;  %2910 = vrsqrt.f32 %v2067_v2  ;;  %vm2014_vm13 = vmor %vm2012_vm12, %vm2013_vm9  ;;  %vm2084_vm3 = vweird.f32 %v2067_v2 }
 0x333   :  { %v2008_v34 = vmul.f32 %v2907_v41, %v2007_v8 }
 0x334   :  { %v1999_v28 = vmul.f32 0.5, %v1998_v20 }
 0x335   :  { %v2009_v26 = vmul.f32 0.5, %v2008_v34 }
 0x336   :  { %v2000_v10 = vsub.f32 1.5, %v1999_v28 }
 0x337   :  { %v2909_v0 = vpop.eup %2908  ;;  %v2010_v6 = vsub.f32 1.5, %v2009_v26 }
 0x338   :  { %v2911_v52 = vpop.eup %2910  ;;  %v2001_v14 = vmul.f32 %v2905_v59, %v2000_v10  ;;  %v2069_v29 = vmul.f32 %v2909_v0, %v2066_v1  ;;  %vm2075_vm15 = vweird.f32 %v2909_v0 }
 0x339   :  { %v2011_v63 = vmul.f32 %v2907_v41, %v2010_v6  ;;  %v2079_v15 = vmul.f32 %v2911_v52, %v2067_v2  ;;  %vm2085_vm0 = vweird.f32 %v2911_v52  ;;  %vm2076_vm2 = vmor %vm2074_vm1, %vm2075_vm15  ;;  %v1345_v2 = vmul.f32 %v3716_v50, %v3716_v50 }
 0x33a   :  { %v2005_v25 = vsel %vm2004_vm11, %v2905_v59, %v2001_v14  ;;  %v2070_v62 = vmul.f32 %v2909_v0, %v2069_v29  ;;  %vm2086_vm4 = vmor %vm2084_vm3, %vm2085_vm0 }
 0x33b   :  { %v2015_v30 = vsel %vm2014_vm13, %v2907_v41, %v2011_v63  ;;  %v2080_v32 = vmul.f32 %v2911_v52, %v2079_v15  ;;  %v2016_v39 = vmul.f32 %v2005_v25, %v3746_v35 }
 0x33c   :  { %v2071_v33 = vmul.f32 0.5, %v2070_v62  ;;  %v2017_v9 = vmul.f32 %v2015_v30, %v3748_v4 }
 0x33d   :  { %v2081_v17 = vmul.f32 0.5, %v2080_v32  ;;  %v2846_v42 = vpop.trf.xlu0  ;;  %v2023_v38 = vmul.f32 %v2019_v36, %v2016_v39 }
 0x33e   :  { %v2072_v45 = vsub.f32 1.5, %v2071_v33  ;;  %2561 = vmatmul.msk.bf16.vlgmr.msrb.gmra.mxu0 %vm1491_vm14, %v2846_v42  ;;  %v2024_v13 = vmul.f32 %v2020_v44, %v2017_v9 }
 0x33f   :  { %v2082_v46 = vsub.f32 1.5, %v2081_v17  ;;  %v2030_v12 = vadd.f32 %v2026_v37, %v2023_v38  ;;  %v1421_v38 = vpop.xlane.xlu1 %1420 }
 0x340   :  { %v2073_v7 = vmul.f32 %v2909_v0, %v2072_v45  ;;  %v2031_v55 = vadd.f32 %v2027_v31, %v2024_v13 }
 0x341   :  { %v2083_v35 = vmul.f32 %v2911_v52, %v2082_v46  ;;  %v2032_v40 = vmax.f32 %v2030_v12, 0.0 }
 0x342   :  { %v2077_v4 = vsel %vm2076_vm2, %v2909_v0, %v2073_v7  ;;  %v2033_v27 = vmax.f32 %v2031_v55, 0.0 }
 0x343   :  { %v2088_v43 = vmul.f32 %v2077_v4, %v3756_v22  ;;  %v2087_v3 = vsel %vm2086_vm4, %v2911_v52, %v2083_v35 }
 0x344   :  { %v2089_v60 = vmul.f32 %v2087_v3, %v3758_v54 }
 0x345   :  { %v2090_v58 = vmul.f32 %v2088_v43, %v2019_v36  ;;  %v2847_v47 = vpop.trf.xlu0 }
 0x346   :  { %v2091_v23 = vmul.f32 %v2089_v60, %v2020_v44  ;;  %2569 = vmatmul.msk.bf16.vlgmr.msrb.gmra.mxu1 %vm1491_vm14, %v2847_v47  ;;  %v2863_v44 = vld [vmem:[%s3864_s16] ss:$0 sm:$0xff]  ;;  %v1323_v60 = vadd.f32 %v3712_v53, %v3737_v51  ;;  %v3225_v47 = vmov 1024.0  }
 0x347   :  { %v2092_v56 = vadd.f32 %v2090_v58, %v2026_v37  ;;  %2912 = vrcp.f32 %v3225_v47 }
 0x348   :  { %v2093_v49 = vadd.f32 %v2091_v23, %v2027_v31 }
 0x349   :  { %v2094_v57 = vmax.f32 %v2092_v56, 0.0 }
 0x34a   :  { %v2095_v24 = vmax.f32 %v2093_v49, 0.0  ;;  %v3226_v49 = vmov 128.0  }
 0x34b   :  { %v2096_v5 = vpack.c.bf16 %v2094_v57, %v2032_v40  ;;  %2914 = vrcp.f32 %v3226_v49  ;;  %v1342_v57 = vadd.f32 %v3739_v16, %v1323_v60 }
 0x34c   :  { %v2097_v59 = vpack.c.bf16 %v2095_v24, %v2033_v27 }
 0x34d   :  { %2238 = vmatmul.bf16.vlgmr.msra.gmra.mxu2 %v2096_v5  ;;  %v2848_v22 = vpop.trf.xlu0  ;;  %v2913_v51 = vpop.eup %2912 }
 0x34e   :  { %2252 = vmatmul.bf16.vlgmr.msra.gmra.mxu3 %v2097_v59  ;;  %2562 = vmatmul.msk.bf16.gmra.mxu0 %vm1491_vm14, %v2848_v22  ;;  %vm1360_vm5 = vweird.f32 %v2913_v51 }
 0x355   :  { %v2849_v54 = vpop.trf.xlu0 }
 0x356   :  { %2570 = vmatmul.msk.bf16.gmra.mxu1 %vm1491_vm14, %v2849_v54  ;;  %v1455_v54 = vpop.xlane.xlu1 %1454 }
 0x35d   :  { %v2850_v1 = vpop.trf.xlu0 }
 0x35e   :  { %2563 = vmatmul.msk.bf16.gmra.mxu0 %vm1491_vm14, %v2850_v1 }
 0x365   :  { %v2851_v41 = vpop.trf.xlu0 }
 0x366   :  { %2571 = vmatmul.msk.bf16.gmra.mxu1 %vm1491_vm14, %v2851_v41  ;;  %v1422_v41 = vrot.slane %v1421_v38, 4 }
 0x36d   :  { %v2852_v19 = vpop.trf.xlu0 }
 0x36e   :  { %2564 = vmatmul.msk.bf16.gmra.mxu0 %vm1491_vm14, %v2852_v19 }
 0x372   :  { %1346 = vadd.xlane.f32.xlu0 %v1345_v2 }
 0x375   :  { %v2853_v8 = vpop.trf.xlu0 }
 0x376   :  { %2572 = vmatmul.msk.bf16.gmra.mxu1 %vm1491_vm14, %v2853_v8  ;;  %v2915_v8 = vpop.eup %2914 }
 0x377   :  { %vm1434_vm6 = vweird.f32 %v2915_v8 }
 0x37d   :  { %v2854_v20 = vpop.trf.xlu0 }
 0x37e   :  { %2565 = vmatmul.msk.bf16.gmra.mxu0 %vm1491_vm14, %v2854_v20 }
 0x385   :  { %v2855_v34 = vpop.trf.xlu0 }
 0x386   :  { %2573 = vmatmul.msk.bf16.gmra.mxu1 %vm1491_vm14, %v2855_v34 }
 0x38d   :  { %v2856_v28 = vpop.trf.xlu0 }
 0x38e   :  { %2566 = vmatmul.msk.bf16.gmra.mxu0 %vm1491_vm14, %v2856_v28  ;;  %v1456_v28 = vrot.slane %v1455_v54, 4 }
 0x395   :  { %v2857_v26 = vpop.trf.xlu0 }
 0x396   :  { %2574 = vmatmul.msk.bf16.gmra.mxu1 %vm1491_vm14, %v2857_v26  ;;  %v1356_v26 = vmul.f32 1024.0, %v2913_v51 }
 0x39d   :  { %v2858_v10 = vpop.trf.xlu0 }
 0x39e   :  { %2567 = vmatmul.msk.bf16.gmra.mxu0 %vm1491_vm14, %v2858_v10 }
 0x3a5   :  { %v2859_v50 = vpop.trf.xlu0 }
 0x3a6   :  { %2575 = vmatmul.msk.bf16.gmra.mxu1 %vm1491_vm14, %v2859_v50  ;;  %v1423_v50 = vadd.f32 %v1422_v41, %v1421_v38 }
 0x3ad   :  { %v2860_v0 = vpop.trf.xlu0 }
 0x3ae   :  { %2568 = vmatmul.msk.bf16.gmra.mxu0 %vm1491_vm14, %v2860_v0  ;;  %v1430_v0 = vmul.f32 128.0, %v2915_v8 }
 0x3b5   :  { %v2861_v6 = vpop.trf.xlu0 }
 0x3b6   :  { %2576 = vmatmul.msk.bf16.gmra.mxu1 %vm1491_vm14, %v2861_v6 }
 0x3bb   :  { %v1529_v52 = vpop.f32.mrf.mxu0 }
 0x3bc   :  { %v1569_v14 = vmul.f32 %v1529_v52, %v3722_v21 }
 0x3be   :  { %v1711_v18 = vmul.f32 %v1569_v14, %v1569_v14  ;;  %v1457_v14 = vadd.f32 %v1456_v28, %v1455_v54 }
 0x3c3   :  { %v1531_v29 = vpop.f32.mrf.mxu0  ;;  %v1637_v63 = vpop.f32.mrf.mxu1 }
 0x3c4   :  { %v1570_v15 = vmul.f32 %v1531_v29, %v3722_v21  ;;  %v1677_v30 = vmul.f32 %v1637_v63, %v3722_v21  ;;  %v1357_v63 = vsub.f32 1.0, %v1356_v26 }
 0x3c6   :  { %v1712_v25 = vmul.f32 %v1570_v15, %v1570_v15  ;;  %v1763_v17 = vmul.f32 %v1677_v30, %v1677_v30  ;;  %v1431_v30 = vsub.f32 1.0, %v1430_v0 }
 0x3c8   :  { %v1727_v62 = vadd.f32 %v1712_v25, %v1711_v18  ;;  %v1424_v18 = vrot.slane %v1423_v50, 2 }
 0x3cb   :  { %v1534_v32 = vpop.f32.mrf.mxu0  ;;  %v1639_v33 = vpop.f32.mrf.mxu1 }
 0x3cc   :  { %v1571_v39 = vmul.f32 %v1534_v32, %v3722_v21  ;;  %v1678_v36 = vmul.f32 %v1639_v33, %v3722_v21  ;;  %v1458_v32 = vrot.slane %v1457_v14, 2 }
 0x3ce   :  { %v1713_v42 = vmul.f32 %v1571_v39, %v1571_v39  ;;  %v1764_v9 = vmul.f32 %v1678_v36, %v1678_v36  ;;  %v1358_v36 = vmul.f32 %v2913_v51, %v1357_v63 }
 0x3d0   :  { %v1728_v45 = vadd.f32 %v1727_v62, %v1713_v42  ;;  %v1779_v11 = vadd.f32 %v1764_v9, %v1763_v17  ;;  %v2239_v46 = vpop.f32.mrf.mxu2  ;;  %v1425_v42 = vadd.f32 %v1424_v18, %v1423_v50  ;;  %v1432_v9 = vmul.f32 %v2915_v8, %v1431_v30 }
 0x3d1   :  { %v2253_v7 = vpop.f32.mrf.mxu3  ;;  %v2240_v35 = vadd.f32 %v2863_v44, %v2239_v46  ;;  %v1359_v46 = vadd.f32 %v2913_v51, %v1358_v36 }
 0x3d3   :  { %v1536_v37 = vpop.f32.mrf.mxu0  ;;  %v1642_v13 = vpop.f32.mrf.mxu1  ;;  %v2254_v58 = vadd.f32 %v2253_v7, %v2240_v35  ;;  %v1459_v7 = vadd.f32 %v1458_v32, %v1457_v14  ;;  %v1426_v35 = vrot.slane %v1425_v42, 1 }
 0x3d4   :  { %v1572_v4 = vmul.f32 %v1536_v37, %v3722_v21  ;;  %v1679_v31 = vmul.f32 %v1642_v13, %v3722_v21  ;;  %v1433_v37 = vadd.f32 %v2915_v8, %v1432_v9 }
 0x3d5   :  { %v2258_v27 = vsub.f32 %v2254_v58, %v3727_v48 }
 0x3d6   :  { %v1714_v43 = vmul.f32 %v1572_v4, %v1572_v4  ;;  %v1765_v3 = vmul.f32 %v1679_v31, %v1679_v31  ;;  %v1361_v4 = vsel %vm1360_vm5, %v2913_v51, %v1359_v46  ;;  %v1460_v31 = vrot.slane %v1459_v7, 1 }
 0x3d7   :  { %v2260_v20 = vmul.f32 %v2258_v27, %v2258_v27 }
 0x3d8   :  { %v1729_v12 = vadd.f32 %v1728_v45, %v1714_v43  ;;  %v1780_v23 = vadd.f32 %v1779_v11, %v1765_v3  ;;  %v2241_v55 = vpop.f32.mrf.mxu2  ;;  %v1427_v43 = vadd.f32 %v1426_v35, %v1425_v42  ;;  %v1435_v3 = vsel %vm1434_vm6, %v2915_v8, %v1433_v37 }
 0x3d9   :  { %v2242_v56 = vadd.f32 %v2863_v44, %v2241_v55  ;;  %v2255_v40 = vpop.f32.mrf.mxu3  ;;  %v1461_v47 = vadd.f32 %v1460_v31, %v1459_v7 }
 0x3db   :  { %v2256_v24 = vadd.f32 %v2255_v40, %v2242_v56  ;;  %v1539_v5 = vpop.f32.mrf.mxu0  ;;  %v1644_v59 = vpop.f32.mrf.mxu1 }
 0x3dc   :  { %v1573_v22 = vmul.f32 %v1539_v5, %v3722_v21  ;;  %v1680_v53 = vmul.f32 %v1644_v59, %v3722_v21 }
 0x3dd   :  { %v2259_v1 = vsub.f32 %v2256_v24, %v1342_v57 }
 0x3de   :  { %v1715_v19 = vmul.f32 %v1573_v22, %v1573_v22  ;;  %v1766_v2 = vmul.f32 %v1680_v53, %v1680_v53 }
 0x3df   :  { %v2261_v34 = vmul.f32 %v2259_v1, %v2259_v1 }
 0x3e0   :  { %v3812_v16 = vadd.f32 %v1729_v12, %v1715_v19  ;;  %v1781_v48 = vadd.f32 %v1780_v23, %v1766_v2 }
 0x3e1   :  { %v3814_v10 = vadd.f32 %v2261_v34, %v2260_v20 }
 0x3e3   :  { %v1541_v6 = vpop.f32.mrf.mxu0  ;;  %v1647_v52 = vpop.f32.mrf.mxu1 }
 0x3e4   :  { %v1681_v29 = vmul.f32 %v1647_v52, %v3722_v21  ;;  %v1574_v59 = vmul.f32 %v1541_v6, %v3722_v21 }
 0x3e5   :  { %v1347_v15 = vpop.xlane.xlu0 %1346 }
 0x3e6   :  { %v1767_v25 = vmul.f32 %v1681_v29, %v1681_v29  ;;  %v1348_v62 = vrot.slane %v1347_v15, 4  ;;  %v1716_v53 = vmul.f32 %v1574_v59, %v1574_v59 }
 0x3e8   :  { %v3817_v33 = vadd.f32 %v1781_v48, %v1767_v25  ;;  %v1349_v39 = vadd.f32 %v1348_v62, %v1347_v15  ;;  %v1731_v8 = vadd.f32 %v3812_v16, %v1716_v53 }
 0x3ea   :  { %v1350_v17 = vrot.slane %v1349_v39, 2 }
 0x3eb   :  { %v1544_v44 = vpop.f32.mrf.mxu0  ;;  %v1649_v45 = vpop.f32.mrf.mxu1 }
 0x3ec   :  { %v1351_v11 = vadd.f32 %v1350_v17, %v1349_v39  ;;  %v1575_v22 = vmul.f32 %v1544_v44, %v3722_v21  ;;  %v1682_v41 = vmul.f32 %v1649_v45, %v3722_v21 }
 0x3ee   :  { %v1352_v38 = vrot.slane %v1351_v11, 1  ;;  %v1717_v54 = vmul.f32 %v1575_v22, %v1575_v22  ;;  %v1768_v0 = vmul.f32 %v1682_v41, %v1682_v41 }
 0x3f0   :  { %v1353_v13 = vadd.f32 %v1352_v38, %v1351_v11  ;;  %v1732_v48 = vadd.f32 %v1731_v8, %v1717_v54  ;;  %v1783_v62 = vadd.f32 %v3817_v33, %v1768_v0 }
 0x3f2   :  { %2801 = vpush %v1353_v13 }
 0x3f3   :  { %2803 = vpush %v1361_v4  ;;  %v1546_v60 = vpop.f32.mrf.mxu0  ;;  %v1652_v58 = vpop.f32.mrf.mxu1 }
 0x3f4   :  { %2805 = vpush %v1427_v43  ;;  %v1576_v51 = vmul.f32 %v1546_v60, %v3722_v21  ;;  %v1683_v28 = vmul.f32 %v1652_v58, %v3722_v21 }
 0x3f5   :  { %2807 = vpush %v1435_v3 }
 0x3f6   :  { %2809 = vpush %v1461_v47  ;;  %v1718_v20 = vmul.f32 %v1576_v51, %v1576_v51  ;;  %v1769_v63 = vmul.f32 %v1683_v28, %v1683_v28  ;;  %v1754_v28 = vpop.xlane.xlu2 %1753 }
 0x3f8   :  { %v1733_v52 = vadd.f32 %v1732_v48, %v1718_v20  ;;  %v1784_v44 = vadd.f32 %v1783_v62, %v1769_v63  ;;  %v1755_v48 = vrot.slane %v1754_v28, 4 }
 0x3fb   :  { %v1549_v12 = vpop.f32.mrf.mxu0  ;;  %v1654_v23 = vpop.f32.mrf.mxu1 }
 0x3fc   :  { %v1577_v1 = vmul.f32 %v1549_v12, %v3722_v21  ;;  %v1684_v6 = vmul.f32 %v1654_v23, %v3722_v21 }
 0x3fe   :  { %v1719_v26 = vmul.f32 %v1577_v1, %v1577_v1  ;;  %v1770_v30 = vmul.f32 %v1684_v6, %v1684_v6 }
 0x400   :  { %v1734_v16 = vadd.f32 %v1733_v52, %v1719_v26  ;;  %v1785_v35 = vadd.f32 %v1784_v44, %v1770_v30  ;;  %v1756_v26 = vadd.f32 %v1755_v48, %v1754_v28  ;;  %v3227_v52 = vmov 2048.0  }
 0x401   :  { %2916 = vrcp.f32 %v3227_v52 }
 0x403   :  { %v1551_v55 = vpop.f32.mrf.mxu0  ;;  %v1657_v56 = vpop.f32.mrf.mxu1 }
 0x404   :  { %v1578_v34 = vmul.f32 %v1551_v55, %v3722_v21  ;;  %v1685_v15 = vmul.f32 %v1657_v56, %v3722_v21 }
 0x406   :  { %v1720_v14 = vmul.f32 %v1578_v34, %v1578_v34  ;;  %v1771_v45 = vmul.f32 %v1685_v15, %v1685_v15 }
 0x407   :  { %v2917_v15 = vpop.eup %2916 }
 0x408   :  { %v1735_v17 = vadd.f32 %v1734_v16, %v1720_v14  ;;  %v1786_v31 = vadd.f32 %v1785_v35, %v1771_v45  ;;  %vm2277_vm7 = vweird.f32 %v2917_v15 }
 0x40b   :  { %v1554_v49 = vpop.f32.mrf.mxu0  ;;  %v1659_v40 = vpop.f32.mrf.mxu1 }
 0x40c   :  { %v1579_v50 = vmul.f32 %v1554_v49, %v3722_v21  ;;  %v1686_v32 = vmul.f32 %v1659_v40, %v3722_v21 }
 0x40e   :  { %v1721_v18 = vmul.f32 %v1579_v50, %v1579_v50  ;;  %v1772_v37 = vmul.f32 %v1686_v32, %v1686_v32  ;;  %v1757_v50 = vrot.slane %v1756_v26, 2 }
 0x410   :  { %v1736_v46 = vadd.f32 %v1735_v17, %v1721_v18  ;;  %v1787_v47 = vadd.f32 %v1786_v31, %v1772_v37 }
 0x413   :  { %v1556_v57 = vpop.f32.mrf.mxu0  ;;  %v1662_v27 = vpop.f32.mrf.mxu1 }
 0x414   :  { %v1580_v29 = vmul.f32 %v1556_v57, %v3722_v21  ;;  %v1687_v11 = vmul.f32 %v1662_v27, %v3722_v21 }
 0x416   :  { %v1722_v42 = vmul.f32 %v1580_v29, %v1580_v29  ;;  %v1773_v43 = vmul.f32 %v1687_v11, %v1687_v11  ;;  %v1758_v29 = vadd.f32 %v1757_v50, %v1756_v26 }
 0x418   :  { %v1737_v33 = vadd.f32 %v1736_v46, %v1722_v42  ;;  %v1788_v57 = vadd.f32 %v1787_v47, %v1773_v43 }
 0x41b   :  { %v1559_v24 = vpop.f32.mrf.mxu0  ;;  %v1664_v5 = vpop.f32.mrf.mxu1 }
 0x41c   :  { %v1581_v25 = vmul.f32 %v1559_v24, %v3722_v21  ;;  %v1688_v13 = vmul.f32 %v1664_v5, %v3722_v21 }
 0x41e   :  { %v1723_v7 = vmul.f32 %v1581_v25, %v1581_v25  ;;  %v1774_v55 = vmul.f32 %v1688_v13, %v1688_v13  ;;  %v1759_v25 = vrot.slane %v1758_v29, 1 }
 0x420   :  { %v1738_v3 = vadd.f32 %v1737_v33, %v1723_v7  ;;  %v1789_v22 = vadd.f32 %v1788_v57, %v1774_v55  ;;  %v1760_v17 = vadd.f32 %v1759_v25, %v1758_v29 }
 0x423   :  { %v1561_v19 = vpop.f32.mrf.mxu0  ;;  %v1667_v2 = vpop.f32.mrf.mxu1  ;;  %s2802_s16 = spop %2801 }
 0x424   :  { %v1582_v9 = vmul.f32 %v1561_v19, %v3722_v21  ;;  %v1689_v60 = vmul.f32 %v1667_v2, %v3722_v21  ;;  %s2804_s21 = spop %2803 }
 0x425   :  { %s2806_s22 = spop %2805  ;;  %s1363_s0 = smul.f32 %s2804_s21, %s2802_s16 }
 0x426   :  { %v1724_v4 = vmul.f32 %v1582_v9, %v1582_v9  ;;  %v1775_v27 = vmul.f32 %v1689_v60, %v1689_v60  ;;  %s2808_s25 = spop %2807 }
 0x427   :  { %s2810_s24 = spop %2809  ;;  %s1437_s2 = smul.f32 %s2808_s25, %s2806_s22 }
 0x428   :  { %v1739_v56 = vadd.f32 %v1738_v3, %v1724_v4  ;;  %v1790_v54 = vadd.f32 %v1789_v22, %v1775_v27  ;;  %s1471_s26 = smul.f32 %s2810_s24, %s2808_s25 }
 0x429   :  { %s1825_s19 = smul.f32 25.0, %s1363_s0 }
 0x42a   :  { %s1472_s4 = sadd.f32 %s1471_s26, %s1437_s2 }
 0x42b   :  { %v1564_v39 = vpop.f32.mrf.mxu0  ;;  %v1669_v36 = vpop.f32.mrf.mxu1 }
 0x42c   :  { %v1583_v38 = vmul.f32 %v1564_v39, %v3722_v21  ;;  %v1690_v49 = vmul.f32 %v1669_v36, %v3722_v21  ;;  %v2273_v36 = vmul.f32 2048.0, %v2917_v15  ;;  %s1826_s8 = smul.f32 25.0, %s1472_s4 }
 0x42e   :  { %v1725_v58 = vmul.f32 %v1583_v38, %v1583_v38  ;;  %v1776_v53 = vmul.f32 %v1690_v49, %v1690_v49  ;;  %v2274_v11 = vsub.f32 1.0, %v2273_v36  ;;  %s1827_s15 = sadd.f32 %s1826_s8, %s1825_s19 }
 0x430   :  { %v1740_v24 = vadd.f32 %v1739_v56, %v1725_v58  ;;  %v1791_v19 = vadd.f32 %v1790_v54, %v1776_v53  ;;  %v2275_v4 = vmul.f32 %v2917_v15, %v2274_v11 }
 0x432   :  { %v2276_v3 = vadd.f32 %v2917_v15, %v2275_v4 }
 0x433   :  { %v1566_v12 = vpop.f32.mrf.mxu0  ;;  %v1672_v23 = vpop.f32.mrf.mxu1 }
 0x434   :  { %v1584_v40 = vmul.f32 %v1566_v12, %v3722_v21  ;;  %v1691_v59 = vmul.f32 %v1672_v23, %v3722_v21  ;;  %v2278_v47 = vsel %vm2277_vm7, %v2917_v15, %v2276_v3 }
 0x436   :  { %v1726_v5 = vmul.f32 %v1584_v40, %v1584_v40  ;;  %v1777_v1 = vmul.f32 %v1691_v59, %v1691_v59 }
 0x438   :  { %v1741_v51 = vadd.f32 %v1740_v24, %v1726_v5  ;;  %v1792_v8 = vadd.f32 %v1791_v19, %v1777_v1 }
 0x43a   :  { %1742 = vadd.xlane.f32.xlu2 %v1741_v51 }
 0x43b   :  { %v1674_v41 = vpop.f32.mrf.mxu1 }
 0x43c   :  { %v1692_v2 = vmul.f32 %v1674_v41, %v3722_v21 }
 0x43e   :  { %v1778_v20 = vmul.f32 %v1692_v2, %v1692_v2 }
 0x440   :  { %v1793_v34 = vadd.f32 %v1792_v8, %v1778_v20 }
 0x442   :  { %1805 = vadd.xlane.f32.xlu2 %v3733_v61  ;;  %1794 = vadd.xlane.f32.xlu1 %v1793_v34 }
 0x44a   :  { %2263 = vadd.xlane.f32.xlu1 %v3814_v10 }
 0x4ad   :  { %v1743_v0 = vpop.xlane.xlu2 %1742 }
 0x4ae   :  { %v1744_v6 = vrot.slane %v1743_v0, 4 }
 0x4b0   :  { %v1745_v14 = vadd.f32 %v1744_v6, %v1743_v0 }
 0x4b2   :  { %v1746_v63 = vrot.slane %v1745_v14, 2 }
 0x4b4   :  { %v1747_v21 = vadd.f32 %v1746_v63, %v1745_v14 }
 0x4b5   :  { %v1806_v16 = vpop.xlane.xlu2 %1805  ;;  %v1795_v18 = vpop.xlane.xlu1 %1794 }
 0x4b6   :  { %v1807_v61 = vrot.slane %v1806_v16, 4  ;;  %v1796_v62 = vrot.slane %v1795_v18, 4  ;;  %v1748_v30 = vrot.slane %v1747_v21, 1 }
 0x4b8   :  { %v1808_v10 = vadd.f32 %v1807_v61, %v1806_v16  ;;  %v1797_v32 = vadd.f32 %v1796_v62, %v1795_v18  ;;  %v1749_v39 = vadd.f32 %v1748_v30, %v1747_v21 }
 0x4ba   :  { %v1809_v42 = vrot.slane %v1808_v10, 2  ;;  %v1798_v9 = vrot.slane %v1797_v32, 2  ;;  %2811 = vpush %v1749_v39 }
 0x4bb   :  { %2813 = vpush %v1760_v17 }
 0x4bc   :  { %v1810_v44 = vadd.f32 %v1809_v42, %v1808_v10  ;;  %v1799_v45 = vadd.f32 %v1798_v9, %v1797_v32 }
 0x4bd   :  { %v2264_v46 = vpop.xlane.xlu1 %2263 }
 0x4be   :  { %v2265_v7 = vrot.slane %v2264_v46, 4  ;;  %v1800_v38 = vrot.slane %v1799_v45, 1  ;;  %v1811_v35 = vrot.slane %v1810_v44, 1 }
 0x4c0   :  { %v2266_v37 = vadd.f32 %v2265_v7, %v2264_v46  ;;  %v1801_v33 = vadd.f32 %v1800_v38, %v1799_v45  ;;  %v1812_v13 = vadd.f32 %v1811_v35, %v1810_v44 }
 0x4c2   :  { %v2267_v31 = vrot.slane %v2266_v37, 2  ;;  %2815 = vpush %v1801_v33 }
 0x4c3   :  { %2817 = vpush %v1812_v13 }
 0x4c4   :  { %v2268_v43 = vadd.f32 %v2267_v31, %v2266_v37 }
 0x4c6   :  { %v2269_v60 = vrot.slane %v2268_v43, 1 }
 0x4c8   :  { %v2270_v58 = vadd.f32 %v2269_v60, %v2268_v43 }
 0x4ca   :  { %2819 = vpush %v2270_v58 }
 0x4cb   :  { %2821 = vpush %v2278_v47 }
 0x4eb   :  { %s2812_s28 = spop %2811 }
 0x4ec   :  { %s2814_s5 = spop %2813 }
 0x4ed   :  { %s1762_s29 = ssub.f32 %s2812_s28, %s2814_s5 }
 0x4f3   :  { %s2816_s27 = spop %2815 }
 0x4f4   :  { %s2818_s11 = spop %2817 }
 0x4f5   :  { %s1814_s6 = ssub.f32 %s2816_s27, %s2818_s11 }
 0x4f7   :  { %s1815_s9 = sadd.f32 %s1814_s6, %s1762_s29 }
 0x4f9   :  { %s1824_s10 = smul.f32 %s2808_s25, %s1815_s9 }
 0x4fb   :  { %s2820_s3 = spop %2819  ;;  %s1828_s20 = sadd.f32 %s1827_s15, %s1824_s10 }
 0x4fc   :  { %s2822_s1 = spop %2821 }
 0x4fd   :  { %s2280_s13 = smul.f32 %s2822_s1, %s2820_s3 }
 0x4ff   :  { %s2281_s18 = sadd.f32 %s2280_s13, %s1828_s20 }
 0x501   :  { %2283 = sst [smem:[#allocation20]] %s2281_s18 }
 0x502   :  { %2292 = dma.smem_to_hbm %s3228_s14, 16, %s2290_s12, [#allocation4]  }
 0x503   :  { %3206 = dma.done.wait [#allocation4], 16  }
 0x504   :  { %3207 = vsyncadd [#allocation4], 4294967280 }
 0x505   :  { %2297 = sfence }
 0x506   :  { %2298 = vsyncpa [#allocation3], 1 }
 0x507   :  { %2299 = vsyncpa [#allocation6], 1 }
 0x508   :  { %2300 = vsyncpa [#allocation9], 1 }
 0x509   :  { %2301 = vsyncpa [#allocation12], 1 }
 0x50a   :  { %2302 = vsyncpa [#allocation15], 1 }
 0x50b   :  { %2303 = vsyncpa [#allocation18], 1 }
 0x50c   :  { %2304 = vsyncpa [#allocation4], 1 }

</bundles_post_ra>
